<compile_context>
chip_gen: v6e
topology: v6e:2x2x1
jax: 0.10.0
libtpu: 0.0.40
codegen_flags: <defaults>
</compile_context>

<pallas_src>
import functools

import jax
import jax.numpy as jnp
from jax.experimental import pallas as pl
from jax.experimental.pallas import tpu as pltpu

LN_EPS = 1e-5  # torch.nn.LayerNorm default


def _layernorm(x, w, b, eps=LN_EPS):
    mu = jnp.mean(x, axis=-1, keepdims=True)
    xc = x - mu
    var = jnp.mean(xc * xc, axis=-1, keepdims=True)
    return xc * jax.lax.rsqrt(var + eps) * w + b


# ---------------------------------------------------------------------------
# Fused kernel: one batch row per grid step, all layers + decision head.
# ---------------------------------------------------------------------------
def choppy_kernel(x_ref,
                  wq_ref, wk_ref, wv_ref, bq_ref, bk_ref, bv_ref,
                  wo_ref, bo_ref, ln1w_ref, ln1b_ref,
                  w1_ref, b1_ref, w2_ref, b2_ref, ln2w_ref, ln2b_ref,
                  dw_ref, db_ref, o_ref, *, nhead, num_layers):
    x = x_ref[0]                                   # (S, D) f32
    S, D = x.shape
    head_dim = D // nhead
    scale = 1.0 / float(head_dim) ** 0.5

    for l in range(num_layers):                    # static unroll (2 layers)
        # --- multi-head self-attention: per-head contiguous weight tiles,
        #     head outputs accumulated directly into (S, D) (no concat). ---
        acc = jnp.zeros((S, D), jnp.float32)
        for h in range(nhead):                     # static unroll (4 heads)
            q = jnp.dot(x, wq_ref[l, h], preferred_element_type=jnp.float32) + bq_ref[l, h]
            k = jnp.dot(x, wk_ref[l, h], preferred_element_type=jnp.float32) + bk_ref[l, h]
            v = jnp.dot(x, wv_ref[l, h], preferred_element_type=jnp.float32) + bv_ref[l, h]
            s = jax.lax.dot_general(q, k, (((1,), (1,)), ((), ())),
                                    preferred_element_type=jnp.float32) * scale   # (S, S)
            s = s - jnp.max(s, axis=-1, keepdims=True)
            p = jnp.exp(s)
            p = p * pl.reciprocal(jnp.sum(p, axis=-1, keepdims=True), approx=True)
            head = jnp.dot(p, v, preferred_element_type=jnp.float32)              # (S, Dh)
            acc = acc + jnp.dot(head, wo_ref[l, h], preferred_element_type=jnp.float32)
        # residual + norm1 (out-proj bias included)
        x = _layernorm(x + acc + bo_ref[l], ln1w_ref[l], ln1b_ref[l])

        # --- feed-forward: bf16 weights (lane-dense), f32 accumulation ---
        h1 = jnp.dot(x.astype(jnp.bfloat16), w1_ref[l],
                     preferred_element_type=jnp.float32) + b1_ref[l]               # (S, FF)
        h1 = jnp.maximum(h1, 0.0)
        # w2 kept as (D, FF): contract on the lane-dense FF axis (h1 @ w2^T).
        ff = jax.lax.dot_general(h1.astype(jnp.bfloat16), w2_ref[l],
                                 (((1,), (1,)), ((), ())),
                                 preferred_element_type=jnp.float32) + b2_ref[l]   # (S, D)
        # residual + norm2
        x = _layernorm(x + ff, ln2w_ref[l], ln2b_ref[l])

    # --- decision head: Linear(D -> 1) then softmax over the sequence dim ---
    logits = jnp.sum(x * dw_ref[...], axis=-1, keepdims=True) + db_ref[...]        # (S, 1)
    m = jnp.max(logits, axis=0, keepdims=True)
    e = jnp.exp(logits - m)
    o_ref[0] = e / jnp.sum(e, axis=0, keepdims=True)   # exact divide (tiny, asserted)


_WEIGHT_NAMES = ('wq', 'wk', 'wv', 'bq', 'bk', 'bv', 'wo', 'bo', 'ln1w', 'ln1b',
                 'w1', 'b1', 'w2', 'b2', 'ln2w', 'ln2b')


def choppy_forward(feature, pos, params):
    # glue: embedding lookup + concat (cheap data-dependent gather, plain JAX)
    pe = jnp.take(params['embedding'], pos, axis=0)                  # (B, S, D-F)
    x = jnp.concatenate([feature.astype(jnp.float32), pe], axis=2)   # (B, S, D)
    B, S, D = x.shape
    L, H = params['wq'].shape[0], params['wq'].shape[1]

    def wspec(shape):
        n = len(shape)
        return pl.BlockSpec(shape, lambda b, n=n: (0,) * n)          # whole array, grid-invariant

    weight_args = [params[n] for n in _WEIGHT_NAMES]
    weight_specs = [wspec(params[n].shape) for n in _WEIGHT_NAMES]

    kernel = functools.partial(choppy_kernel, nhead=H, num_layers=L)
    return pl.pallas_call(
        kernel,
        out_shape=jax.ShapeDtypeStruct((B, S, 1), jnp.float32),
        grid=(B,),
        in_specs=[pl.BlockSpec((1, S, D), lambda b: (b, 0, 0))] + weight_specs
                 + [wspec(params['dec_w'].shape), wspec(params['dec_b'].shape)],
        out_specs=pl.BlockSpec((1, S, 1), lambda b: (b, 0, 0)),
        compiler_params=pltpu.CompilerParams(dimension_semantics=("parallel",)),
    )(x, *weight_args, params['dec_w'], params['dec_b'])


# ---------------------------------------------------------------------------
# Parameter construction (deterministic, synthetic). Weights are generated in
# PyTorch layouts, then rearranged into the kernel-friendly layouts.
# ---------------------------------------------------------------------------
def init_choppy_params(key, *, seq_len, feature_dim, d_model, nhead,
                       num_layers, dim_ff):
    head_dim = d_model // nhead
    ks = jax.random.split(key, 2 + num_layers)
    emb = 0.02 * jax.random.normal(ks[0], (seq_len, d_model - feature_dim), jnp.float32)

    def rnd(k, shape, scale=0.05):
        return scale * jax.random.normal(k, shape, jnp.float32)

    per_layer = {n: [] for n in _WEIGHT_NAMES}
    for i in range(num_layers):
        lk = jax.random.split(ks[2 + i], 8)
        w_in = rnd(lk[0], (3 * d_model, d_model))          # PyTorch in_proj_weight
        b_in = rnd(lk[1], (3 * d_model,), 0.01)            # in_proj_bias
        w_out = rnd(lk[2], (d_model, d_model))             # out_proj.weight
        b_out = rnd(lk[3], (d_model,), 0.01)
        w1 = rnd(lk[4], (dim_ff, d_model))                 # linear1.weight
        b1 = rnd(lk[5], (dim_ff,), 0.01)
        w2 = rnd(lk[6], (d_model, dim_ff))                 # linear2.weight
        b2 = rnd(lk[7], (d_model,), 0.01)

        wq_t, wk_t, wv_t = jnp.split(w_in, 3, axis=0)      # each (D, D)
        bq_t, bk_t, bv_t = jnp.split(b_in, 3, axis=0)      # each (D,)

        def per_head_w(w):   # (D, D) rows=outputs -> (H, D, Dh) so q_h = x @ w[h]
            return w.reshape(nhead, head_dim, d_model).transpose(0, 2, 1)

        def per_head_b(b):   # (D,) -> (H, 1, Dh)
            return b.reshape(nhead, 1, head_dim)

        per_layer['wq'].append(per_head_w(wq_t)); per_layer['bq'].append(per_head_b(bq_t))
        per_layer['wk'].append(per_head_w(wk_t)); per_layer['bk'].append(per_head_b(bk_t))
        per_layer['wv'].append(per_head_w(wv_t)); per_layer['bv'].append(per_head_b(bv_t))
        # out = concat_h(head_h) @ Wo.T + bo  ==  sum_h head_h @ (Wo.T)[h*Dh:(h+1)*Dh, :] + bo
        per_layer['wo'].append(w_out.T.reshape(nhead, head_dim, d_model))   # (H, Dh, D)
        per_layer['bo'].append(b_out.reshape(1, d_model))
        per_layer['ln1w'].append(jnp.ones((1, d_model), jnp.float32))
        per_layer['ln1b'].append(jnp.zeros((1, d_model), jnp.float32))
        # FFN weights: bf16, lane-dense (FF axis on lanes) for both matmuls.
        per_layer['w1'].append(w1.T.astype(jnp.bfloat16))                   # (D, FF)
        per_layer['b1'].append(b1.reshape(1, dim_ff))
        per_layer['w2'].append(w2.astype(jnp.bfloat16))                     # (D, FF)
        per_layer['b2'].append(b2.reshape(1, d_model))
        per_layer['ln2w'].append(jnp.ones((1, d_model), jnp.float32))
        per_layer['ln2b'].append(jnp.zeros((1, d_model), jnp.float32))

    stacked = {k: jnp.stack(v, axis=0) for k, v in per_layer.items()}       # leading L axis
    dk = jax.random.split(ks[1], 2)
    dec_w = 0.05 * jax.random.normal(dk[0], (1, d_model), jnp.float32)
    dec_b = 0.01 * jax.random.normal(dk[1], (1, 1), jnp.float32)
    return dict(embedding=emb, dec_w=dec_w, dec_b=dec_b, **stacked)


if __name__ == "__main__":
    # args: seq_len=8, feature_dim=8, d_transformer=32, nhead=4,
    #       num_transformer_layers=2, dropout irrelevant (eval),
    #       dim_feedforward = PyTorch default 2048.
    B, S, F, D, H, L, FF = 2, 8, 8, 32, 4, 2, 2048

    key = jax.random.PRNGKey(0)
    pk, fk = jax.random.split(key)
    params = init_choppy_params(pk, seq_len=S, feature_dim=F, d_model=D,
                                nhead=H, num_layers=L, dim_ff=FF)

    feature = jax.random.normal(fk, (B, S, F), jnp.float32)          # data['feature']
    pos = jnp.tile(jnp.arange(S, dtype=jnp.int32)[None, :], (B, 1))  # data['pos']

    fwd = jax.jit(choppy_forward)
    out = jax.block_until_ready(fwd(feature, pos, params))

    assert out.shape == (B, S, 1), out.shape
    # softmax over dim=1 must sum to 1 per batch row
    assert bool(jnp.allclose(jnp.sum(out, axis=1), 1.0, atol=1e-5))
    assert bool(jnp.all(jnp.isfinite(out)))
    print("KERNEL_OK")
</pallas_src>

<mosaic_0001>
module attributes {stable_mosaic.version = 11 : i64} {
  func.func @choppy_kernel(%arg0: i32, %arg1: memref<1x8x32xf32, #tpu.memory_space<vmem>>, %arg2: memref<2x4x32x8xf32, #tpu.memory_space<vmem>>, %arg3: memref<2x4x32x8xf32, #tpu.memory_space<vmem>>, %arg4: memref<2x4x32x8xf32, #tpu.memory_space<vmem>>, %arg5: memref<2x4x1x8xf32, #tpu.memory_space<vmem>>, %arg6: memref<2x4x1x8xf32, #tpu.memory_space<vmem>>, %arg7: memref<2x4x1x8xf32, #tpu.memory_space<vmem>>, %arg8: memref<2x4x8x32xf32, #tpu.memory_space<vmem>>, %arg9: memref<2x1x32xf32, #tpu.memory_space<vmem>>, %arg10: memref<2x1x32xf32, #tpu.memory_space<vmem>>, %arg11: memref<2x1x32xf32, #tpu.memory_space<vmem>>, %arg12: memref<2x32x2048xbf16, #tpu.memory_space<vmem>>, %arg13: memref<2x1x2048xf32, #tpu.memory_space<vmem>>, %arg14: memref<2x32x2048xbf16, #tpu.memory_space<vmem>>, %arg15: memref<2x1x32xf32, #tpu.memory_space<vmem>>, %arg16: memref<2x1x32xf32, #tpu.memory_space<vmem>>, %arg17: memref<2x1x32xf32, #tpu.memory_space<vmem>>, %arg18: memref<1x32xf32, #tpu.memory_space<vmem>>, %arg19: memref<1x1xf32, #tpu.memory_space<vmem>>, %arg20: memref<1x8x1xf32, #tpu.memory_space<vmem>>) attributes {dimension_semantics = [#tpu.dimension_semantics<parallel>], iteration_bounds = array<i64: 2>, scalar_prefetch = 0 : i64, scratch_operands = 0 : i64, tpu.core_type = #tpu.core_type<tc>, window_params = [{transform_indices = @transform_0, window_bounds = array<i64: 1, 8, 32>}, {pipeline_mode = #tpu.pipeline_mode<synchronous>, transform_indices = @transform_1, window_bounds = array<i64: 2, 4, 32, 8>}, {pipeline_mode = #tpu.pipeline_mode<synchronous>, transform_indices = @transform_2, window_bounds = array<i64: 2, 4, 32, 8>}, {pipeline_mode = #tpu.pipeline_mode<synchronous>, transform_indices = @transform_3, window_bounds = array<i64: 2, 4, 32, 8>}, {pipeline_mode = #tpu.pipeline_mode<synchronous>, transform_indices = @transform_4, window_bounds = array<i64: 2, 4, 1, 8>}, {pipeline_mode = #tpu.pipeline_mode<synchronous>, transform_indices = @transform_5, window_bounds = array<i64: 2, 4, 1, 8>}, {pipeline_mode = #tpu.pipeline_mode<synchronous>, transform_indices = @transform_6, window_bounds = array<i64: 2, 4, 1, 8>}, {pipeline_mode = #tpu.pipeline_mode<synchronous>, transform_indices = @transform_7, window_bounds = array<i64: 2, 4, 8, 32>}, {pipeline_mode = #tpu.pipeline_mode<synchronous>, transform_indices = @transform_8, window_bounds = array<i64: 2, 1, 32>}, {pipeline_mode = #tpu.pipeline_mode<synchronous>, transform_indices = @transform_9, window_bounds = array<i64: 2, 1, 32>}, {pipeline_mode = #tpu.pipeline_mode<synchronous>, transform_indices = @transform_10, window_bounds = array<i64: 2, 1, 32>}, {pipeline_mode = #tpu.pipeline_mode<synchronous>, transform_indices = @transform_11, window_bounds = array<i64: 2, 32, 2048>}, {pipeline_mode = #tpu.pipeline_mode<synchronous>, transform_indices = @transform_12, window_bounds = array<i64: 2, 1, 2048>}, {pipeline_mode = #tpu.pipeline_mode<synchronous>, transform_indices = @transform_13, window_bounds = array<i64: 2, 32, 2048>}, {pipeline_mode = #tpu.pipeline_mode<synchronous>, transform_indices = @transform_14, window_bounds = array<i64: 2, 1, 32>}, {pipeline_mode = #tpu.pipeline_mode<synchronous>, transform_indices = @transform_15, window_bounds = array<i64: 2, 1, 32>}, {pipeline_mode = #tpu.pipeline_mode<synchronous>, transform_indices = @transform_16, window_bounds = array<i64: 2, 1, 32>}, {pipeline_mode = #tpu.pipeline_mode<synchronous>, transform_indices = @transform_17, window_bounds = array<i64: 1, 32>}, {pipeline_mode = #tpu.pipeline_mode<synchronous>, transform_indices = @transform_18, window_bounds = array<i64: 1, 1>}, {transform_indices = @transform_19, window_bounds = array<i64: 1, 8, 1>}]} {
    %c0 = arith.constant 0 : index
    %c0_0 = arith.constant 0 : index
    %c0_1 = arith.constant 0 : index
    %0 = vector.load %arg1[%c0, %c0_0, %c0_1] : memref<1x8x32xf32, #tpu.memory_space<vmem>>, vector<1x8x32xf32>
    %1 = vector.shape_cast %0 : vector<1x8x32xf32> to vector<8x32xf32>
    %cst = arith.constant 0.000000e+00 : f32
    %2 = vector.broadcast %cst : f32 to vector<8x32xf32>
    %c0_2 = arith.constant 0 : index
    %c0_3 = arith.constant 0 : index
    %c0_4 = arith.constant 0 : index
    %c0_5 = arith.constant 0 : index
    %3 = vector.load %arg2[%c0_2, %c0_3, %c0_4, %c0_5] : memref<2x4x32x8xf32, #tpu.memory_space<vmem>>, vector<1x1x32x8xf32>
    %4 = vector.shape_cast %3 : vector<1x1x32x8xf32> to vector<32x8xf32>
    %cst_6 = arith.constant dense<0.000000e+00> : vector<8x8xf32>
    %5 = tpu.matmul %1, %4, %cst_6 {dimension_numbers = #tpu.dot_dimension_numbers<[1], [0], [0], [1], [0, 0, 1, 1], [], []>} : vector<8x32xf32>, vector<32x8xf32>, vector<8x8xf32> -> vector<8x8xf32>
    %c0_7 = arith.constant 0 : index
    %c0_8 = arith.constant 0 : index
    %c0_9 = arith.constant 0 : index
    %c0_10 = arith.constant 0 : index
    %6 = vector.load %arg5[%c0_7, %c0_8, %c0_9, %c0_10] : memref<2x4x1x8xf32, #tpu.memory_space<vmem>>, vector<1x1x1x8xf32>
    %7 = vector.shape_cast %6 : vector<1x1x1x8xf32> to vector<1x8xf32>
    %8 = vector.broadcast %7 : vector<1x8xf32> to vector<8x8xf32>
    %9 = arith.addf %5, %8 : vector<8x8xf32>
    %c0_11 = arith.constant 0 : index
    %c0_12 = arith.constant 0 : index
    %c0_13 = arith.constant 0 : index
    %c0_14 = arith.constant 0 : index
    %10 = vector.load %arg3[%c0_11, %c0_12, %c0_13, %c0_14] : memref<2x4x32x8xf32, #tpu.memory_space<vmem>>, vector<1x1x32x8xf32>
    %11 = vector.shape_cast %10 : vector<1x1x32x8xf32> to vector<32x8xf32>
    %cst_15 = arith.constant dense<0.000000e+00> : vector<8x8xf32>
    %12 = tpu.matmul %1, %11, %cst_15 {dimension_numbers = #tpu.dot_dimension_numbers<[1], [0], [0], [1], [0, 0, 1, 1], [], []>} : vector<8x32xf32>, vector<32x8xf32>, vector<8x8xf32> -> vector<8x8xf32>
    %c0_16 = arith.constant 0 : index
    %c0_17 = arith.constant 0 : index
    %c0_18 = arith.constant 0 : index
    %c0_19 = arith.constant 0 : index
    %13 = vector.load %arg6[%c0_16, %c0_17, %c0_18, %c0_19] : memref<2x4x1x8xf32, #tpu.memory_space<vmem>>, vector<1x1x1x8xf32>
    %14 = vector.shape_cast %13 : vector<1x1x1x8xf32> to vector<1x8xf32>
    %15 = vector.broadcast %14 : vector<1x8xf32> to vector<8x8xf32>
    %16 = arith.addf %12, %15 : vector<8x8xf32>
    %c0_20 = arith.constant 0 : index
    %c0_21 = arith.constant 0 : index
    %c0_22 = arith.constant 0 : index
    %c0_23 = arith.constant 0 : index
    %17 = vector.load %arg4[%c0_20, %c0_21, %c0_22, %c0_23] : memref<2x4x32x8xf32, #tpu.memory_space<vmem>>, vector<1x1x32x8xf32>
    %18 = vector.shape_cast %17 : vector<1x1x32x8xf32> to vector<32x8xf32>
    %cst_24 = arith.constant dense<0.000000e+00> : vector<8x8xf32>
    %19 = tpu.matmul %1, %18, %cst_24 {dimension_numbers = #tpu.dot_dimension_numbers<[1], [0], [0], [1], [0, 0, 1, 1], [], []>} : vector<8x32xf32>, vector<32x8xf32>, vector<8x8xf32> -> vector<8x8xf32>
    %c0_25 = arith.constant 0 : index
    %c0_26 = arith.constant 0 : index
    %c0_27 = arith.constant 0 : index
    %c0_28 = arith.constant 0 : index
    %20 = vector.load %arg7[%c0_25, %c0_26, %c0_27, %c0_28] : memref<2x4x1x8xf32, #tpu.memory_space<vmem>>, vector<1x1x1x8xf32>
    %21 = vector.shape_cast %20 : vector<1x1x1x8xf32> to vector<1x8xf32>
    %22 = vector.broadcast %21 : vector<1x8xf32> to vector<8x8xf32>
    %23 = arith.addf %19, %22 : vector<8x8xf32>
    %cst_29 = arith.constant dense<0.000000e+00> : vector<8x8xf32>
    %24 = tpu.matmul %9, %16, %cst_29 {dimension_numbers = #tpu.dot_dimension_numbers<[1], [1], [0], [0], [0, 0, 1, 0], [], []>} : vector<8x8xf32>, vector<8x8xf32>, vector<8x8xf32> -> vector<8x8xf32>
    %cst_30 = arith.constant 0.353553385 : f32
    %25 = vector.broadcast %cst_30 : f32 to vector<8x8xf32>
    %26 = arith.mulf %24, %25 : vector<8x8xf32>
    %cst_31 = arith.constant dense<0xFF800000> : vector<8xf32>
    %27 = vector.multi_reduction <maximumf>, %26, %cst_31 [1] : vector<8x8xf32> to vector<8xf32>
    %28 = vector.shape_cast %27 : vector<8xf32> to vector<8x1xf32>
    %29 = vector.broadcast %28 : vector<8x1xf32> to vector<8x8xf32>
    %30 = arith.subf %26, %29 : vector<8x8xf32>
    %31 = math.exp %30 : vector<8x8xf32>
    %cst_32 = arith.constant dense<0.000000e+00> : vector<8xf32>
    %32 = vector.multi_reduction <add>, %31, %cst_32 [1] : vector<8x8xf32> to vector<8xf32>
    %33 = vector.shape_cast %32 : vector<8xf32> to vector<8x1xf32>
    %34 = tpu.reciprocal %33 {approx = true} : vector<8x1xf32> -> vector<8x1xf32>
    %35 = vector.broadcast %34 : vector<8x1xf32> to vector<8x8xf32>
    %36 = arith.mulf %31, %35 : vector<8x8xf32>
    %cst_33 = arith.constant dense<0.000000e+00> : vector<8x8xf32>
    %37 = tpu.matmul %36, %23, %cst_33 {dimension_numbers = #tpu.dot_dimension_numbers<[1], [0], [0], [1], [0, 0, 1, 1], [], []>} : vector<8x8xf32>, vector<8x8xf32>, vector<8x8xf32> -> vector<8x8xf32>
    %c0_34 = arith.constant 0 : index
    %c0_35 = arith.constant 0 : index
    %c0_36 = arith.constant 0 : index
    %c0_37 = arith.constant 0 : index
    %38 = vector.load %arg8[%c0_34, %c0_35, %c0_36, %c0_37] : memref<2x4x8x32xf32, #tpu.memory_space<vmem>>, vector<1x1x8x32xf32>
    %39 = vector.shape_cast %38 : vector<1x1x8x32xf32> to vector<8x32xf32>
    %cst_38 = arith.constant dense<0.000000e+00> : vector<8x32xf32>
    %40 = tpu.matmul %37, %39, %cst_38 {dimension_numbers = #tpu.dot_dimension_numbers<[1], [0], [0], [1], [0, 0, 1, 1], [], []>} : vector<8x8xf32>, vector<8x32xf32>, vector<8x32xf32> -> vector<8x32xf32>
    %41 = arith.addf %2, %40 : vector<8x32xf32>
    %c0_39 = arith.constant 0 : index
    %c1 = arith.constant 1 : index
    %c0_40 = arith.constant 0 : index
    %c0_41 = arith.constant 0 : index
    %42 = vector.load %arg2[%c0_39, %c1, %c0_40, %c0_41] : memref<2x4x32x8xf32, #tpu.memory_space<vmem>>, vector<1x1x32x8xf32>
    %43 = vector.shape_cast %42 : vector<1x1x32x8xf32> to vector<32x8xf32>
    %cst_42 = arith.constant dense<0.000000e+00> : vector<8x8xf32>
    %44 = tpu.matmul %1, %43, %cst_42 {dimension_numbers = #tpu.dot_dimension_numbers<[1], [0], [0], [1], [0, 0, 1, 1], [], []>} : vector<8x32xf32>, vector<32x8xf32>, vector<8x8xf32> -> vector<8x8xf32>
    %c0_43 = arith.constant 0 : index
    %c1_44 = arith.constant 1 : index
    %c0_45 = arith.constant 0 : index
    %c0_46 = arith.constant 0 : index
    %45 = vector.load %arg5[%c0_43, %c1_44, %c0_45, %c0_46] : memref<2x4x1x8xf32, #tpu.memory_space<vmem>>, vector<1x1x1x8xf32>
    %46 = vector.shape_cast %45 : vector<1x1x1x8xf32> to vector<1x8xf32>
    %47 = vector.broadcast %46 : vector<1x8xf32> to vector<8x8xf32>
    %48 = arith.addf %44, %47 : vector<8x8xf32>
    %c0_47 = arith.constant 0 : index
    %c1_48 = arith.constant 1 : index
    %c0_49 = arith.constant 0 : index
    %c0_50 = arith.constant 0 : index
    %49 = vector.load %arg3[%c0_47, %c1_48, %c0_49, %c0_50] : memref<2x4x32x8xf32, #tpu.memory_space<vmem>>, vector<1x1x32x8xf32>
    %50 = vector.shape_cast %49 : vector<1x1x32x8xf32> to vector<32x8xf32>
    %cst_51 = arith.constant dense<0.000000e+00> : vector<8x8xf32>
    %51 = tpu.matmul %1, %50, %cst_51 {dimension_numbers = #tpu.dot_dimension_numbers<[1], [0], [0], [1], [0, 0, 1, 1], [], []>} : vector<8x32xf32>, vector<32x8xf32>, vector<8x8xf32> -> vector<8x8xf32>
    %c0_52 = arith.constant 0 : index
    %c1_53 = arith.constant 1 : index
    %c0_54 = arith.constant 0 : index
    %c0_55 = arith.constant 0 : index
    %52 = vector.load %arg6[%c0_52, %c1_53, %c0_54, %c0_55] : memref<2x4x1x8xf32, #tpu.memory_space<vmem>>, vector<1x1x1x8xf32>
    %53 = vector.shape_cast %52 : vector<1x1x1x8xf32> to vector<1x8xf32>
    %54 = vector.broadcast %53 : vector<1x8xf32> to vector<8x8xf32>
    %55 = arith.addf %51, %54 : vector<8x8xf32>
    %c0_56 = arith.constant 0 : index
    %c1_57 = arith.constant 1 : index
    %c0_58 = arith.constant 0 : index
    %c0_59 = arith.constant 0 : index
    %56 = vector.load %arg4[%c0_56, %c1_57, %c0_58, %c0_59] : memref<2x4x32x8xf32, #tpu.memory_space<vmem>>, vector<1x1x32x8xf32>
    %57 = vector.shape_cast %56 : vector<1x1x32x8xf32> to vector<32x8xf32>
    %cst_60 = arith.constant dense<0.000000e+00> : vector<8x8xf32>
    %58 = tpu.matmul %1, %57, %cst_60 {dimension_numbers = #tpu.dot_dimension_numbers<[1], [0], [0], [1], [0, 0, 1, 1], [], []>} : vector<8x32xf32>, vector<32x8xf32>, vector<8x8xf32> -> vector<8x8xf32>
    %c0_61 = arith.constant 0 : index
    %c1_62 = arith.constant 1 : index
    %c0_63 = arith.constant 0 : index
    %c0_64 = arith.constant 0 : index
    %59 = vector.load %arg7[%c0_61, %c1_62, %c0_63, %c0_64] : memref<2x4x1x8xf32, #tpu.memory_space<vmem>>, vector<1x1x1x8xf32>
    %60 = vector.shape_cast %59 : vector<1x1x1x8xf32> to vector<1x8xf32>
    %61 = vector.broadcast %60 : vector<1x8xf32> to vector<8x8xf32>
    %62 = arith.addf %58, %61 : vector<8x8xf32>
    %cst_65 = arith.constant dense<0.000000e+00> : vector<8x8xf32>
    %63 = tpu.matmul %48, %55, %cst_65 {dimension_numbers = #tpu.dot_dimension_numbers<[1], [1], [0], [0], [0, 0, 1, 0], [], []>} : vector<8x8xf32>, vector<8x8xf32>, vector<8x8xf32> -> vector<8x8xf32>
    %cst_66 = arith.constant 0.353553385 : f32
    %64 = vector.broadcast %cst_66 : f32 to vector<8x8xf32>
    %65 = arith.mulf %63, %64 : vector<8x8xf32>
    %cst_67 = arith.constant dense<0xFF800000> : vector<8xf32>
    %66 = vector.multi_reduction <maximumf>, %65, %cst_67 [1] : vector<8x8xf32> to vector<8xf32>
    %67 = vector.shape_cast %66 : vector<8xf32> to vector<8x1xf32>
    %68 = vector.broadcast %67 : vector<8x1xf32> to vector<8x8xf32>
    %69 = arith.subf %65, %68 : vector<8x8xf32>
    %70 = math.exp %69 : vector<8x8xf32>
    %cst_68 = arith.constant dense<0.000000e+00> : vector<8xf32>
    %71 = vector.multi_reduction <add>, %70, %cst_68 [1] : vector<8x8xf32> to vector<8xf32>
    %72 = vector.shape_cast %71 : vector<8xf32> to vector<8x1xf32>
    %73 = tpu.reciprocal %72 {approx = true} : vector<8x1xf32> -> vector<8x1xf32>
    %74 = vector.broadcast %73 : vector<8x1xf32> to vector<8x8xf32>
    %75 = arith.mulf %70, %74 : vector<8x8xf32>
    %cst_69 = arith.constant dense<0.000000e+00> : vector<8x8xf32>
    %76 = tpu.matmul %75, %62, %cst_69 {dimension_numbers = #tpu.dot_dimension_numbers<[1], [0], [0], [1], [0, 0, 1, 1], [], []>} : vector<8x8xf32>, vector<8x8xf32>, vector<8x8xf32> -> vector<8x8xf32>
    %c0_70 = arith.constant 0 : index
    %c1_71 = arith.constant 1 : index
    %c0_72 = arith.constant 0 : index
    %c0_73 = arith.constant 0 : index
    %77 = vector.load %arg8[%c0_70, %c1_71, %c0_72, %c0_73] : memref<2x4x8x32xf32, #tpu.memory_space<vmem>>, vector<1x1x8x32xf32>
    %78 = vector.shape_cast %77 : vector<1x1x8x32xf32> to vector<8x32xf32>
    %cst_74 = arith.constant dense<0.000000e+00> : vector<8x32xf32>
    %79 = tpu.matmul %76, %78, %cst_74 {dimension_numbers = #tpu.dot_dimension_numbers<[1], [0], [0], [1], [0, 0, 1, 1], [], []>} : vector<8x8xf32>, vector<8x32xf32>, vector<8x32xf32> -> vector<8x32xf32>
    %80 = arith.addf %41, %79 : vector<8x32xf32>
    %c0_75 = arith.constant 0 : index
    %c2 = arith.constant 2 : index
    %c0_76 = arith.constant 0 : index
    %c0_77 = arith.constant 0 : index
    %81 = vector.load %arg2[%c0_75, %c2, %c0_76, %c0_77] : memref<2x4x32x8xf32, #tpu.memory_space<vmem>>, vector<1x1x32x8xf32>
    %82 = vector.shape_cast %81 : vector<1x1x32x8xf32> to vector<32x8xf32>
    %cst_78 = arith.constant dense<0.000000e+00> : vector<8x8xf32>
    %83 = tpu.matmul %1, %82, %cst_78 {dimension_numbers = #tpu.dot_dimension_numbers<[1], [0], [0], [1], [0, 0, 1, 1], [], []>} : vector<8x32xf32>, vector<32x8xf32>, vector<8x8xf32> -> vector<8x8xf32>
    %c0_79 = arith.constant 0 : index
    %c2_80 = arith.constant 2 : index
    %c0_81 = arith.constant 0 : index
    %c0_82 = arith.constant 0 : index
    %84 = vector.load %arg5[%c0_79, %c2_80, %c0_81, %c0_82] : memref<2x4x1x8xf32, #tpu.memory_space<vmem>>, vector<1x1x1x8xf32>
    %85 = vector.shape_cast %84 : vector<1x1x1x8xf32> to vector<1x8xf32>
    %86 = vector.broadcast %85 : vector<1x8xf32> to vector<8x8xf32>
    %87 = arith.addf %83, %86 : vector<8x8xf32>
    %c0_83 = arith.constant 0 : index
    %c2_84 = arith.constant 2 : index
    %c0_85 = arith.constant 0 : index
    %c0_86 = arith.constant 0 : index
    %88 = vector.load %arg3[%c0_83, %c2_84, %c0_85, %c0_86] : memref<2x4x32x8xf32, #tpu.memory_space<vmem>>, vector<1x1x32x8xf32>
    %89 = vector.shape_cast %88 : vector<1x1x32x8xf32> to vector<32x8xf32>
    %cst_87 = arith.constant dense<0.000000e+00> : vector<8x8xf32>
    %90 = tpu.matmul %1, %89, %cst_87 {dimension_numbers = #tpu.dot_dimension_numbers<[1], [0], [0], [1], [0, 0, 1, 1], [], []>} : vector<8x32xf32>, vector<32x8xf32>, vector<8x8xf32> -> vector<8x8xf32>
    %c0_88 = arith.constant 0 : index
    %c2_89 = arith.constant 2 : index
    %c0_90 = arith.constant 0 : index
    %c0_91 = arith.constant 0 : index
    %91 = vector.load %arg6[%c0_88, %c2_89, %c0_90, %c0_91] : memref<2x4x1x8xf32, #tpu.memory_space<vmem>>, vector<1x1x1x8xf32>
    %92 = vector.shape_cast %91 : vector<1x1x1x8xf32> to vector<1x8xf32>
    %93 = vector.broadcast %92 : vector<1x8xf32> to vector<8x8xf32>
    %94 = arith.addf %90, %93 : vector<8x8xf32>
    %c0_92 = arith.constant 0 : index
    %c2_93 = arith.constant 2 : index
    %c0_94 = arith.constant 0 : index
    %c0_95 = arith.constant 0 : index
    %95 = vector.load %arg4[%c0_92, %c2_93, %c0_94, %c0_95] : memref<2x4x32x8xf32, #tpu.memory_space<vmem>>, vector<1x1x32x8xf32>
    %96 = vector.shape_cast %95 : vector<1x1x32x8xf32> to vector<32x8xf32>
    %cst_96 = arith.constant dense<0.000000e+00> : vector<8x8xf32>
    %97 = tpu.matmul %1, %96, %cst_96 {dimension_numbers = #tpu.dot_dimension_numbers<[1], [0], [0], [1], [0, 0, 1, 1], [], []>} : vector<8x32xf32>, vector<32x8xf32>, vector<8x8xf32> -> vector<8x8xf32>
    %c0_97 = arith.constant 0 : index
    %c2_98 = arith.constant 2 : index
    %c0_99 = arith.constant 0 : index
    %c0_100 = arith.constant 0 : index
    %98 = vector.load %arg7[%c0_97, %c2_98, %c0_99, %c0_100] : memref<2x4x1x8xf32, #tpu.memory_space<vmem>>, vector<1x1x1x8xf32>
    %99 = vector.shape_cast %98 : vector<1x1x1x8xf32> to vector<1x8xf32>
    %100 = vector.broadcast %99 : vector<1x8xf32> to vector<8x8xf32>
    %101 = arith.addf %97, %100 : vector<8x8xf32>
    %cst_101 = arith.constant dense<0.000000e+00> : vector<8x8xf32>
    %102 = tpu.matmul %87, %94, %cst_101 {dimension_numbers = #tpu.dot_dimension_numbers<[1], [1], [0], [0], [0, 0, 1, 0], [], []>} : vector<8x8xf32>, vector<8x8xf32>, vector<8x8xf32> -> vector<8x8xf32>
    %cst_102 = arith.constant 0.353553385 : f32
    %103 = vector.broadcast %cst_102 : f32 to vector<8x8xf32>
    %104 = arith.mulf %102, %103 : vector<8x8xf32>
    %cst_103 = arith.constant dense<0xFF800000> : vector<8xf32>
    %105 = vector.multi_reduction <maximumf>, %104, %cst_103 [1] : vector<8x8xf32> to vector<8xf32>
    %106 = vector.shape_cast %105 : vector<8xf32> to vector<8x1xf32>
    %107 = vector.broadcast %106 : vector<8x1xf32> to vector<8x8xf32>
    %108 = arith.subf %104, %107 : vector<8x8xf32>
    %109 = math.exp %108 : vector<8x8xf32>
    %cst_104 = arith.constant dense<0.000000e+00> : vector<8xf32>
    %110 = vector.multi_reduction <add>, %109, %cst_104 [1] : vector<8x8xf32> to vector<8xf32>
    %111 = vector.shape_cast %110 : vector<8xf32> to vector<8x1xf32>
    %112 = tpu.reciprocal %111 {approx = true} : vector<8x1xf32> -> vector<8x1xf32>
    %113 = vector.broadcast %112 : vector<8x1xf32> to vector<8x8xf32>
    %114 = arith.mulf %109, %113 : vector<8x8xf32>
    %cst_105 = arith.constant dense<0.000000e+00> : vector<8x8xf32>
    %115 = tpu.matmul %114, %101, %cst_105 {dimension_numbers = #tpu.dot_dimension_numbers<[1], [0], [0], [1], [0, 0, 1, 1], [], []>} : vector<8x8xf32>, vector<8x8xf32>, vector<8x8xf32> -> vector<8x8xf32>
    %c0_106 = arith.constant 0 : index
    %c2_107 = arith.constant 2 : index
    %c0_108 = arith.constant 0 : index
    %c0_109 = arith.constant 0 : index
    %116 = vector.load %arg8[%c0_106, %c2_107, %c0_108, %c0_109] : memref<2x4x8x32xf32, #tpu.memory_space<vmem>>, vector<1x1x8x32xf32>
    %117 = vector.shape_cast %116 : vector<1x1x8x32xf32> to vector<8x32xf32>
    %cst_110 = arith.constant dense<0.000000e+00> : vector<8x32xf32>
    %118 = tpu.matmul %115, %117, %cst_110 {dimension_numbers = #tpu.dot_dimension_numbers<[1], [0], [0], [1], [0, 0, 1, 1], [], []>} : vector<8x8xf32>, vector<8x32xf32>, vector<8x32xf32> -> vector<8x32xf32>
    %119 = arith.addf %80, %118 : vector<8x32xf32>
    %c0_111 = arith.constant 0 : index
    %c3 = arith.constant 3 : index
    %c0_112 = arith.constant 0 : index
    %c0_113 = arith.constant 0 : index
    %120 = vector.load %arg2[%c0_111, %c3, %c0_112, %c0_113] : memref<2x4x32x8xf32, #tpu.memory_space<vmem>>, vector<1x1x32x8xf32>
    %121 = vector.shape_cast %120 : vector<1x1x32x8xf32> to vector<32x8xf32>
    %cst_114 = arith.constant dense<0.000000e+00> : vector<8x8xf32>
    %122 = tpu.matmul %1, %121, %cst_114 {dimension_numbers = #tpu.dot_dimension_numbers<[1], [0], [0], [1], [0, 0, 1, 1], [], []>} : vector<8x32xf32>, vector<32x8xf32>, vector<8x8xf32> -> vector<8x8xf32>
    %c0_115 = arith.constant 0 : index
    %c3_116 = arith.constant 3 : index
    %c0_117 = arith.constant 0 : index
    %c0_118 = arith.constant 0 : index
    %123 = vector.load %arg5[%c0_115, %c3_116, %c0_117, %c0_118] : memref<2x4x1x8xf32, #tpu.memory_space<vmem>>, vector<1x1x1x8xf32>
    %124 = vector.shape_cast %123 : vector<1x1x1x8xf32> to vector<1x8xf32>
    %125 = vector.broadcast %124 : vector<1x8xf32> to vector<8x8xf32>
    %126 = arith.addf %122, %125 : vector<8x8xf32>
    %c0_119 = arith.constant 0 : index
    %c3_120 = arith.constant 3 : index
    %c0_121 = arith.constant 0 : index
    %c0_122 = arith.constant 0 : index
    %127 = vector.load %arg3[%c0_119, %c3_120, %c0_121, %c0_122] : memref<2x4x32x8xf32, #tpu.memory_space<vmem>>, vector<1x1x32x8xf32>
    %128 = vector.shape_cast %127 : vector<1x1x32x8xf32> to vector<32x8xf32>
    %cst_123 = arith.constant dense<0.000000e+00> : vector<8x8xf32>
    %129 = tpu.matmul %1, %128, %cst_123 {dimension_numbers = #tpu.dot_dimension_numbers<[1], [0], [0], [1], [0, 0, 1, 1], [], []>} : vector<8x32xf32>, vector<32x8xf32>, vector<8x8xf32> -> vector<8x8xf32>
    %c0_124 = arith.constant 0 : index
    %c3_125 = arith.constant 3 : index
    %c0_126 = arith.constant 0 : index
    %c0_127 = arith.constant 0 : index
    %130 = vector.load %arg6[%c0_124, %c3_125, %c0_126, %c0_127] : memref<2x4x1x8xf32, #tpu.memory_space<vmem>>, vector<1x1x1x8xf32>
    %131 = vector.shape_cast %130 : vector<1x1x1x8xf32> to vector<1x8xf32>
    %132 = vector.broadcast %131 : vector<1x8xf32> to vector<8x8xf32>
    %133 = arith.addf %129, %132 : vector<8x8xf32>
    %c0_128 = arith.constant 0 : index
    %c3_129 = arith.constant 3 : index
    %c0_130 = arith.constant 0 : index
    %c0_131 = arith.constant 0 : index
    %134 = vector.load %arg4[%c0_128, %c3_129, %c0_130, %c0_131] : memref<2x4x32x8xf32, #tpu.memory_space<vmem>>, vector<1x1x32x8xf32>
    %135 = vector.shape_cast %134 : vector<1x1x32x8xf32> to vector<32x8xf32>
    %cst_132 = arith.constant dense<0.000000e+00> : vector<8x8xf32>
    %136 = tpu.matmul %1, %135, %cst_132 {dimension_numbers = #tpu.dot_dimension_numbers<[1], [0], [0], [1], [0, 0, 1, 1], [], []>} : vector<8x32xf32>, vector<32x8xf32>, vector<8x8xf32> -> vector<8x8xf32>
    %c0_133 = arith.constant 0 : index
    %c3_134 = arith.constant 3 : index
    %c0_135 = arith.constant 0 : index
    %c0_136 = arith.constant 0 : index
    %137 = vector.load %arg7[%c0_133, %c3_134, %c0_135, %c0_136] : memref<2x4x1x8xf32, #tpu.memory_space<vmem>>, vector<1x1x1x8xf32>
    %138 = vector.shape_cast %137 : vector<1x1x1x8xf32> to vector<1x8xf32>
    %139 = vector.broadcast %138 : vector<1x8xf32> to vector<8x8xf32>
    %140 = arith.addf %136, %139 : vector<8x8xf32>
    %cst_137 = arith.constant dense<0.000000e+00> : vector<8x8xf32>
    %141 = tpu.matmul %126, %133, %cst_137 {dimension_numbers = #tpu.dot_dimension_numbers<[1], [1], [0], [0], [0, 0, 1, 0], [], []>} : vector<8x8xf32>, vector<8x8xf32>, vector<8x8xf32> -> vector<8x8xf32>
    %cst_138 = arith.constant 0.353553385 : f32
    %142 = vector.broadcast %cst_138 : f32 to vector<8x8xf32>
    %143 = arith.mulf %141, %142 : vector<8x8xf32>
    %cst_139 = arith.constant dense<0xFF800000> : vector<8xf32>
    %144 = vector.multi_reduction <maximumf>, %143, %cst_139 [1] : vector<8x8xf32> to vector<8xf32>
    %145 = vector.shape_cast %144 : vector<8xf32> to vector<8x1xf32>
    %146 = vector.broadcast %145 : vector<8x1xf32> to vector<8x8xf32>
    %147 = arith.subf %143, %146 : vector<8x8xf32>
    %148 = math.exp %147 : vector<8x8xf32>
    %cst_140 = arith.constant dense<0.000000e+00> : vector<8xf32>
    %149 = vector.multi_reduction <add>, %148, %cst_140 [1] : vector<8x8xf32> to vector<8xf32>
    %150 = vector.shape_cast %149 : vector<8xf32> to vector<8x1xf32>
    %151 = tpu.reciprocal %150 {approx = true} : vector<8x1xf32> -> vector<8x1xf32>
    %152 = vector.broadcast %151 : vector<8x1xf32> to vector<8x8xf32>
    %153 = arith.mulf %148, %152 : vector<8x8xf32>
    %cst_141 = arith.constant dense<0.000000e+00> : vector<8x8xf32>
    %154 = tpu.matmul %153, %140, %cst_141 {dimension_numbers = #tpu.dot_dimension_numbers<[1], [0], [0], [1], [0, 0, 1, 1], [], []>} : vector<8x8xf32>, vector<8x8xf32>, vector<8x8xf32> -> vector<8x8xf32>
    %c0_142 = arith.constant 0 : index
    %c3_143 = arith.constant 3 : index
    %c0_144 = arith.constant 0 : index
    %c0_145 = arith.constant 0 : index
    %155 = vector.load %arg8[%c0_142, %c3_143, %c0_144, %c0_145] : memref<2x4x8x32xf32, #tpu.memory_space<vmem>>, vector<1x1x8x32xf32>
    %156 = vector.shape_cast %155 : vector<1x1x8x32xf32> to vector<8x32xf32>
    %cst_146 = arith.constant dense<0.000000e+00> : vector<8x32xf32>
    %157 = tpu.matmul %154, %156, %cst_146 {dimension_numbers = #tpu.dot_dimension_numbers<[1], [0], [0], [1], [0, 0, 1, 1], [], []>} : vector<8x8xf32>, vector<8x32xf32>, vector<8x32xf32> -> vector<8x32xf32>
    %158 = arith.addf %119, %157 : vector<8x32xf32>
    %159 = arith.addf %1, %158 : vector<8x32xf32>
    %c0_147 = arith.constant 0 : index
    %c0_148 = arith.constant 0 : index
    %c0_149 = arith.constant 0 : index
    %160 = vector.load %arg9[%c0_147, %c0_148, %c0_149] : memref<2x1x32xf32, #tpu.memory_space<vmem>>, vector<1x1x32xf32>
    %161 = vector.shape_cast %160 : vector<1x1x32xf32> to vector<1x32xf32>
    %162 = vector.broadcast %161 : vector<1x32xf32> to vector<8x32xf32>
    %163 = arith.addf %159, %162 : vector<8x32xf32>
    %c0_150 = arith.constant 0 : index
    %c0_151 = arith.constant 0 : index
    %c0_152 = arith.constant 0 : index
    %164 = vector.load %arg10[%c0_150, %c0_151, %c0_152] : memref<2x1x32xf32, #tpu.memory_space<vmem>>, vector<1x1x32xf32>
    %165 = vector.shape_cast %164 : vector<1x1x32xf32> to vector<1x32xf32>
    %c0_153 = arith.constant 0 : index
    %c0_154 = arith.constant 0 : index
    %c0_155 = arith.constant 0 : index
    %166 = vector.load %arg11[%c0_153, %c0_154, %c0_155] : memref<2x1x32xf32, #tpu.memory_space<vmem>>, vector<1x1x32xf32>
    %167 = vector.shape_cast %166 : vector<1x1x32xf32> to vector<1x32xf32>
    %cst_156 = arith.constant dense<0.000000e+00> : vector<8xf32>
    %168 = vector.multi_reduction <add>, %163, %cst_156 [1] : vector<8x32xf32> to vector<8xf32>
    %169 = vector.shape_cast %168 : vector<8xf32> to vector<8x1xf32>
    %cst_157 = arith.constant 3.200000e+01 : f32
    %170 = vector.broadcast %cst_157 : f32 to vector<8x1xf32>
    %171 = arith.divf %169, %170 : vector<8x1xf32>
    %172 = vector.broadcast %171 : vector<8x1xf32> to vector<8x32xf32>
    %173 = arith.subf %163, %172 : vector<8x32xf32>
    %174 = arith.mulf %173, %173 : vector<8x32xf32>
    %cst_158 = arith.constant dense<0.000000e+00> : vector<8xf32>
    %175 = vector.multi_reduction <add>, %174, %cst_158 [1] : vector<8x32xf32> to vector<8xf32>
    %176 = vector.shape_cast %175 : vector<8xf32> to vector<8x1xf32>
    %cst_159 = arith.constant 3.200000e+01 : f32
    %177 = vector.broadcast %cst_159 : f32 to vector<8x1xf32>
    %178 = arith.divf %176, %177 : vector<8x1xf32>
    %cst_160 = arith.constant 9.99999974E-6 : f32
    %179 = vector.broadcast %cst_160 : f32 to vector<8x1xf32>
    %180 = arith.addf %178, %179 : vector<8x1xf32>
    %181 = math.rsqrt %180 : vector<8x1xf32>
    %182 = vector.broadcast %181 : vector<8x1xf32> to vector<8x32xf32>
    %183 = arith.mulf %173, %182 : vector<8x32xf32>
    %184 = vector.broadcast %165 : vector<1x32xf32> to vector<8x32xf32>
    %185 = arith.mulf %183, %184 : vector<8x32xf32>
    %186 = vector.broadcast %167 : vector<1x32xf32> to vector<8x32xf32>
    %187 = arith.addf %185, %186 : vector<8x32xf32>
    %188 = arith.truncf %187 : vector<8x32xf32> to vector<8x32xbf16>
    %c0_161 = arith.constant 0 : index
    %c0_162 = arith.constant 0 : index
    %c0_163 = arith.constant 0 : index
    %189 = vector.load %arg12[%c0_161, %c0_162, %c0_163] : memref<2x32x2048xbf16, #tpu.memory_space<vmem>>, vector<1x32x2048xbf16>
    %190 = vector.shape_cast %189 : vector<1x32x2048xbf16> to vector<32x2048xbf16>
    %cst_164 = arith.constant dense<0.000000e+00> : vector<8x2048xf32>
    %191 = tpu.matmul %188, %190, %cst_164 {dimension_numbers = #tpu.dot_dimension_numbers<[1], [0], [0], [1], [0, 0, 1, 1], [], []>} : vector<8x32xbf16>, vector<32x2048xbf16>, vector<8x2048xf32> -> vector<8x2048xf32>
    %c0_165 = arith.constant 0 : index
    %c0_166 = arith.constant 0 : index
    %c0_167 = arith.constant 0 : index
    %192 = vector.load %arg13[%c0_165, %c0_166, %c0_167] : memref<2x1x2048xf32, #tpu.memory_space<vmem>>, vector<1x1x2048xf32>
    %193 = vector.shape_cast %192 : vector<1x1x2048xf32> to vector<1x2048xf32>
    %194 = vector.broadcast %193 : vector<1x2048xf32> to vector<8x2048xf32>
    %195 = arith.addf %191, %194 : vector<8x2048xf32>
    %cst_168 = arith.constant 0.000000e+00 : f32
    %196 = vector.broadcast %cst_168 : f32 to vector<8x2048xf32>
    %197 = arith.maximumf %195, %196 : vector<8x2048xf32>
    %198 = arith.truncf %197 : vector<8x2048xf32> to vector<8x2048xbf16>
    %c0_169 = arith.constant 0 : index
    %c0_170 = arith.constant 0 : index
    %c0_171 = arith.constant 0 : index
    %199 = vector.load %arg14[%c0_169, %c0_170, %c0_171] : memref<2x32x2048xbf16, #tpu.memory_space<vmem>>, vector<1x32x2048xbf16>
    %200 = vector.shape_cast %199 : vector<1x32x2048xbf16> to vector<32x2048xbf16>
    %cst_172 = arith.constant dense<0.000000e+00> : vector<8x32xf32>
    %201 = tpu.matmul %198, %200, %cst_172 {dimension_numbers = #tpu.dot_dimension_numbers<[1], [1], [0], [0], [0, 0, 1, 0], [], []>} : vector<8x2048xbf16>, vector<32x2048xbf16>, vector<8x32xf32> -> vector<8x32xf32>
    %c0_173 = arith.constant 0 : index
    %c0_174 = arith.constant 0 : index
    %c0_175 = arith.constant 0 : index
    %202 = vector.load %arg15[%c0_173, %c0_174, %c0_175] : memref<2x1x32xf32, #tpu.memory_space<vmem>>, vector<1x1x32xf32>
    %203 = vector.shape_cast %202 : vector<1x1x32xf32> to vector<1x32xf32>
    %204 = vector.broadcast %203 : vector<1x32xf32> to vector<8x32xf32>
    %205 = arith.addf %201, %204 : vector<8x32xf32>
    %206 = arith.addf %187, %205 : vector<8x32xf32>
    %c0_176 = arith.constant 0 : index
    %c0_177 = arith.constant 0 : index
    %c0_178 = arith.constant 0 : index
    %207 = vector.load %arg16[%c0_176, %c0_177, %c0_178] : memref<2x1x32xf32, #tpu.memory_space<vmem>>, vector<1x1x32xf32>
    %208 = vector.shape_cast %207 : vector<1x1x32xf32> to vector<1x32xf32>
    %c0_179 = arith.constant 0 : index
    %c0_180 = arith.constant 0 : index
    %c0_181 = arith.constant 0 : index
    %209 = vector.load %arg17[%c0_179, %c0_180, %c0_181] : memref<2x1x32xf32, #tpu.memory_space<vmem>>, vector<1x1x32xf32>
    %210 = vector.shape_cast %209 : vector<1x1x32xf32> to vector<1x32xf32>
    %cst_182 = arith.constant dense<0.000000e+00> : vector<8xf32>
    %211 = vector.multi_reduction <add>, %206, %cst_182 [1] : vector<8x32xf32> to vector<8xf32>
    %212 = vector.shape_cast %211 : vector<8xf32> to vector<8x1xf32>
    %cst_183 = arith.constant 3.200000e+01 : f32
    %213 = vector.broadcast %cst_183 : f32 to vector<8x1xf32>
    %214 = arith.divf %212, %213 : vector<8x1xf32>
    %215 = vector.broadcast %214 : vector<8x1xf32> to vector<8x32xf32>
    %216 = arith.subf %206, %215 : vector<8x32xf32>
    %217 = arith.mulf %216, %216 : vector<8x32xf32>
    %cst_184 = arith.constant dense<0.000000e+00> : vector<8xf32>
    %218 = vector.multi_reduction <add>, %217, %cst_184 [1] : vector<8x32xf32> to vector<8xf32>
    %219 = vector.shape_cast %218 : vector<8xf32> to vector<8x1xf32>
    %cst_185 = arith.constant 3.200000e+01 : f32
    %220 = vector.broadcast %cst_185 : f32 to vector<8x1xf32>
    %221 = arith.divf %219, %220 : vector<8x1xf32>
    %cst_186 = arith.constant 9.99999974E-6 : f32
    %222 = vector.broadcast %cst_186 : f32 to vector<8x1xf32>
    %223 = arith.addf %221, %222 : vector<8x1xf32>
    %224 = math.rsqrt %223 : vector<8x1xf32>
    %225 = vector.broadcast %224 : vector<8x1xf32> to vector<8x32xf32>
    %226 = arith.mulf %216, %225 : vector<8x32xf32>
    %227 = vector.broadcast %208 : vector<1x32xf32> to vector<8x32xf32>
    %228 = arith.mulf %226, %227 : vector<8x32xf32>
    %229 = vector.broadcast %210 : vector<1x32xf32> to vector<8x32xf32>
    %230 = arith.addf %228, %229 : vector<8x32xf32>
    %cst_187 = arith.constant 0.000000e+00 : f32
    %231 = vector.broadcast %cst_187 : f32 to vector<8x32xf32>
    %c1_188 = arith.constant 1 : index
    %c0_189 = arith.constant 0 : index
    %c0_190 = arith.constant 0 : index
    %c0_191 = arith.constant 0 : index
    %232 = vector.load %arg2[%c1_188, %c0_189, %c0_190, %c0_191] : memref<2x4x32x8xf32, #tpu.memory_space<vmem>>, vector<1x1x32x8xf32>
    %233 = vector.shape_cast %232 : vector<1x1x32x8xf32> to vector<32x8xf32>
    %cst_192 = arith.constant dense<0.000000e+00> : vector<8x8xf32>
    %234 = tpu.matmul %230, %233, %cst_192 {dimension_numbers = #tpu.dot_dimension_numbers<[1], [0], [0], [1], [0, 0, 1, 1], [], []>} : vector<8x32xf32>, vector<32x8xf32>, vector<8x8xf32> -> vector<8x8xf32>
    %c1_193 = arith.constant 1 : index
    %c0_194 = arith.constant 0 : index
    %c0_195 = arith.constant 0 : index
    %c0_196 = arith.constant 0 : index
    %235 = vector.load %arg5[%c1_193, %c0_194, %c0_195, %c0_196] : memref<2x4x1x8xf32, #tpu.memory_space<vmem>>, vector<1x1x1x8xf32>
    %236 = vector.shape_cast %235 : vector<1x1x1x8xf32> to vector<1x8xf32>
    %237 = vector.broadcast %236 : vector<1x8xf32> to vector<8x8xf32>
    %238 = arith.addf %234, %237 : vector<8x8xf32>
    %c1_197 = arith.constant 1 : index
    %c0_198 = arith.constant 0 : index
    %c0_199 = arith.constant 0 : index
    %c0_200 = arith.constant 0 : index
    %239 = vector.load %arg3[%c1_197, %c0_198, %c0_199, %c0_200] : memref<2x4x32x8xf32, #tpu.memory_space<vmem>>, vector<1x1x32x8xf32>
    %240 = vector.shape_cast %239 : vector<1x1x32x8xf32> to vector<32x8xf32>
    %cst_201 = arith.constant dense<0.000000e+00> : vector<8x8xf32>
    %241 = tpu.matmul %230, %240, %cst_201 {dimension_numbers = #tpu.dot_dimension_numbers<[1], [0], [0], [1], [0, 0, 1, 1], [], []>} : vector<8x32xf32>, vector<32x8xf32>, vector<8x8xf32> -> vector<8x8xf32>
    %c1_202 = arith.constant 1 : index
    %c0_203 = arith.constant 0 : index
    %c0_204 = arith.constant 0 : index
    %c0_205 = arith.constant 0 : index
    %242 = vector.load %arg6[%c1_202, %c0_203, %c0_204, %c0_205] : memref<2x4x1x8xf32, #tpu.memory_space<vmem>>, vector<1x1x1x8xf32>
    %243 = vector.shape_cast %242 : vector<1x1x1x8xf32> to vector<1x8xf32>
    %244 = vector.broadcast %243 : vector<1x8xf32> to vector<8x8xf32>
    %245 = arith.addf %241, %244 : vector<8x8xf32>
    %c1_206 = arith.constant 1 : index
    %c0_207 = arith.constant 0 : index
    %c0_208 = arith.constant 0 : index
    %c0_209 = arith.constant 0 : index
    %246 = vector.load %arg4[%c1_206, %c0_207, %c0_208, %c0_209] : memref<2x4x32x8xf32, #tpu.memory_space<vmem>>, vector<1x1x32x8xf32>
    %247 = vector.shape_cast %246 : vector<1x1x32x8xf32> to vector<32x8xf32>
    %cst_210 = arith.constant dense<0.000000e+00> : vector<8x8xf32>
    %248 = tpu.matmul %230, %247, %cst_210 {dimension_numbers = #tpu.dot_dimension_numbers<[1], [0], [0], [1], [0, 0, 1, 1], [], []>} : vector<8x32xf32>, vector<32x8xf32>, vector<8x8xf32> -> vector<8x8xf32>
    %c1_211 = arith.constant 1 : index
    %c0_212 = arith.constant 0 : index
    %c0_213 = arith.constant 0 : index
    %c0_214 = arith.constant 0 : index
    %249 = vector.load %arg7[%c1_211, %c0_212, %c0_213, %c0_214] : memref<2x4x1x8xf32, #tpu.memory_space<vmem>>, vector<1x1x1x8xf32>
    %250 = vector.shape_cast %249 : vector<1x1x1x8xf32> to vector<1x8xf32>
    %251 = vector.broadcast %250 : vector<1x8xf32> to vector<8x8xf32>
    %252 = arith.addf %248, %251 : vector<8x8xf32>
    %cst_215 = arith.constant dense<0.000000e+00> : vector<8x8xf32>
    %253 = tpu.matmul %238, %245, %cst_215 {dimension_numbers = #tpu.dot_dimension_numbers<[1], [1], [0], [0], [0, 0, 1, 0], [], []>} : vector<8x8xf32>, vector<8x8xf32>, vector<8x8xf32> -> vector<8x8xf32>
    %cst_216 = arith.constant 0.353553385 : f32
    %254 = vector.broadcast %cst_216 : f32 to vector<8x8xf32>
    %255 = arith.mulf %253, %254 : vector<8x8xf32>
    %cst_217 = arith.constant dense<0xFF800000> : vector<8xf32>
    %256 = vector.multi_reduction <maximumf>, %255, %cst_217 [1] : vector<8x8xf32> to vector<8xf32>
    %257 = vector.shape_cast %256 : vector<8xf32> to vector<8x1xf32>
    %258 = vector.broadcast %257 : vector<8x1xf32> to vector<8x8xf32>
    %259 = arith.subf %255, %258 : vector<8x8xf32>
    %260 = math.exp %259 : vector<8x8xf32>
    %cst_218 = arith.constant dense<0.000000e+00> : vector<8xf32>
    %261 = vector.multi_reduction <add>, %260, %cst_218 [1] : vector<8x8xf32> to vector<8xf32>
    %262 = vector.shape_cast %261 : vector<8xf32> to vector<8x1xf32>
    %263 = tpu.reciprocal %262 {approx = true} : vector<8x1xf32> -> vector<8x1xf32>
    %264 = vector.broadcast %263 : vector<8x1xf32> to vector<8x8xf32>
    %265 = arith.mulf %260, %264 : vector<8x8xf32>
    %cst_219 = arith.constant dense<0.000000e+00> : vector<8x8xf32>
    %266 = tpu.matmul %265, %252, %cst_219 {dimension_numbers = #tpu.dot_dimension_numbers<[1], [0], [0], [1], [0, 0, 1, 1], [], []>} : vector<8x8xf32>, vector<8x8xf32>, vector<8x8xf32> -> vector<8x8xf32>
    %c1_220 = arith.constant 1 : index
    %c0_221 = arith.constant 0 : index
    %c0_222 = arith.constant 0 : index
    %c0_223 = arith.constant 0 : index
    %267 = vector.load %arg8[%c1_220, %c0_221, %c0_222, %c0_223] : memref<2x4x8x32xf32, #tpu.memory_space<vmem>>, vector<1x1x8x32xf32>
    %268 = vector.shape_cast %267 : vector<1x1x8x32xf32> to vector<8x32xf32>
    %cst_224 = arith.constant dense<0.000000e+00> : vector<8x32xf32>
    %269 = tpu.matmul %266, %268, %cst_224 {dimension_numbers = #tpu.dot_dimension_numbers<[1], [0], [0], [1], [0, 0, 1, 1], [], []>} : vector<8x8xf32>, vector<8x32xf32>, vector<8x32xf32> -> vector<8x32xf32>
    %270 = arith.addf %231, %269 : vector<8x32xf32>
    %c1_225 = arith.constant 1 : index
    %c1_226 = arith.constant 1 : index
    %c0_227 = arith.constant 0 : index
    %c0_228 = arith.constant 0 : index
    %271 = vector.load %arg2[%c1_225, %c1_226, %c0_227, %c0_228] : memref<2x4x32x8xf32, #tpu.memory_space<vmem>>, vector<1x1x32x8xf32>
    %272 = vector.shape_cast %271 : vector<1x1x32x8xf32> to vector<32x8xf32>
    %cst_229 = arith.constant dense<0.000000e+00> : vector<8x8xf32>
    %273 = tpu.matmul %230, %272, %cst_229 {dimension_numbers = #tpu.dot_dimension_numbers<[1], [0], [0], [1], [0, 0, 1, 1], [], []>} : vector<8x32xf32>, vector<32x8xf32>, vector<8x8xf32> -> vector<8x8xf32>
    %c1_230 = arith.constant 1 : index
    %c1_231 = arith.constant 1 : index
    %c0_232 = arith.constant 0 : index
    %c0_233 = arith.constant 0 : index
    %274 = vector.load %arg5[%c1_230, %c1_231, %c0_232, %c0_233] : memref<2x4x1x8xf32, #tpu.memory_space<vmem>>, vector<1x1x1x8xf32>
    %275 = vector.shape_cast %274 : vector<1x1x1x8xf32> to vector<1x8xf32>
    %276 = vector.broadcast %275 : vector<1x8xf32> to vector<8x8xf32>
    %277 = arith.addf %273, %276 : vector<8x8xf32>
    %c1_234 = arith.constant 1 : index
    %c1_235 = arith.constant 1 : index
    %c0_236 = arith.constant 0 : index
    %c0_237 = arith.constant 0 : index
    %278 = vector.load %arg3[%c1_234, %c1_235, %c0_236, %c0_237] : memref<2x4x32x8xf32, #tpu.memory_space<vmem>>, vector<1x1x32x8xf32>
    %279 = vector.shape_cast %278 : vector<1x1x32x8xf32> to vector<32x8xf32>
    %cst_238 = arith.constant dense<0.000000e+00> : vector<8x8xf32>
    %280 = tpu.matmul %230, %279, %cst_238 {dimension_numbers = #tpu.dot_dimension_numbers<[1], [0], [0], [1], [0, 0, 1, 1], [], []>} : vector<8x32xf32>, vector<32x8xf32>, vector<8x8xf32> -> vector<8x8xf32>
    %c1_239 = arith.constant 1 : index
    %c1_240 = arith.constant 1 : index
    %c0_241 = arith.constant 0 : index
    %c0_242 = arith.constant 0 : index
    %281 = vector.load %arg6[%c1_239, %c1_240, %c0_241, %c0_242] : memref<2x4x1x8xf32, #tpu.memory_space<vmem>>, vector<1x1x1x8xf32>
    %282 = vector.shape_cast %281 : vector<1x1x1x8xf32> to vector<1x8xf32>
    %283 = vector.broadcast %282 : vector<1x8xf32> to vector<8x8xf32>
    %284 = arith.addf %280, %283 : vector<8x8xf32>
    %c1_243 = arith.constant 1 : index
    %c1_244 = arith.constant 1 : index
    %c0_245 = arith.constant 0 : index
    %c0_246 = arith.constant 0 : index
    %285 = vector.load %arg4[%c1_243, %c1_244, %c0_245, %c0_246] : memref<2x4x32x8xf32, #tpu.memory_space<vmem>>, vector<1x1x32x8xf32>
    %286 = vector.shape_cast %285 : vector<1x1x32x8xf32> to vector<32x8xf32>
    %cst_247 = arith.constant dense<0.000000e+00> : vector<8x8xf32>
    %287 = tpu.matmul %230, %286, %cst_247 {dimension_numbers = #tpu.dot_dimension_numbers<[1], [0], [0], [1], [0, 0, 1, 1], [], []>} : vector<8x32xf32>, vector<32x8xf32>, vector<8x8xf32> -> vector<8x8xf32>
    %c1_248 = arith.constant 1 : index
    %c1_249 = arith.constant 1 : index
    %c0_250 = arith.constant 0 : index
    %c0_251 = arith.constant 0 : index
    %288 = vector.load %arg7[%c1_248, %c1_249, %c0_250, %c0_251] : memref<2x4x1x8xf32, #tpu.memory_space<vmem>>, vector<1x1x1x8xf32>
    %289 = vector.shape_cast %288 : vector<1x1x1x8xf32> to vector<1x8xf32>
    %290 = vector.broadcast %289 : vector<1x8xf32> to vector<8x8xf32>
    %291 = arith.addf %287, %290 : vector<8x8xf32>
    %cst_252 = arith.constant dense<0.000000e+00> : vector<8x8xf32>
    %292 = tpu.matmul %277, %284, %cst_252 {dimension_numbers = #tpu.dot_dimension_numbers<[1], [1], [0], [0], [0, 0, 1, 0], [], []>} : vector<8x8xf32>, vector<8x8xf32>, vector<8x8xf32> -> vector<8x8xf32>
    %cst_253 = arith.constant 0.353553385 : f32
    %293 = vector.broadcast %cst_253 : f32 to vector<8x8xf32>
    %294 = arith.mulf %292, %293 : vector<8x8xf32>
    %cst_254 = arith.constant dense<0xFF800000> : vector<8xf32>
    %295 = vector.multi_reduction <maximumf>, %294, %cst_254 [1] : vector<8x8xf32> to vector<8xf32>
    %296 = vector.shape_cast %295 : vector<8xf32> to vector<8x1xf32>
    %297 = vector.broadcast %296 : vector<8x1xf32> to vector<8x8xf32>
    %298 = arith.subf %294, %297 : vector<8x8xf32>
    %299 = math.exp %298 : vector<8x8xf32>
    %cst_255 = arith.constant dense<0.000000e+00> : vector<8xf32>
    %300 = vector.multi_reduction <add>, %299, %cst_255 [1] : vector<8x8xf32> to vector<8xf32>
    %301 = vector.shape_cast %300 : vector<8xf32> to vector<8x1xf32>
    %302 = tpu.reciprocal %301 {approx = true} : vector<8x1xf32> -> vector<8x1xf32>
    %303 = vector.broadcast %302 : vector<8x1xf32> to vector<8x8xf32>
    %304 = arith.mulf %299, %303 : vector<8x8xf32>
    %cst_256 = arith.constant dense<0.000000e+00> : vector<8x8xf32>
    %305 = tpu.matmul %304, %291, %cst_256 {dimension_numbers = #tpu.dot_dimension_numbers<[1], [0], [0], [1], [0, 0, 1, 1], [], []>} : vector<8x8xf32>, vector<8x8xf32>, vector<8x8xf32> -> vector<8x8xf32>
    %c1_257 = arith.constant 1 : index
    %c1_258 = arith.constant 1 : index
    %c0_259 = arith.constant 0 : index
    %c0_260 = arith.constant 0 : index
    %306 = vector.load %arg8[%c1_257, %c1_258, %c0_259, %c0_260] : memref<2x4x8x32xf32, #tpu.memory_space<vmem>>, vector<1x1x8x32xf32>
    %307 = vector.shape_cast %306 : vector<1x1x8x32xf32> to vector<8x32xf32>
    %cst_261 = arith.constant dense<0.000000e+00> : vector<8x32xf32>
    %308 = tpu.matmul %305, %307, %cst_261 {dimension_numbers = #tpu.dot_dimension_numbers<[1], [0], [0], [1], [0, 0, 1, 1], [], []>} : vector<8x8xf32>, vector<8x32xf32>, vector<8x32xf32> -> vector<8x32xf32>
    %309 = arith.addf %270, %308 : vector<8x32xf32>
    %c1_262 = arith.constant 1 : index
    %c2_263 = arith.constant 2 : index
    %c0_264 = arith.constant 0 : index
    %c0_265 = arith.constant 0 : index
    %310 = vector.load %arg2[%c1_262, %c2_263, %c0_264, %c0_265] : memref<2x4x32x8xf32, #tpu.memory_space<vmem>>, vector<1x1x32x8xf32>
    %311 = vector.shape_cast %310 : vector<1x1x32x8xf32> to vector<32x8xf32>
    %cst_266 = arith.constant dense<0.000000e+00> : vector<8x8xf32>
    %312 = tpu.matmul %230, %311, %cst_266 {dimension_numbers = #tpu.dot_dimension_numbers<[1], [0], [0], [1], [0, 0, 1, 1], [], []>} : vector<8x32xf32>, vector<32x8xf32>, vector<8x8xf32> -> vector<8x8xf32>
    %c1_267 = arith.constant 1 : index
    %c2_268 = arith.constant 2 : index
    %c0_269 = arith.constant 0 : index
    %c0_270 = arith.constant 0 : index
    %313 = vector.load %arg5[%c1_267, %c2_268, %c0_269, %c0_270] : memref<2x4x1x8xf32, #tpu.memory_space<vmem>>, vector<1x1x1x8xf32>
    %314 = vector.shape_cast %313 : vector<1x1x1x8xf32> to vector<1x8xf32>
    %315 = vector.broadcast %314 : vector<1x8xf32> to vector<8x8xf32>
    %316 = arith.addf %312, %315 : vector<8x8xf32>
    %c1_271 = arith.constant 1 : index
    %c2_272 = arith.constant 2 : index
    %c0_273 = arith.constant 0 : index
    %c0_274 = arith.constant 0 : index
    %317 = vector.load %arg3[%c1_271, %c2_272, %c0_273, %c0_274] : memref<2x4x32x8xf32, #tpu.memory_space<vmem>>, vector<1x1x32x8xf32>
    %318 = vector.shape_cast %317 : vector<1x1x32x8xf32> to vector<32x8xf32>
    %cst_275 = arith.constant dense<0.000000e+00> : vector<8x8xf32>
    %319 = tpu.matmul %230, %318, %cst_275 {dimension_numbers = #tpu.dot_dimension_numbers<[1], [0], [0], [1], [0, 0, 1, 1], [], []>} : vector<8x32xf32>, vector<32x8xf32>, vector<8x8xf32> -> vector<8x8xf32>
    %c1_276 = arith.constant 1 : index
    %c2_277 = arith.constant 2 : index
    %c0_278 = arith.constant 0 : index
    %c0_279 = arith.constant 0 : index
    %320 = vector.load %arg6[%c1_276, %c2_277, %c0_278, %c0_279] : memref<2x4x1x8xf32, #tpu.memory_space<vmem>>, vector<1x1x1x8xf32>
    %321 = vector.shape_cast %320 : vector<1x1x1x8xf32> to vector<1x8xf32>
    %322 = vector.broadcast %321 : vector<1x8xf32> to vector<8x8xf32>
    %323 = arith.addf %319, %322 : vector<8x8xf32>
    %c1_280 = arith.constant 1 : index
    %c2_281 = arith.constant 2 : index
    %c0_282 = arith.constant 0 : index
    %c0_283 = arith.constant 0 : index
    %324 = vector.load %arg4[%c1_280, %c2_281, %c0_282, %c0_283] : memref<2x4x32x8xf32, #tpu.memory_space<vmem>>, vector<1x1x32x8xf32>
    %325 = vector.shape_cast %324 : vector<1x1x32x8xf32> to vector<32x8xf32>
    %cst_284 = arith.constant dense<0.000000e+00> : vector<8x8xf32>
    %326 = tpu.matmul %230, %325, %cst_284 {dimension_numbers = #tpu.dot_dimension_numbers<[1], [0], [0], [1], [0, 0, 1, 1], [], []>} : vector<8x32xf32>, vector<32x8xf32>, vector<8x8xf32> -> vector<8x8xf32>
    %c1_285 = arith.constant 1 : index
    %c2_286 = arith.constant 2 : index
    %c0_287 = arith.constant 0 : index
    %c0_288 = arith.constant 0 : index
    %327 = vector.load %arg7[%c1_285, %c2_286, %c0_287, %c0_288] : memref<2x4x1x8xf32, #tpu.memory_space<vmem>>, vector<1x1x1x8xf32>
    %328 = vector.shape_cast %327 : vector<1x1x1x8xf32> to vector<1x8xf32>
    %329 = vector.broadcast %328 : vector<1x8xf32> to vector<8x8xf32>
    %330 = arith.addf %326, %329 : vector<8x8xf32>
    %cst_289 = arith.constant dense<0.000000e+00> : vector<8x8xf32>
    %331 = tpu.matmul %316, %323, %cst_289 {dimension_numbers = #tpu.dot_dimension_numbers<[1], [1], [0], [0], [0, 0, 1, 0], [], []>} : vector<8x8xf32>, vector<8x8xf32>, vector<8x8xf32> -> vector<8x8xf32>
    %cst_290 = arith.constant 0.353553385 : f32
    %332 = vector.broadcast %cst_290 : f32 to vector<8x8xf32>
    %333 = arith.mulf %331, %332 : vector<8x8xf32>
    %cst_291 = arith.constant dense<0xFF800000> : vector<8xf32>
    %334 = vector.multi_reduction <maximumf>, %333, %cst_291 [1] : vector<8x8xf32> to vector<8xf32>
    %335 = vector.shape_cast %334 : vector<8xf32> to vector<8x1xf32>
    %336 = vector.broadcast %335 : vector<8x1xf32> to vector<8x8xf32>
    %337 = arith.subf %333, %336 : vector<8x8xf32>
    %338 = math.exp %337 : vector<8x8xf32>
    %cst_292 = arith.constant dense<0.000000e+00> : vector<8xf32>
    %339 = vector.multi_reduction <add>, %338, %cst_292 [1] : vector<8x8xf32> to vector<8xf32>
    %340 = vector.shape_cast %339 : vector<8xf32> to vector<8x1xf32>
    %341 = tpu.reciprocal %340 {approx = true} : vector<8x1xf32> -> vector<8x1xf32>
    %342 = vector.broadcast %341 : vector<8x1xf32> to vector<8x8xf32>
    %343 = arith.mulf %338, %342 : vector<8x8xf32>
    %cst_293 = arith.constant dense<0.000000e+00> : vector<8x8xf32>
    %344 = tpu.matmul %343, %330, %cst_293 {dimension_numbers = #tpu.dot_dimension_numbers<[1], [0], [0], [1], [0, 0, 1, 1], [], []>} : vector<8x8xf32>, vector<8x8xf32>, vector<8x8xf32> -> vector<8x8xf32>
    %c1_294 = arith.constant 1 : index
    %c2_295 = arith.constant 2 : index
    %c0_296 = arith.constant 0 : index
    %c0_297 = arith.constant 0 : index
    %345 = vector.load %arg8[%c1_294, %c2_295, %c0_296, %c0_297] : memref<2x4x8x32xf32, #tpu.memory_space<vmem>>, vector<1x1x8x32xf32>
    %346 = vector.shape_cast %345 : vector<1x1x8x32xf32> to vector<8x32xf32>
    %cst_298 = arith.constant dense<0.000000e+00> : vector<8x32xf32>
    %347 = tpu.matmul %344, %346, %cst_298 {dimension_numbers = #tpu.dot_dimension_numbers<[1], [0], [0], [1], [0, 0, 1, 1], [], []>} : vector<8x8xf32>, vector<8x32xf32>, vector<8x32xf32> -> vector<8x32xf32>
    %348 = arith.addf %309, %347 : vector<8x32xf32>
    %c1_299 = arith.constant 1 : index
    %c3_300 = arith.constant 3 : index
    %c0_301 = arith.constant 0 : index
    %c0_302 = arith.constant 0 : index
    %349 = vector.load %arg2[%c1_299, %c3_300, %c0_301, %c0_302] : memref<2x4x32x8xf32, #tpu.memory_space<vmem>>, vector<1x1x32x8xf32>
    %350 = vector.shape_cast %349 : vector<1x1x32x8xf32> to vector<32x8xf32>
    %cst_303 = arith.constant dense<0.000000e+00> : vector<8x8xf32>
    %351 = tpu.matmul %230, %350, %cst_303 {dimension_numbers = #tpu.dot_dimension_numbers<[1], [0], [0], [1], [0, 0, 1, 1], [], []>} : vector<8x32xf32>, vector<32x8xf32>, vector<8x8xf32> -> vector<8x8xf32>
    %c1_304 = arith.constant 1 : index
    %c3_305 = arith.constant 3 : index
    %c0_306 = arith.constant 0 : index
    %c0_307 = arith.constant 0 : index
    %352 = vector.load %arg5[%c1_304, %c3_305, %c0_306, %c0_307] : memref<2x4x1x8xf32, #tpu.memory_space<vmem>>, vector<1x1x1x8xf32>
    %353 = vector.shape_cast %352 : vector<1x1x1x8xf32> to vector<1x8xf32>
    %354 = vector.broadcast %353 : vector<1x8xf32> to vector<8x8xf32>
    %355 = arith.addf %351, %354 : vector<8x8xf32>
    %c1_308 = arith.constant 1 : index
    %c3_309 = arith.constant 3 : index
    %c0_310 = arith.constant 0 : index
    %c0_311 = arith.constant 0 : index
    %356 = vector.load %arg3[%c1_308, %c3_309, %c0_310, %c0_311] : memref<2x4x32x8xf32, #tpu.memory_space<vmem>>, vector<1x1x32x8xf32>
    %357 = vector.shape_cast %356 : vector<1x1x32x8xf32> to vector<32x8xf32>
    %cst_312 = arith.constant dense<0.000000e+00> : vector<8x8xf32>
    %358 = tpu.matmul %230, %357, %cst_312 {dimension_numbers = #tpu.dot_dimension_numbers<[1], [0], [0], [1], [0, 0, 1, 1], [], []>} : vector<8x32xf32>, vector<32x8xf32>, vector<8x8xf32> -> vector<8x8xf32>
    %c1_313 = arith.constant 1 : index
    %c3_314 = arith.constant 3 : index
    %c0_315 = arith.constant 0 : index
    %c0_316 = arith.constant 0 : index
    %359 = vector.load %arg6[%c1_313, %c3_314, %c0_315, %c0_316] : memref<2x4x1x8xf32, #tpu.memory_space<vmem>>, vector<1x1x1x8xf32>
    %360 = vector.shape_cast %359 : vector<1x1x1x8xf32> to vector<1x8xf32>
    %361 = vector.broadcast %360 : vector<1x8xf32> to vector<8x8xf32>
    %362 = arith.addf %358, %361 : vector<8x8xf32>
    %c1_317 = arith.constant 1 : index
    %c3_318 = arith.constant 3 : index
    %c0_319 = arith.constant 0 : index
    %c0_320 = arith.constant 0 : index
    %363 = vector.load %arg4[%c1_317, %c3_318, %c0_319, %c0_320] : memref<2x4x32x8xf32, #tpu.memory_space<vmem>>, vector<1x1x32x8xf32>
    %364 = vector.shape_cast %363 : vector<1x1x32x8xf32> to vector<32x8xf32>
    %cst_321 = arith.constant dense<0.000000e+00> : vector<8x8xf32>
    %365 = tpu.matmul %230, %364, %cst_321 {dimension_numbers = #tpu.dot_dimension_numbers<[1], [0], [0], [1], [0, 0, 1, 1], [], []>} : vector<8x32xf32>, vector<32x8xf32>, vector<8x8xf32> -> vector<8x8xf32>
    %c1_322 = arith.constant 1 : index
    %c3_323 = arith.constant 3 : index
    %c0_324 = arith.constant 0 : index
    %c0_325 = arith.constant 0 : index
    %366 = vector.load %arg7[%c1_322, %c3_323, %c0_324, %c0_325] : memref<2x4x1x8xf32, #tpu.memory_space<vmem>>, vector<1x1x1x8xf32>
    %367 = vector.shape_cast %366 : vector<1x1x1x8xf32> to vector<1x8xf32>
    %368 = vector.broadcast %367 : vector<1x8xf32> to vector<8x8xf32>
    %369 = arith.addf %365, %368 : vector<8x8xf32>
    %cst_326 = arith.constant dense<0.000000e+00> : vector<8x8xf32>
    %370 = tpu.matmul %355, %362, %cst_326 {dimension_numbers = #tpu.dot_dimension_numbers<[1], [1], [0], [0], [0, 0, 1, 0], [], []>} : vector<8x8xf32>, vector<8x8xf32>, vector<8x8xf32> -> vector<8x8xf32>
    %cst_327 = arith.constant 0.353553385 : f32
    %371 = vector.broadcast %cst_327 : f32 to vector<8x8xf32>
    %372 = arith.mulf %370, %371 : vector<8x8xf32>
    %cst_328 = arith.constant dense<0xFF800000> : vector<8xf32>
    %373 = vector.multi_reduction <maximumf>, %372, %cst_328 [1] : vector<8x8xf32> to vector<8xf32>
    %374 = vector.shape_cast %373 : vector<8xf32> to vector<8x1xf32>
    %375 = vector.broadcast %374 : vector<8x1xf32> to vector<8x8xf32>
    %376 = arith.subf %372, %375 : vector<8x8xf32>
    %377 = math.exp %376 : vector<8x8xf32>
    %cst_329 = arith.constant dense<0.000000e+00> : vector<8xf32>
    %378 = vector.multi_reduction <add>, %377, %cst_329 [1] : vector<8x8xf32> to vector<8xf32>
    %379 = vector.shape_cast %378 : vector<8xf32> to vector<8x1xf32>
    %380 = tpu.reciprocal %379 {approx = true} : vector<8x1xf32> -> vector<8x1xf32>
    %381 = vector.broadcast %380 : vector<8x1xf32> to vector<8x8xf32>
    %382 = arith.mulf %377, %381 : vector<8x8xf32>
    %cst_330 = arith.constant dense<0.000000e+00> : vector<8x8xf32>
    %383 = tpu.matmul %382, %369, %cst_330 {dimension_numbers = #tpu.dot_dimension_numbers<[1], [0], [0], [1], [0, 0, 1, 1], [], []>} : vector<8x8xf32>, vector<8x8xf32>, vector<8x8xf32> -> vector<8x8xf32>
    %c1_331 = arith.constant 1 : index
    %c3_332 = arith.constant 3 : index
    %c0_333 = arith.constant 0 : index
    %c0_334 = arith.constant 0 : index
    %384 = vector.load %arg8[%c1_331, %c3_332, %c0_333, %c0_334] : memref<2x4x8x32xf32, #tpu.memory_space<vmem>>, vector<1x1x8x32xf32>
    %385 = vector.shape_cast %384 : vector<1x1x8x32xf32> to vector<8x32xf32>
    %cst_335 = arith.constant dense<0.000000e+00> : vector<8x32xf32>
    %386 = tpu.matmul %383, %385, %cst_335 {dimension_numbers = #tpu.dot_dimension_numbers<[1], [0], [0], [1], [0, 0, 1, 1], [], []>} : vector<8x8xf32>, vector<8x32xf32>, vector<8x32xf32> -> vector<8x32xf32>
    %387 = arith.addf %348, %386 : vector<8x32xf32>
    %388 = arith.addf %230, %387 : vector<8x32xf32>
    %c1_336 = arith.constant 1 : index
    %c0_337 = arith.constant 0 : index
    %c0_338 = arith.constant 0 : index
    %389 = vector.load %arg9[%c1_336, %c0_337, %c0_338] : memref<2x1x32xf32, #tpu.memory_space<vmem>>, vector<1x1x32xf32>
    %390 = vector.shape_cast %389 : vector<1x1x32xf32> to vector<1x32xf32>
    %391 = vector.broadcast %390 : vector<1x32xf32> to vector<8x32xf32>
    %392 = arith.addf %388, %391 : vector<8x32xf32>
    %c1_339 = arith.constant 1 : index
    %c0_340 = arith.constant 0 : index
    %c0_341 = arith.constant 0 : index
    %393 = vector.load %arg10[%c1_339, %c0_340, %c0_341] : memref<2x1x32xf32, #tpu.memory_space<vmem>>, vector<1x1x32xf32>
    %394 = vector.shape_cast %393 : vector<1x1x32xf32> to vector<1x32xf32>
    %c1_342 = arith.constant 1 : index
    %c0_343 = arith.constant 0 : index
    %c0_344 = arith.constant 0 : index
    %395 = vector.load %arg11[%c1_342, %c0_343, %c0_344] : memref<2x1x32xf32, #tpu.memory_space<vmem>>, vector<1x1x32xf32>
    %396 = vector.shape_cast %395 : vector<1x1x32xf32> to vector<1x32xf32>
    %cst_345 = arith.constant dense<0.000000e+00> : vector<8xf32>
    %397 = vector.multi_reduction <add>, %392, %cst_345 [1] : vector<8x32xf32> to vector<8xf32>
    %398 = vector.shape_cast %397 : vector<8xf32> to vector<8x1xf32>
    %cst_346 = arith.constant 3.200000e+01 : f32
    %399 = vector.broadcast %cst_346 : f32 to vector<8x1xf32>
    %400 = arith.divf %398, %399 : vector<8x1xf32>
    %401 = vector.broadcast %400 : vector<8x1xf32> to vector<8x32xf32>
    %402 = arith.subf %392, %401 : vector<8x32xf32>
    %403 = arith.mulf %402, %402 : vector<8x32xf32>
    %cst_347 = arith.constant dense<0.000000e+00> : vector<8xf32>
    %404 = vector.multi_reduction <add>, %403, %cst_347 [1] : vector<8x32xf32> to vector<8xf32>
    %405 = vector.shape_cast %404 : vector<8xf32> to vector<8x1xf32>
    %cst_348 = arith.constant 3.200000e+01 : f32
    %406 = vector.broadcast %cst_348 : f32 to vector<8x1xf32>
    %407 = arith.divf %405, %406 : vector<8x1xf32>
    %cst_349 = arith.constant 9.99999974E-6 : f32
    %408 = vector.broadcast %cst_349 : f32 to vector<8x1xf32>
    %409 = arith.addf %407, %408 : vector<8x1xf32>
    %410 = math.rsqrt %409 : vector<8x1xf32>
    %411 = vector.broadcast %410 : vector<8x1xf32> to vector<8x32xf32>
    %412 = arith.mulf %402, %411 : vector<8x32xf32>
    %413 = vector.broadcast %394 : vector<1x32xf32> to vector<8x32xf32>
    %414 = arith.mulf %412, %413 : vector<8x32xf32>
    %415 = vector.broadcast %396 : vector<1x32xf32> to vector<8x32xf32>
    %416 = arith.addf %414, %415 : vector<8x32xf32>
    %417 = arith.truncf %416 : vector<8x32xf32> to vector<8x32xbf16>
    %c1_350 = arith.constant 1 : index
    %c0_351 = arith.constant 0 : index
    %c0_352 = arith.constant 0 : index
    %418 = vector.load %arg12[%c1_350, %c0_351, %c0_352] : memref<2x32x2048xbf16, #tpu.memory_space<vmem>>, vector<1x32x2048xbf16>
    %419 = vector.shape_cast %418 : vector<1x32x2048xbf16> to vector<32x2048xbf16>
    %cst_353 = arith.constant dense<0.000000e+00> : vector<8x2048xf32>
    %420 = tpu.matmul %417, %419, %cst_353 {dimension_numbers = #tpu.dot_dimension_numbers<[1], [0], [0], [1], [0, 0, 1, 1], [], []>} : vector<8x32xbf16>, vector<32x2048xbf16>, vector<8x2048xf32> -> vector<8x2048xf32>
    %c1_354 = arith.constant 1 : index
    %c0_355 = arith.constant 0 : index
    %c0_356 = arith.constant 0 : index
    %421 = vector.load %arg13[%c1_354, %c0_355, %c0_356] : memref<2x1x2048xf32, #tpu.memory_space<vmem>>, vector<1x1x2048xf32>
    %422 = vector.shape_cast %421 : vector<1x1x2048xf32> to vector<1x2048xf32>
    %423 = vector.broadcast %422 : vector<1x2048xf32> to vector<8x2048xf32>
    %424 = arith.addf %420, %423 : vector<8x2048xf32>
    %cst_357 = arith.constant 0.000000e+00 : f32
    %425 = vector.broadcast %cst_357 : f32 to vector<8x2048xf32>
    %426 = arith.maximumf %424, %425 : vector<8x2048xf32>
    %427 = arith.truncf %426 : vector<8x2048xf32> to vector<8x2048xbf16>
    %c1_358 = arith.constant 1 : index
    %c0_359 = arith.constant 0 : index
    %c0_360 = arith.constant 0 : index
    %428 = vector.load %arg14[%c1_358, %c0_359, %c0_360] : memref<2x32x2048xbf16, #tpu.memory_space<vmem>>, vector<1x32x2048xbf16>
    %429 = vector.shape_cast %428 : vector<1x32x2048xbf16> to vector<32x2048xbf16>
    %cst_361 = arith.constant dense<0.000000e+00> : vector<8x32xf32>
    %430 = tpu.matmul %427, %429, %cst_361 {dimension_numbers = #tpu.dot_dimension_numbers<[1], [1], [0], [0], [0, 0, 1, 0], [], []>} : vector<8x2048xbf16>, vector<32x2048xbf16>, vector<8x32xf32> -> vector<8x32xf32>
    %c1_362 = arith.constant 1 : index
    %c0_363 = arith.constant 0 : index
    %c0_364 = arith.constant 0 : index
    %431 = vector.load %arg15[%c1_362, %c0_363, %c0_364] : memref<2x1x32xf32, #tpu.memory_space<vmem>>, vector<1x1x32xf32>
    %432 = vector.shape_cast %431 : vector<1x1x32xf32> to vector<1x32xf32>
    %433 = vector.broadcast %432 : vector<1x32xf32> to vector<8x32xf32>
    %434 = arith.addf %430, %433 : vector<8x32xf32>
    %435 = arith.addf %416, %434 : vector<8x32xf32>
    %c1_365 = arith.constant 1 : index
    %c0_366 = arith.constant 0 : index
    %c0_367 = arith.constant 0 : index
    %436 = vector.load %arg16[%c1_365, %c0_366, %c0_367] : memref<2x1x32xf32, #tpu.memory_space<vmem>>, vector<1x1x32xf32>
    %437 = vector.shape_cast %436 : vector<1x1x32xf32> to vector<1x32xf32>
    %c1_368 = arith.constant 1 : index
    %c0_369 = arith.constant 0 : index
    %c0_370 = arith.constant 0 : index
    %438 = vector.load %arg17[%c1_368, %c0_369, %c0_370] : memref<2x1x32xf32, #tpu.memory_space<vmem>>, vector<1x1x32xf32>
    %439 = vector.shape_cast %438 : vector<1x1x32xf32> to vector<1x32xf32>
    %cst_371 = arith.constant dense<0.000000e+00> : vector<8xf32>
    %440 = vector.multi_reduction <add>, %435, %cst_371 [1] : vector<8x32xf32> to vector<8xf32>
    %441 = vector.shape_cast %440 : vector<8xf32> to vector<8x1xf32>
    %cst_372 = arith.constant 3.200000e+01 : f32
    %442 = vector.broadcast %cst_372 : f32 to vector<8x1xf32>
    %443 = arith.divf %441, %442 : vector<8x1xf32>
    %444 = vector.broadcast %443 : vector<8x1xf32> to vector<8x32xf32>
    %445 = arith.subf %435, %444 : vector<8x32xf32>
    %446 = arith.mulf %445, %445 : vector<8x32xf32>
    %cst_373 = arith.constant dense<0.000000e+00> : vector<8xf32>
    %447 = vector.multi_reduction <add>, %446, %cst_373 [1] : vector<8x32xf32> to vector<8xf32>
    %448 = vector.shape_cast %447 : vector<8xf32> to vector<8x1xf32>
    %cst_374 = arith.constant 3.200000e+01 : f32
    %449 = vector.broadcast %cst_374 : f32 to vector<8x1xf32>
    %450 = arith.divf %448, %449 : vector<8x1xf32>
    %cst_375 = arith.constant 9.99999974E-6 : f32
    %451 = vector.broadcast %cst_375 : f32 to vector<8x1xf32>
    %452 = arith.addf %450, %451 : vector<8x1xf32>
    %453 = math.rsqrt %452 : vector<8x1xf32>
    %454 = vector.broadcast %453 : vector<8x1xf32> to vector<8x32xf32>
    %455 = arith.mulf %445, %454 : vector<8x32xf32>
    %456 = vector.broadcast %437 : vector<1x32xf32> to vector<8x32xf32>
    %457 = arith.mulf %455, %456 : vector<8x32xf32>
    %458 = vector.broadcast %439 : vector<1x32xf32> to vector<8x32xf32>
    %459 = arith.addf %457, %458 : vector<8x32xf32>
    %c0_376 = arith.constant 0 : index
    %c0_377 = arith.constant 0 : index
    %460 = vector.load %arg18[%c0_376, %c0_377] : memref<1x32xf32, #tpu.memory_space<vmem>>, vector<1x32xf32>
    %461 = vector.broadcast %460 : vector<1x32xf32> to vector<8x32xf32>
    %462 = arith.mulf %459, %461 : vector<8x32xf32>
    %cst_378 = arith.constant dense<0.000000e+00> : vector<8xf32>
    %463 = vector.multi_reduction <add>, %462, %cst_378 [1] : vector<8x32xf32> to vector<8xf32>
    %464 = vector.shape_cast %463 : vector<8xf32> to vector<8x1xf32>
    %c0_379 = arith.constant 0 : index
    %c0_380 = arith.constant 0 : index
    %465 = vector.load %arg19[%c0_379, %c0_380] : memref<1x1xf32, #tpu.memory_space<vmem>>, vector<1x1xf32>
    %466 = vector.broadcast %465 : vector<1x1xf32> to vector<8x1xf32>
    %467 = arith.addf %464, %466 : vector<8x1xf32>
    %cst_381 = arith.constant dense<0xFF800000> : vector<1xf32>
    %468 = vector.multi_reduction <maximumf>, %467, %cst_381 [0] : vector<8x1xf32> to vector<1xf32>
    %469 = vector.shape_cast %468 : vector<1xf32> to vector<1x1xf32>
    %470 = vector.broadcast %469 : vector<1x1xf32> to vector<8x1xf32>
    %471 = arith.subf %467, %470 : vector<8x1xf32>
    %472 = math.exp %471 : vector<8x1xf32>
    %cst_382 = arith.constant dense<0.000000e+00> : vector<1xf32>
    %473 = vector.multi_reduction <add>, %472, %cst_382 [0] : vector<8x1xf32> to vector<1xf32>
    %474 = vector.shape_cast %473 : vector<1xf32> to vector<1x1xf32>
    %475 = vector.broadcast %474 : vector<1x1xf32> to vector<8x1xf32>
    %476 = arith.divf %472, %475 : vector<8x1xf32>
    %c0_383 = arith.constant 0 : index
    %c0_384 = arith.constant 0 : index
    %c0_385 = arith.constant 0 : index
    %477 = vector.load %arg20[%c0_383, %c0_384, %c0_385] : memref<1x8x1xf32, #tpu.memory_space<vmem>>, vector<1x8x1xf32>
    %478 = vector.shape_cast %477 : vector<1x8x1xf32> to vector<8x1xf32>
    %479 = vector.shape_cast %476 : vector<8x1xf32> to vector<1x8x1xf32>
    tpu.vector_store %arg20[%c0_383, %c0_384, %c0_385], %479 {strides = array<i32>} : memref<1x8x1xf32, #tpu.memory_space<vmem>>, vector<1x8x1xf32>,
    return
  }
  func.func @transform_0(%arg0: i32) -> (i32, i32, i32) {
    %c0_i32 = arith.constant 0 : i32
    %c0_i32_0 = arith.constant 0 : i32
    %c0_i32_1 = arith.constant 0 : i32
    return %arg0, %c0_i32, %c0_i32_0 : i32, i32, i32
  }
  func.func @transform_1(%arg0: i32) -> (i32, i32, i32, i32) {
    %c0_i32 = arith.constant 0 : i32
    %c0_i32_0 = arith.constant 0 : i32
    %c0_i32_1 = arith.constant 0 : i32
    %c0_i32_2 = arith.constant 0 : i32
    %c0_i32_3 = arith.constant 0 : i32
    return %c0_i32, %c0_i32_0, %c0_i32_1, %c0_i32_2 : i32, i32, i32, i32
  }
  func.func @transform_2(%arg0: i32) -> (i32, i32, i32, i32) {
    %c0_i32 = arith.constant 0 : i32
    %c0_i32_0 = arith.constant 0 : i32
    %c0_i32_1 = arith.constant 0 : i32
    %c0_i32_2 = arith.constant 0 : i32
    %c0_i32_3 = arith.constant 0 : i32
    return %c0_i32, %c0_i32_0, %c0_i32_1, %c0_i32_2 : i32, i32, i32, i32
  }
  func.func @transform_3(%arg0: i32) -> (i32, i32, i32, i32) {
    %c0_i32 = arith.constant 0 : i32
    %c0_i32_0 = arith.constant 0 : i32
    %c0_i32_1 = arith.constant 0 : i32
    %c0_i32_2 = arith.constant 0 : i32
    %c0_i32_3 = arith.constant 0 : i32
    return %c0_i32, %c0_i32_0, %c0_i32_1, %c0_i32_2 : i32, i32, i32, i32
  }
  func.func @transform_4(%arg0: i32) -> (i32, i32, i32, i32) {
    %c0_i32 = arith.constant 0 : i32
    %c0_i32_0 = arith.constant 0 : i32
    %c0_i32_1 = arith.constant 0 : i32
    %c0_i32_2 = arith.constant 0 : i32
    %c0_i32_3 = arith.constant 0 : i32
    return %c0_i32, %c0_i32_0, %c0_i32_1, %c0_i32_2 : i32, i32, i32, i32
  }
  func.func @transform_5(%arg0: i32) -> (i32, i32, i32, i32) {
    %c0_i32 = arith.constant 0 : i32
    %c0_i32_0 = arith.constant 0 : i32
    %c0_i32_1 = arith.constant 0 : i32
    %c0_i32_2 = arith.constant 0 : i32
    %c0_i32_3 = arith.constant 0 : i32
    return %c0_i32, %c0_i32_0, %c0_i32_1, %c0_i32_2 : i32, i32, i32, i32
  }
  func.func @transform_6(%arg0: i32) -> (i32, i32, i32, i32) {
    %c0_i32 = arith.constant 0 : i32
    %c0_i32_0 = arith.constant 0 : i32
    %c0_i32_1 = arith.constant 0 : i32
    %c0_i32_2 = arith.constant 0 : i32
    %c0_i32_3 = arith.constant 0 : i32
    return %c0_i32, %c0_i32_0, %c0_i32_1, %c0_i32_2 : i32, i32, i32, i32
  }
  func.func @transform_7(%arg0: i32) -> (i32, i32, i32, i32) {
    %c0_i32 = arith.constant 0 : i32
    %c0_i32_0 = arith.constant 0 : i32
    %c0_i32_1 = arith.constant 0 : i32
    %c0_i32_2 = arith.constant 0 : i32
    %c0_i32_3 = arith.constant 0 : i32
    return %c0_i32, %c0_i32_0, %c0_i32_1, %c0_i32_2 : i32, i32, i32, i32
  }
  func.func @transform_8(%arg0: i32) -> (i32, i32, i32) {
    %c0_i32 = arith.constant 0 : i32
    %c0_i32_0 = arith.constant 0 : i32
    %c0_i32_1 = arith.constant 0 : i32
    %c0_i32_2 = arith.constant 0 : i32
    return %c0_i32, %c0_i32_0, %c0_i32_1 : i32, i32, i32
  }
  func.func @transform_9(%arg0: i32) -> (i32, i32, i32) {
    %c0_i32 = arith.constant 0 : i32
    %c0_i32_0 = arith.constant 0 : i32
    %c0_i32_1 = arith.constant 0 : i32
    %c0_i32_2 = arith.constant 0 : i32
    return %c0_i32, %c0_i32_0, %c0_i32_1 : i32, i32, i32
  }
  func.func @transform_10(%arg0: i32) -> (i32, i32, i32) {
    %c0_i32 = arith.constant 0 : i32
    %c0_i32_0 = arith.constant 0 : i32
    %c0_i32_1 = arith.constant 0 : i32
    %c0_i32_2 = arith.constant 0 : i32
    return %c0_i32, %c0_i32_0, %c0_i32_1 : i32, i32, i32
  }
  func.func @transform_11(%arg0: i32) -> (i32, i32, i32) {
    %c0_i32 = arith.constant 0 : i32
    %c0_i32_0 = arith.constant 0 : i32
    %c0_i32_1 = arith.constant 0 : i32
    %c0_i32_2 = arith.constant 0 : i32
    return %c0_i32, %c0_i32_0, %c0_i32_1 : i32, i32, i32
  }
  func.func @transform_12(%arg0: i32) -> (i32, i32, i32) {
    %c0_i32 = arith.constant 0 : i32
    %c0_i32_0 = arith.constant 0 : i32
    %c0_i32_1 = arith.constant 0 : i32
    %c0_i32_2 = arith.constant 0 : i32
    return %c0_i32, %c0_i32_0, %c0_i32_1 : i32, i32, i32
  }
  func.func @transform_13(%arg0: i32) -> (i32, i32, i32) {
    %c0_i32 = arith.constant 0 : i32
    %c0_i32_0 = arith.constant 0 : i32
    %c0_i32_1 = arith.constant 0 : i32
    %c0_i32_2 = arith.constant 0 : i32
    return %c0_i32, %c0_i32_0, %c0_i32_1 : i32, i32, i32
  }
  func.func @transform_14(%arg0: i32) -> (i32, i32, i32) {
    %c0_i32 = arith.constant 0 : i32
    %c0_i32_0 = arith.constant 0 : i32
    %c0_i32_1 = arith.constant 0 : i32
    %c0_i32_2 = arith.constant 0 : i32
    return %c0_i32, %c0_i32_0, %c0_i32_1 : i32, i32, i32
  }
  func.func @transform_15(%arg0: i32) -> (i32, i32, i32) {
    %c0_i32 = arith.constant 0 : i32
    %c0_i32_0 = arith.constant 0 : i32
    %c0_i32_1 = arith.constant 0 : i32
    %c0_i32_2 = arith.constant 0 : i32
    return %c0_i32, %c0_i32_0, %c0_i32_1 : i32, i32, i32
  }
  func.func @transform_16(%arg0: i32) -> (i32, i32, i32) {
    %c0_i32 = arith.constant 0 : i32
    %c0_i32_0 = arith.constant 0 : i32
    %c0_i32_1 = arith.constant 0 : i32
    %c0_i32_2 = arith.constant 0 : i32
    return %c0_i32, %c0_i32_0, %c0_i32_1 : i32, i32, i32
  }
  func.func @transform_17(%arg0: i32) -> (i32, i32) {
    %c0_i32 = arith.constant 0 : i32
    %c0_i32_0 = arith.constant 0 : i32
    %c0_i32_1 = arith.constant 0 : i32
    return %c0_i32, %c0_i32_0 : i32, i32
  }
  func.func @transform_18(%arg0: i32) -> (i32, i32) {
    %c0_i32 = arith.constant 0 : i32
    %c0_i32_0 = arith.constant 0 : i32
    %c0_i32_1 = arith.constant 0 : i32
    return %c0_i32, %c0_i32_0 : i32, i32
  }
  func.func @transform_19(%arg0: i32) -> (i32, i32, i32) {
    %c0_i32 = arith.constant 0 : i32
    %c0_i32_0 = arith.constant 0 : i32
    %c0_i32_1 = arith.constant 0 : i32
    return %arg0, %c0_i32, %c0_i32_0 : i32, i32, i32
  }
}

</mosaic_0001>

<bundles_post_ra>
// kernel: choppy_forward.1
= control target key start
LH: loop header
LB: loop body
LE: loop exit
PB: predicated region body
PF: predicated region fallthrough
CT: control target
= control target key end

     0   :  { %s10060_s0 = inlined_call_operand.vmem [shape: f32[2,8,32], index: 0, kind: input, shape index: {}]   ;;  %s10061_s1 = inlined_call_operand.vmem [shape: f32[2,4,32,8], index: 1, kind: input, shape index: {}]   ;;  %s10062_s2 = inlined_call_operand.vmem [shape: f32[2,4,32,8], index: 2, kind: input, shape index: {}]   ;;  %s10063_s3 = inlined_call_operand.vmem [shape: f32[2,4,32,8], index: 3, kind: input, shape index: {}]   ;;  %s10064_s4 = inlined_call_operand.hbm [shape: f32[2,4,1,8], index: 4, kind: input, shape index: {}]   ;;  %s10065_s5 = inlined_call_operand.hbm [shape: f32[2,4,1,8], index: 5, kind: input, shape index: {}]   ;;  %s10066_s6 = inlined_call_operand.hbm [shape: f32[2,4,1,8], index: 6, kind: input, shape index: {}]   ;;  %s10067_s7 = inlined_call_operand.hbm [shape: f32[2,4,8,32], index: 7, kind: input, shape index: {}]   ;;  %s10068_s8 = inlined_call_operand.vmem [shape: f32[2,1,32], index: 8, kind: input, shape index: {}]   ;;  %s10069_s9 = inlined_call_operand.vmem [shape: f32[2,1,32], index: 9, kind: input, shape index: {}]   ;;  %s10070_s10 = inlined_call_operand.hbm [shape: f32[2,1,32], index: 10, kind: input, shape index: {}]   ;;  %s10071_s11 = inlined_call_operand.vmem [shape: bf16[2,32,2048], index: 11, kind: input, shape index: {}]   ;;  %s10072_s12 = inlined_call_operand.hbm [shape: f32[2,1,2048], index: 12, kind: input, shape index: {}]   ;;  %s10073_s13 = inlined_call_operand.vmem [shape: bf16[2,32,2048], index: 13, kind: input, shape index: {}]   ;;  %s10074_s14 = inlined_call_operand.hbm [shape: f32[2,1,32], index: 14, kind: input, shape index: {}]   ;;  %s10075_s15 = inlined_call_operand.vmem [shape: f32[2,1,32], index: 15, kind: input, shape index: {}]   ;;  %s10076_s16 = inlined_call_operand.vmem [shape: f32[2,1,32], index: 16, kind: input, shape index: {}]   ;;  %s10077_s17 = inlined_call_operand.hbm [shape: f32[1,32], index: 17, kind: input, shape index: {}]   ;;  %s10078_s18 = inlined_call_operand.<no memory space> [shape: f32[1,1], index: 18, kind: input, shape index: {}]   ;;  %s10079_s19 = inlined_call_operand.vmem [shape: f32[2,8,1], index: 19, kind: output, shape index: {}]  }
   0x1   :  { %10085 = sst [smem:[#allocation21_spill]] %s10060_s0  ;;  %v24_v0 = vstv %s10078_s18 }
   0x2   :  { %10086 = sst [smem:[#allocation22_spill]] %s10061_s1  ;;  %25 = vst [vmem:[#allocation2] sm:$0x1] %v24_v0 }
   0x3   :  { %10087 = sst [smem:[#allocation23_spill]] %s10062_s2 }
   0x4   :  { %10088 = sst [smem:[#allocation24_spill]] %s10063_s3 }
   0x5   :  { %26 = vsyncpa [#allocation4], 0 }
   0x6   :  { %27 = vsyncpa [#allocation6], 0 }
   0x7   :  { %28 = vsyncpa [#allocation9], 0 }
   0x8   :  { %29 = vsyncpa [#allocation12], 0 }
   0x9   :  { %30 = vsyncpa [#allocation15], 0  ;;  %s8701_s20 = smov 0  }
   0xa LB: > { %s8707_s21 = sadd.s32 4294967295, %s8580_s20   ;;  %p7240_p0 = scmp.ge.s32.totalorder %s8580_s20, 1  ;;  %s8580_s20 = sphi %s8701_s20, %s36_s20  }
   0xb   : > { %p471_p1 = scmp.lt.s32.totalorder %s8580_s20, 3  ;;  %p8262_p2 = scmp.eq.s32.totalorder %s8707_s21, 0 }
   0xc   : > { %s8582_s1 = smov [#allocation5]   ;;  %s8583_s2 = smov [#allocation8]  }
   0xd   : > { %p8712_p3 = pnand %p7240_p0, %p471_p1  ;;  %s505_s22 = sshll.u32 %s8582_s1, 4  ;;  %s506_s22 = int_to_ptr.vmem [resolvable:$true] %s505_s22 }
   0xe   : > { %s531_s23 = sshll.u32 %s8583_s2, 4  ;;  %s8584_s25 = smov [#allocation11]   ;;  %s8718_s23 = int_to_ptr.vmem [resolvable:$true] %s531_s23 }
   0xf   : > { %p8237_p4 = pneg %p8712_p3  ;;  %s8726_s3 = sshll.u32 %s8584_s25, 4  ;;  %s567_s3 = int_to_ptr.vmem [resolvable:$true] %s8726_s3 }
  0x10   : > { %s8357_s27 = scalar_lea.vmem %s506_s22, 128  ;;  %p8365_p10 = scmp.lt.s32.totalorder %s506_s22, %s506_s22 }
  0x11   : > { %p8722_p5 = pnand %p8262_p2, %p8237_p4  ;;  %p8358_p7 = scmp.ne.s32.totalorder %s506_s22, %s8357_s27 }
  0x12   : > { %p8366_p11 = scmp.lt.s32.totalorder %s8357_s27, %s8357_s27 }
  0x13   : > { %p8730_p6 = pneg %p8722_p5 }
  0x14   : > { %p8367_p12 = por %p8366_p11, %p8365_p10 }
  0x15   : > { %p8360_p8 = pnand %p8358_p7, %p8730_p6 }
  0x17   : > { %p8361_p9 = pneg %p8360_p8 }
  0x19   : > { %p8368_p13 = pnand %p8367_p12, %p8361_p9 }
  0x1b   : > { %8371 = shalt.err (!%p8368_p13)
}
  0x1c   : > { %s8585_s28 = smov 16   ;;  %s10083_s29 = smov 1  }
  0x1d   : > { %8243 = dma.hbm_to_vmem [thread:$0]  (!%p8722_p5), %s10065_s5, 128, %s506_s22, [#allocation6], %s8585_s28, %s8585_s28, %s10083_s29  }
  0x1e   : > { %s8383_s1 = scalar_lea.vmem %s8718_s23, 1024  ;;  %p8391_p7 = scmp.lt.s32.totalorder %s8718_s23, %s8718_s23 }
  0x1f   : > { %p8384_p0 = scmp.ne.s32.totalorder %s8718_s23, %s8383_s1  ;;  %p8392_p8 = scmp.lt.s32.totalorder %s8383_s1, %s8383_s1 }
  0x21   : > { %p8386_p1 = pnand %p8384_p0, %p8730_p6  ;;  %p8393_p9 = por %p8392_p8, %p8391_p7 }
  0x23   : > { %p8387_p4 = pneg %p8386_p1 }
  0x25   : > { %p8394_p10 = pnand %p8393_p9, %p8387_p4 }
  0x27   : > { %8397 = shalt.err (!%p8394_p10)
}
  0x28   : > { %s8587_s2 = smov 128   ;;  %s8588_s25 = smov 8  }
  0x29   : > { %8249 = dma.hbm_to_vmem [thread:$0]  (!%p8722_p5), %s10067_s7, 1024, %s8718_s23, [#allocation9], %s8587_s2, %s8587_s2, %s8588_s25  }
  0x2a   : > { %s8409_s0 = scalar_lea.vmem %s567_s3, 512  ;;  %p8417_p0 = scmp.lt.s32.totalorder %s567_s3, %s567_s3 }
  0x2b   : > { %p8410_p11 = scmp.ne.s32.totalorder %s567_s3, %s8409_s0  ;;  %p8418_p1 = scmp.lt.s32.totalorder %s8409_s0, %s8409_s0 }
  0x2d   : > { %p8412_p12 = pnand %p8410_p11, %p8730_p6  ;;  %p8419_p4 = por %p8418_p1, %p8417_p0 }
  0x2f   : > { %p8413_p13 = pneg %p8412_p12 }
  0x31   : > { %p8420_p7 = pnand %p8419_p4, %p8413_p13 }
  0x33   : > { %8423 = shalt.err (!%p8420_p7)
}
  0x34   : > { %s8589_s30 = smov 256   ;;  %s8590_s23 = smov [#allocation3]  }
  0x35   : > { %8255 = dma.hbm_to_vmem [thread:$0]  (!%p8722_p5), %s10072_s12, 512, %s567_s3, [#allocation12], %s8589_s30, %s8589_s30, %s8585_s28  }
  0x36   : > { %s492_s2 = sshll.u32 %s8590_s23, 4  ;;  %s8591_s25 = smov [#allocation7]   ;;  %s493_s2 = int_to_ptr.vmem [resolvable:$true] %s492_s2 }
  0x37   : > { %s518_s27 = sshll.u32 %s8591_s25, 4  ;;  %s8435_s22 = scalar_lea.vmem %s493_s2, 128  ;;  %s519_s27 = int_to_ptr.vmem [resolvable:$true] %s518_s27 }
  0x38   : > { %p8436_p8 = scmp.ne.s32.totalorder %s493_s2, %s8435_s22  ;;  %p8443_p11 = scmp.lt.s32.totalorder %s493_s2, %s493_s2 }
  0x39   : > { %p8444_p12 = scmp.lt.s32.totalorder %s8435_s22, %s8435_s22 }
  0x3a   : > { %p8438_p9 = pnand %p8436_p8, %p8730_p6 }
  0x3b   : > { %p8445_p13 = por %p8444_p12, %p8443_p11 }
  0x3c   : > { %p8439_p10 = pneg %p8438_p9 }
  0x3e   : > { %p8446_p0 = pnand %p8445_p13, %p8439_p10 }
  0x40   : > { %8449 = shalt.err (!%p8446_p0)
}
  0x41   : > { %s10092_s29 = smov 1   ;;  %s8461_s30 = scalar_lea.vmem %s519_s27, 128 }
  0x42   : > { %8240 = dma.hbm_to_vmem [thread:$0]  (!%p8722_p5), %s10064_s4, 128, %s493_s2, [#allocation4], %s8585_s28, %s8585_s28, %s10092_s29  }
  0x43   : > { %p8462_p1 = scmp.ne.s32.totalorder %s519_s27, %s8461_s30  ;;  %p8469_p8 = scmp.lt.s32.totalorder %s519_s27, %s519_s27 }
  0x44   : > { %p8470_p9 = scmp.lt.s32.totalorder %s8461_s30, %s8461_s30 }
  0x45   : > { %p8464_p4 = pnand %p8462_p1, %p8730_p6 }
  0x46   : > { %p8471_p10 = por %p8470_p9, %p8469_p8 }
  0x47   : > { %p8465_p7 = pneg %p8464_p4 }
  0x49   : > { %p8472_p11 = pnand %p8471_p10, %p8465_p7 }
  0x4b   : > { %8475 = shalt.err (!%p8472_p11)
}
  0x4c   : > { %8246 = dma.hbm_to_vmem [thread:$0]  (!%p8722_p5), %s10066_s6, 128, %s519_s27, [#allocation6], %s8585_s28, %s8585_s28, %s10092_s29  }
  0x4d   : > { %s8592_s2 = smov [#allocation10]   ;;  %s8593_s22 = smov [#allocation13]  }
  0x4e   : > { %s550_s25 = sshll.u32 %s8592_s2, 4  ;;  %s582_s3 = sshll.u32 %s8593_s22, 4  ;;  %s551_s25 = int_to_ptr.vmem [resolvable:$true] %s550_s25  ;;  %s583_s3 = int_to_ptr.vmem [resolvable:$true] %s582_s3 }
  0x4f   : > { %s8487_s0 = scalar_lea.vmem %s551_s25, 32  ;;  %p8495_p1 = scmp.lt.s32.totalorder %s551_s25, %s551_s25 }
  0x50   : > { %p8488_p12 = scmp.ne.s32.totalorder %s551_s25, %s8487_s0  ;;  %p8496_p4 = scmp.lt.s32.totalorder %s8487_s0, %s8487_s0 }
  0x52   : > { %p8490_p13 = pnand %p8488_p12, %p8730_p6  ;;  %p8497_p7 = por %p8496_p4, %p8495_p1 }
  0x54   : > { %p8491_p0 = pneg %p8490_p13 }
  0x56   : > { %p8498_p8 = pnand %p8497_p7, %p8491_p0 }
  0x58   : > { %8501 = shalt.err (!%p8498_p8)
}
  0x59   : > { %8252 = dma.hbm_to_vmem [thread:$0]  (!%p8722_p5), %s10070_s10, 32, %s551_s25, [#allocation9], %s8585_s28, %s8585_s28, %s10092_s29  }
  0x5a   : > { %s8513_s1 = scalar_lea.vmem %s583_s3, 32  ;;  %p8521_p12 = scmp.lt.s32.totalorder %s583_s3, %s583_s3 }
  0x5b   : > { %p8514_p9 = scmp.ne.s32.totalorder %s583_s3, %s8513_s1  ;;  %p8522_p13 = scmp.lt.s32.totalorder %s8513_s1, %s8513_s1 }
  0x5d   : > { %p8516_p10 = pnand %p8514_p9, %p8730_p6  ;;  %p8523_p0 = por %p8522_p13, %p8521_p12 }
  0x5f   : > { %p8517_p11 = pneg %p8516_p10 }
  0x61   : > { %p8524_p1 = pnand %p8523_p0, %p8517_p11 }
  0x63   : > { %8527 = shalt.err (!%p8524_p1)
}
  0x64   : > { %8258 = dma.hbm_to_vmem [thread:$0]  (!%p8722_p5), %s10074_s14, 32, %s583_s3, [#allocation12], %s8585_s28, %s8585_s28, %s10092_s29  }
  0x65   : > { %s8594_s25 = smov [#allocation14]  }
  0x66   : > { %s602_s22 = sshll.u32 %s8594_s25, 4  ;;  %s603_s22 = int_to_ptr.vmem [resolvable:$true] %s602_s22 }
  0x67   : > { %s8539_s0 = scalar_lea.vmem %s603_s22, 16  ;;  %s8546_s27 = scalar_lea.vmem %s603_s22, 32 }
  0x68   : > { %p8540_p4 = scmp.ne.s32.totalorder %s603_s22, %s8539_s0  ;;  %p8547_p9 = scmp.lt.s32.totalorder %s603_s22, %s603_s22 }
  0x69   : > { %p8548_p10 = scmp.lt.s32.totalorder %s8546_s27, %s8539_s0 }
  0x6a   : > { %p8542_p7 = pnand %p8540_p4, %p8730_p6 }
  0x6b   : > { %p8549_p11 = por %p8548_p10, %p8547_p9 }
  0x6c   : > { %p8543_p8 = pneg %p8542_p7 }
  0x6e   : > { %p8550_p12 = pnand %p8549_p11, %p8543_p8 }
  0x70   : > { %8553 = shalt.err (!%p8550_p12)
}
  0x71   : > { %8261 = dma.hbm_to_vmem [thread:$0]  (!%p8722_p5), %s10077_s17, 16, %s603_s22, [#allocation15]  }
  0x72   : > { %625 = sbr.rel (%p8712_p3) target bundleno = 9718 (0x25f6), region = 96 }
  0x77   : > { %8559 = dma.done.wait (%p8262_p2), [#allocation4], 128  }
  0x78   : > { %8561 = vsyncadd (%p8262_p2), [#allocation4], 4294967168 }
  0x79   : > { %8563 = dma.done.wait (%p8262_p2), [#allocation6], 256  }
  0x7a   : > { %8565 = vsyncadd (%p8262_p2), [#allocation6], 4294967040 }
  0x7b   : > { %8567 = dma.done.wait (%p8262_p2), [#allocation9], 1056  }
  0x7c   : > { %8569 = vsyncadd (%p8262_p2), [#allocation9], 4294966240 }
  0x7d   : > { %8571 = dma.done.wait (%p8262_p2), [#allocation12], 544  }
  0x7e   : > { %8573 = vsyncadd (%p8262_p2), [#allocation12], 4294966752 }
  0x7f   : > { %8575 = dma.done.wait (%p8262_p2), [#allocation15], 16  }
  0x80   : > { %8577 = vsyncadd (%p8262_p2), [#allocation15], 4294967280  ;;  %p707_p3 = scmp.lt.s32.totalorder %s8707_s21, 1  ;;  %v8595_v1 = vmov 0.0   ;;  %vm8596_vm0 = vmmov 0   ;;  %s10093_s28 = sld [smem:[#allocation23_spill]] }
  0x81   : > { %7832 = vmatprep.subr.mxu1 %v8595_v1  ;;  %7821 = vmatprep.subr.mxu0 %v8595_v1  ;;  %s10094_s23 = sld [smem:[#allocation22_spill]]  ;;  %vm728_vm1 = vcmask 261120   ;;  %v7263_v11 = vld [vmem:[#allocation5] ss:$0 sm:$0xff]  ;;  %v7261_v12 = vld [vmem:[#allocation3] ss:$0 sm:$0xff] }
  0x82   : > { %7840 = vmatprep.mubr.msk.f32.mxu1 %vm8596_vm0, %v8595_v1  ;;  %7829 = vmatprep.mubr.msk.f32.mxu0 %vm8596_vm0, %v8595_v1  ;;  %s10098_s21 = smov (!%p707_p3, %s8707_s21), 1  ;;  %s10095_s3 = sld [smem:[#allocation21_spill]]  ;;  %vm964_vm2 = vcmask 64512   ;;  %v7265_v32 = vld [vmem:[#allocation7] ss:$0 sm:$0xff]  ;;  %vm7085_vm3 = vcmask 7168  }
  0x83   : > { %s7259_s18 = sshll.u32 %s10098_s21, 3  ;;  %s10096_s24 = sld [smem:[#allocation24_spill]]  ;;  %v7280_v51 = vld [vmem:[#allocation5 + $0x1] ss:$0 sm:$0xff]  ;;  %v7274_v52 = vld [vmem:[#allocation3 + $0x1] ss:$0 sm:$0xff] }
  0x84   : > { %s714_s30 = scalar_lea.vmem %s10079_s19, %s7259_s18 }
  0x86   : > { %v805_v2 = vld [vmem:[%s10093_s28 + $0x18] sm:$0xff]  ;;  %v804_v4 = vld [vmem:[%s10093_s28 + $0x10] sm:$0xff]  ;;  %v803_v6 = vld [vmem:[%s10093_s28 + $0x8] sm:$0xff] }
  0x87   : > { %v720_v3 = vld [vmem:[%s10094_s23 + $0x18] sm:$0xff]  ;;  %7833 = vmatpush3.msra.mxu1 %v805_v2  ;;  %v719_v5 = vld [vmem:[%s10094_s23 + $0x10] sm:$0xff]  ;;  %v718_v7 = vld [vmem:[%s10094_s23 + $0x8] sm:$0xff] }
  0x88   : > { %7822 = vmatpush3.msra.mxu0 %v720_v3  ;;  %7834 = vmatprep.subr.mxu1 %v8595_v1  ;;  %s710_s2 = scalar_lea.vmem %s10095_s3, %s7259_s18  ;;  %v802_v8 = vld [vmem:[%s10093_s28] sm:$0xff]  ;;  %v7273_v36 = vld [vmem:[%s10094_s23 + $0x38] sm:$0xff]  ;;  %v7272_v37 = vld [vmem:[%s10094_s23 + $0x30] sm:$0xff] }
  0x89   : > { %7823 = vmatprep.subr.mxu0 %v8595_v1  ;;  %7835 = vmatpush3.msra.mxu1 %v804_v4  ;;  %v717_v9 = vld [vmem:[%s10094_s23] sm:$0xff]  ;;  %v886_v19 = vld [vmem:[%s10096_s24 + $0x18] sm:$0xff]  ;;  %v885_v20 = vld [vmem:[%s10096_s24 + $0x10] sm:$0xff] }
  0x8a   : > { %7824 = vmatpush3.msra.mxu0 %v719_v5  ;;  %7836 = vmatprep.subr.mxu1 %v8595_v1  ;;  %v8878_v10 = vld [vmem:[%s710_s2] sm:$0xff]  ;;  %v884_v21 = vld [vmem:[%s10096_s24 + $0x8] sm:$0xff]  ;;  %v7279_v43 = vld [vmem:[%s10093_s28 + $0x38] sm:$0xff] }
  0x8b   : > { %7825 = vmatprep.subr.mxu0 %v8595_v1  ;;  %7837 = vmatpush3.msra.mxu1 %v803_v6  ;;  %v883_v22 = vld [vmem:[%s10096_s24] sm:$0xff]  ;;  %v7271_v38 = vld [vmem:[%s10094_s23 + $0x28] sm:$0xff]  ;;  %v7278_v44 = vld [vmem:[%s10093_s28 + $0x30] sm:$0xff] }
  0x8c   : > { %7826 = vmatpush3.msra.mxu0 %v718_v7  ;;  %7838 = vmatprep.subr.mxu1 %v8595_v1  ;;  %v7270_v39 = vld [vmem:[%s10094_s23 + $0x20] sm:$0xff]  ;;  %v7277_v45 = vld [vmem:[%s10093_s28 + $0x28] sm:$0xff]  ;;  %v7285_v57 = vld [vmem:[%s10096_s24 + $0x38] sm:$0xff] }
  0x8d   : > { %7827 = vmatprep.subr.mxu0 %v8595_v1  ;;  %7839 = vmatpush3.msra.mxu1 %v802_v8  ;;  %v7276_v46 = vld [vmem:[%s10093_s28 + $0x20] sm:$0xff]  ;;  %v7284_v58 = vld [vmem:[%s10096_s24 + $0x30] sm:$0xff]  ;;  %v7283_v59 = vld [vmem:[%s10096_s24 + $0x28] sm:$0xff] }
  0x8e   : > { %7828 = vmatpush3.msra.mxu0 %v717_v9  ;;  %7841 = vmatmul.mubr.msk.f32.vlgmr.msra.gmra.mxu1 %vm728_vm1, %v8878_v10  ;;  %v7282_v60 = vld [vmem:[%s10096_s24 + $0x20] sm:$0xff]  ;;  %v7286_v7 = vld [vmem:[#allocation7 + $0x1] ss:$0 sm:$0xff] }
  0x8f   : > { %7830 = vmatmul.mubr.msk.f32.vlgmr.msra.gmra.mxu0 %vm728_vm1, %v8878_v10  ;;  %7854 = vmatprep.subr.mxu1 %v8595_v1 }
  0x90   : > { %7856 = vmatprep.mubr.msk.f32.mxu1 %vm8596_vm0, %v8595_v1  ;;  %7843 = vmatprep.subr.mxu0 %v8595_v1 }
  0x91   : > { %7851 = vmatprep.mubr.msk.f32.mxu0 %vm8596_vm0, %v8595_v1  ;;  %7844 = vmatpush3.msra.mxu0 %v886_v19  ;;  %v7300_v19 = vld [vmem:[%s10093_s28 + $0x48] sm:$0xff] }
  0x92   : > { %7845 = vmatprep.subr.mxu0 %v8595_v1 }
  0x93   : > { %7846 = vmatpush3.msra.mxu0 %v885_v20  ;;  %v7299_v20 = vld [vmem:[%s10093_s28 + $0x40] sm:$0xff] }
  0x94   : > { %7847 = vmatprep.subr.mxu0 %v8595_v1 }
  0x95   : > { %7848 = vmatpush3.msra.mxu0 %v884_v21  ;;  %v7296_v21 = vld [vmem:[%s10094_s23 + $0x58] sm:$0xff] }
  0x96   : > { %7849 = vmatprep.subr.mxu0 %v8595_v1 }
  0x97   : > { %7850 = vmatpush3.msra.mxu0 %v883_v22 }
  0x98   : > { %7852 = vmatmul.mubr.msk.f32.vlgmr.msra.gmra.mxu0 %vm728_vm1, %v8878_v10  ;;  %7864 = vmatprep.subr.mxu0 %v8595_v1 }
  0x99   : > { %7872 = vmatprep.mubr.msk.f32.mxu0 %vm8596_vm0, %v8595_v1  ;;  %7865 = vmatpush3.msra.mxu0 %v7273_v36 }
  0x9a   : > { %7866 = vmatprep.subr.mxu0 %v8595_v1 }
  0x9b   : > { %7867 = vmatpush3.msra.mxu0 %v7272_v37 }
  0x9c   : > { %7868 = vmatprep.subr.mxu0 %v8595_v1 }
  0x9d   : > { %7869 = vmatpush3.msra.mxu0 %v7271_v38 }
  0x9e   : > { %7870 = vmatprep.subr.mxu0 %v8595_v1 }
  0x9f   : > { %7871 = vmatpush3.msra.mxu0 %v7270_v39  ;;  %v7308_v39 = vld [vmem:[%s10096_s24 + $0x58] sm:$0xff] }
  0xa0   : > { %7873 = vmatmul.mubr.msk.f32.vlgmr.msra.gmra.mxu0 %vm728_vm1, %v8878_v10  ;;  %7886 = vmatprep.subr.mxu0 %v8595_v1 }
  0xa1   : > { %7894 = vmatprep.mubr.msk.f32.mxu0 %vm8596_vm0, %v8595_v1  ;;  %7887 = vmatpush3.msra.mxu0 %v7285_v57 }
  0xa2   : > { %7888 = vmatprep.subr.mxu0 %v8595_v1 }
  0xa3   : > { %7889 = vmatpush3.msra.mxu0 %v7284_v58 }
  0xa4   : > { %7890 = vmatprep.subr.mxu0 %v8595_v1 }
  0xa5   : > { %7891 = vmatpush3.msra.mxu0 %v7283_v59 }
  0xa6   : > { %7892 = vmatprep.subr.mxu0 %v8595_v1 }
  0xa7   : > { %7893 = vmatpush3.msra.mxu0 %v7282_v60  ;;  %v7318_v60 = vld [vmem:[%s10094_s23 + $0x78] sm:$0xff] }
  0xa8   : > { %7895 = vmatmul.mubr.msk.f32.vlgmr.msra.gmra.mxu0 %vm728_vm1, %v8878_v10  ;;  %7907 = vmatprep.subr.mxu0 %v8595_v1 }
  0xa9   : > { %7909 = vmatprep.mubr.msk.f32.mxu0 %vm8596_vm0, %v8595_v1 }
 0x14e   : > { %v879_v13 = vpop.f32.mrf.mxu1 }
 0x14f   : > { %v798_v14 = vpop.f32.mrf.mxu0  ;;  %v880_v15 = vadd.f32 %v7263_v11, %v879_v13 }
 0x150   : > { %v799_v16 = vadd.f32 %v7261_v12, %v798_v14  ;;  %v7842_v17 = vpop.f32.mrf.mxu1  ;;  %v1538_v12 = vld [vmem:[#allocation8 + $0x8] sm:$0xff] }
 0x151   : > { %v7831_v18 = vpop.f32.mrf.mxu0  ;;  %7855 = vmatpush3.xpose.msk.msra.mxu1 %vm964_vm2, %v880_v15  ;;  %7908 = vmatpush3.msra.mxu0 %v1538_v12  ;;  %v7302_v17 = vld [vmem:[%s10093_s28 + $0x58] sm:$0xff] }
 0x152   : > { %7859 = vmatprep.subr.mxu1 %v8595_v1  ;;  %7917 = vmatprep.subr.mxu0 %v8595_v1  ;;  %v7301_v18 = vld [vmem:[%s10093_s28 + $0x50] sm:$0xff] }
 0x154   : > { %7857 = vmatmul.mubr.msk.f32.vlgmr.msra.gmra.mxu1 %vm964_vm2, %v799_v16  ;;  %v1126_v16 = vld [vmem:[#allocation8] sm:$0xff] }
 0x155   : > { %7861 = vmatprep.mubr.msk.f32.mxu1 %vm8596_vm0, %v8595_v1 }
 0x158   : > { %v960_v33 = vpop.f32.mrf.mxu0 }
 0x159   : > { %v961_v34 = vadd.f32 %v7265_v32, %v960_v33 }
 0x15a   : > { %v7853_v35 = vpop.f32.mrf.mxu0 }
 0x15b   : > { %7860 = vmatpush3.msra.mxu1 %v961_v34  ;;  %v7297_v35 = vld [vmem:[#allocation3 + $0x2] ss:$0 sm:$0xff] }
 0x15c   : > { %7875 = vmatprep.subr.mxu1 %v8595_v1 }
 0x160   : > { %v1206_v47 = vpop.f32.mrf.mxu0 }
 0x161   : > { %v1207_v55 = vadd.f32 %v7274_v52, %v1206_v47  ;;  %v7309_v52 = vld [vmem:[#allocation7 + $0x2] ss:$0 sm:$0xff] }
 0x162   : > { %v7874_v48 = vpop.f32.mrf.mxu0 }
 0x168   : > { %v1372_v8 = vpop.f32.mrf.mxu0 }
 0x169   : > { %v1373_v9 = vadd.f32 %v7286_v7, %v1372_v8 }
 0x16a   : > { %v7896_v11 = vpop.f32.mrf.mxu0 }
 0x214   : > { %v1037_v23 = vpop.f32.mrf.mxu1 }
 0x215   : > { %v1041_v24 = vmul.f32 0.35355338, %v1037_v23  ;;  %v7295_v23 = vld [vmem:[%s10094_s23 + $0x50] sm:$0xff] }
 0x216   : > { %v7858_v25 = vpop.f32.mrf.mxu1 }
 0x217   : > { %v1042_v26 = vsel %vm964_vm2, %v1041_v24, -inf  ;;  %v7294_v25 = vld [vmem:[%s10094_s23 + $0x48] sm:$0xff] }
 0x218   : > { %1043 = vmax.xlane.f32.xlu0 %v1042_v26 }
 0x2a1   : > { %v1044_v27 = vpop.xlane.xlu0 %1043 }
 0x2a2   : > { %v1045_v28 = vsub.f32 %v1041_v24, %v1044_v27  ;;  %v7293_v27 = vld [vmem:[%s10094_s23 + $0x40] sm:$0xff] }
 0x2a4   : > { %v1046_v29 = vmul.f32 1.442695, %v1045_v28 }
 0x2a6   : > { %8302 = vpow2.f32 %v1046_v29  ;;  %v7303_v29 = vld [vmem:[#allocation5 + $0x2] ss:$0 sm:$0xff] }
 0x2b3   : > { %v8303_v30 = vpop.eup %8302 }
 0x2b4   : > { %v1048_v31 = vsel %vm964_vm2, %v8303_v30, 0.0 }
 0x2b5   : > { %1049 = vadd.xlane.f32.xlu0 %v1048_v31 }
 0x33e   : > { %v1050_v40 = vpop.xlane.xlu0 %1049 }
 0x33f   : > { %8304 = vrcp.f32 %v1050_v40  ;;  %v7307_v40 = vld [vmem:[%s10096_s24 + $0x50] sm:$0xff] }
 0x34c   : > { %v8305_v41 = vpop.eup %8304 }
 0x34d   : > { %v1052_v42 = vmul.f32 %v8305_v41, %v8303_v30  ;;  %v7306_v41 = vld [vmem:[%s10096_s24 + $0x48] sm:$0xff] }
 0x34f   : > { %7862 = vmatmul.mubr.msk.f32.vlgmr.msra.gmra.mxu1 %vm964_vm2, %v1052_v42  ;;  %v7305_v42 = vld [vmem:[%s10096_s24 + $0x40] sm:$0xff] }
 0x350   : > { %7876 = vmatpush3.msra.mxu1 %v7279_v43  ;;  %7883 = vmatprep.mubr.msk.f32.mxu1 %vm8596_vm0, %v8595_v1 }
 0x351   : > { %7877 = vmatprep.subr.mxu1 %v8595_v1 }
 0x352   : > { %7878 = vmatpush3.msra.mxu1 %v7278_v44 }
 0x353   : > { %7879 = vmatprep.subr.mxu1 %v8595_v1 }
 0x354   : > { %7880 = vmatpush3.msra.mxu1 %v7277_v45 }
 0x355   : > { %7881 = vmatprep.subr.mxu1 %v8595_v1 }
 0x356   : > { %7882 = vmatpush3.msra.mxu1 %v7276_v46 }
 0x357   : > { %7884 = vmatmul.mubr.msk.f32.vlgmr.msra.gmra.mxu1 %vm728_vm1, %v8878_v10  ;;  %7897 = vmatprep.subr.mxu1 %v8595_v1 }
 0x358   : > { %7899 = vmatprep.mubr.msk.f32.mxu1 %vm8596_vm0, %v8595_v1 }
 0x40f   : > { %v1122_v49 = vpop.f32.mrf.mxu1 }
 0x411   : > { %v7863_v50 = vpop.f32.mrf.mxu1 }
 0x417   : > { %v1289_v53 = vpop.f32.mrf.mxu1 }
 0x418   : > { %v1290_v54 = vadd.f32 %v7280_v51, %v1289_v53 }
 0x419   : > { %v7885_v56 = vpop.f32.mrf.mxu1 }
 0x41a   : > { %7898 = vmatpush3.xpose.msk.msra.mxu1 %vm964_vm2, %v1290_v54  ;;  %v2096_v56 = vld [vmem:[#allocation8 + $0x10] sm:$0xff] }
 0x41b   : > { %7902 = vmatprep.subr.mxu1 %v8595_v1 }
 0x41d   : > { %7900 = vmatmul.mubr.msk.f32.vlgmr.msra.gmra.mxu1 %vm964_vm2, %v1207_v55 }
 0x41e   : > { %7904 = vmatprep.mubr.msk.f32.mxu1 %vm8596_vm0, %v8595_v1  ;;  %7903 = vmatpush3.msra.mxu1 %v1373_v9 }
 0x41f   : > { %7912 = vmatprep.subr.mxu1 %v8595_v1 }
 0x4dd   : > { %v1448_v61 = vpop.f32.mrf.mxu1 }
 0x4de   : > { %v1452_v62 = vmul.f32 0.35355338, %v1448_v61  ;;  %v7317_v61 = vld [vmem:[%s10094_s23 + $0x70] sm:$0xff] }
 0x4df   : > { %v7901_v63 = vpop.f32.mrf.mxu1 }
 0x4e0   : > { %v1453_v0 = vsel %vm964_vm2, %v1452_v62, -inf  ;;  %v7315_v63 = vld [vmem:[%s10094_s23 + $0x60] sm:$0xff] }
 0x4e1   : > { %1454 = vmax.xlane.f32.xlu1 %v1453_v0  ;;  %v7324_v0 = vld [vmem:[%s10093_s28 + $0x78] sm:$0xff] }
 0x56a   : > { %v1455_v2 = vpop.xlane.xlu1 %1454 }
 0x56b   : > { %v1456_v3 = vsub.f32 %v1452_v62, %v1455_v2  ;;  %v7316_v62 = vld [vmem:[%s10094_s23 + $0x68] sm:$0xff] }
 0x56d   : > { %v1457_v4 = vmul.f32 1.442695, %v1456_v3  ;;  %v7323_v3 = vld [vmem:[%s10093_s28 + $0x70] sm:$0xff] }
 0x56f   : > { %8306 = vpow2.f32 %v1457_v4 }
 0x57c   : > { %v8307_v5 = vpop.eup %8306 }
 0x57d   : > { %v1459_v6 = vsel %vm964_vm2, %v8307_v5, 0.0 }
 0x57e   : > { %1460 = vadd.xlane.f32.xlu1 %v1459_v6  ;;  %v7321_v6 = vld [vmem:[%s10093_s28 + $0x60] sm:$0xff] }
 0x607   : > { %v1461_v13 = vpop.xlane.xlu1 %1460 }
 0x608   : > { %8308 = vrcp.f32 %v1461_v13 }
 0x615   : > { %v8309_v14 = vpop.eup %8308 }
 0x616   : > { %v1463_v15 = vmul.f32 %v8309_v14, %v8307_v5  ;;  %v7322_v5 = vld [vmem:[%s10093_s28 + $0x68] sm:$0xff] }
 0x617   : > { %v7325_v14 = vld [vmem:[#allocation5 + $0x3] ss:$0 sm:$0xff] }
 0x618   : > { %7905 = vmatmul.mubr.msk.f32.vlgmr.msra.gmra.mxu1 %vm964_vm2, %v1463_v15  ;;  %v7319_v15 = vld [vmem:[#allocation3 + $0x3] ss:$0 sm:$0xff] }
 0x619   : > { %7913 = vmatpush3.msra.mxu1 %v1126_v16  ;;  %7914 = vmatprep.mubr.msk.f32.mxu1 %vm8596_vm0, %v8595_v1 }
 0x61a   : > { %7928 = vmatprep.subr.mxu1 %v8595_v1 }
 0x61c   : > { %7915 = vmatmul.mubr.msk.f32.vlgmr.msra.gmra.mxu1 %vm964_vm2, %v1122_v49 }
 0x61d   : > { %7929 = vmatpush3.msra.mxu1 %v7302_v17  ;;  %7936 = vmatprep.mubr.msk.f32.mxu1 %vm8596_vm0, %v8595_v1 }
 0x61e   : > { %7930 = vmatprep.subr.mxu1 %v8595_v1 }
 0x61f   : > { %7931 = vmatpush3.msra.mxu1 %v7301_v18 }
 0x620   : > { %7932 = vmatprep.subr.mxu1 %v8595_v1 }
 0x621   : > { %7933 = vmatpush3.msra.mxu1 %v7300_v19 }
 0x622   : > { %7934 = vmatprep.subr.mxu1 %v8595_v1 }
 0x623   : > { %7935 = vmatpush3.msra.mxu1 %v7299_v20  ;;  %v7330_v20 = vld [vmem:[%s10096_s24 + $0x78] sm:$0xff] }
 0x624   : > { %7937 = vmatmul.mubr.msk.f32.vlgmr.msra.gmra.mxu1 %vm728_vm1, %v8878_v10  ;;  %7950 = vmatprep.subr.mxu1 %v8595_v1 }
 0x625   : > { %7952 = vmatprep.mubr.msk.f32.mxu1 %vm8596_vm0, %v8595_v1 }
 0x6d8   : > { %v1533_v22 = vpop.f32.mrf.mxu1 }
 0x6d9   : > { %7910 = vmatmul.mubr.msk.f32.vlgmr.msra.gmra.mxu0 %vm964_vm2, %v1533_v22  ;;  %v7328_v22 = vld [vmem:[%s10096_s24 + $0x68] sm:$0xff] }
 0x6da   : > { %7918 = vmatpush3.msra.mxu0 %v7296_v21  ;;  %v7906_v24 = vpop.f32.mrf.mxu1  ;;  %7925 = vmatprep.mubr.msk.f32.mxu0 %vm8596_vm0, %v8595_v1  ;;  %v7329_v21 = vld [vmem:[%s10096_s24 + $0x70] sm:$0xff] }
 0x6db   : > { %7919 = vmatprep.subr.mxu0 %v8595_v1 }
 0x6dc   : > { %7920 = vmatpush3.msra.mxu0 %v7295_v23  ;;  %v9032_v26 = vpop.f32.mrf.mxu1  ;;  %v7327_v23 = vld [vmem:[%s10096_s24 + $0x60] sm:$0xff] }
 0x6dd   : > { %7921 = vmatprep.subr.mxu0 %v8595_v1 }
 0x6de   : > { %7922 = vmatpush3.msra.mxu0 %v7294_v25  ;;  %v7916_v28 = vpop.f32.mrf.mxu1 }
 0x6df   : > { %7923 = vmatprep.subr.mxu0 %v8595_v1 }
 0x6e0   : > { %7924 = vmatpush3.msra.mxu0 %v7293_v27 }
 0x6e1   : > { %7926 = vmatmul.mubr.msk.f32.vlgmr.msra.gmra.mxu0 %vm728_vm1, %v8878_v10  ;;  %7939 = vmatprep.subr.mxu0 %v8595_v1 }
 0x6e2   : > { %7947 = vmatprep.mubr.msk.f32.mxu0 %vm8596_vm0, %v8595_v1  ;;  %7940 = vmatpush3.msra.mxu0 %v7308_v39 }
 0x6e3   : > { %7941 = vmatprep.subr.mxu0 %v8595_v1 }
 0x6e4   : > { %v1847_v30 = vpop.f32.mrf.mxu1  ;;  %7942 = vmatpush3.msra.mxu0 %v7307_v40 }
 0x6e5   : > { %v1848_v31 = vadd.f32 %v7303_v29, %v1847_v30  ;;  %7943 = vmatprep.subr.mxu0 %v8595_v1 }
 0x6e6   : > { %v7938_v32 = vpop.f32.mrf.mxu1  ;;  %7944 = vmatpush3.msra.mxu0 %v7306_v41 }
 0x6e7   : > { %7951 = vmatpush3.xpose.msk.msra.mxu1 %vm964_vm2, %v1848_v31  ;;  %7945 = vmatprep.subr.mxu0 %v8595_v1 }
 0x6e8   : > { %7955 = vmatprep.subr.mxu1 %v8595_v1  ;;  %7946 = vmatpush3.msra.mxu0 %v7305_v42 }
 0x6e9   : > { %7948 = vmatmul.mubr.msk.f32.vlgmr.msra.gmra.mxu0 %vm728_vm1, %v8878_v10  ;;  %7960 = vmatprep.subr.mxu0 %v8595_v1 }
 0x6ea   : > { %7962 = vmatprep.mubr.msk.f32.mxu0 %vm8596_vm0, %v8595_v1  ;;  %7961 = vmatpush3.msra.mxu0 %v2096_v56  ;;  %v2721_v56 = vld [vmem:[%s10071_s11 + $0xc0] sm:$0xff] }
 0x6eb   : > { %7976 = vmatprep.subr.mxu0 %v8595_v1 }
 0x799   : > { %v9046_v33 = vpop.f32.mrf.mxu0 }
 0x79a   : > { %v1682_v9 = vadd.f32 %v9032_v26, %v9046_v33  ;;  %v7331_v33 = vld [vmem:[#allocation7 + $0x3] ss:$0 sm:$0xff] }
 0x79b   : > { %v7911_v34 = vpop.f32.mrf.mxu0 }
 0x7a1   : > { %v1764_v36 = vpop.f32.mrf.mxu0 }
 0x7a2   : > { %v1765_v37 = vadd.f32 %v7297_v35, %v1764_v36 }
 0x7a3   : > { %v7927_v38 = vpop.f32.mrf.mxu0 }
 0x7a4   : > { %7953 = vmatmul.mubr.msk.f32.vlgmr.msra.gmra.mxu1 %vm964_vm2, %v1765_v37  ;;  %v2582_v37 = vld [vmem:[#allocation8 + $0x18] sm:$0xff] }
 0x7a5   : > { %7957 = vmatprep.mubr.msk.f32.mxu1 %vm8596_vm0, %v8595_v1 }
 0x7a9   : > { %v1930_v53 = vpop.f32.mrf.mxu0 }
 0x7aa   : > { %v1931_v54 = vadd.f32 %v7309_v52, %v1930_v53 }
 0x7ab   : > { %v7949_v55 = vpop.f32.mrf.mxu0 }
 0x7ac   : > { %7956 = vmatpush3.msra.mxu1 %v1931_v54  ;;  %v2713_v55 = vld [vmem:[%s10071_s11 + $0x80] sm:$0xff] }
 0x7ad   : > { %7965 = vmatprep.subr.mxu1 %v8595_v1 }
 0x864   : > { %v2006_v43 = vpop.f32.mrf.mxu1 }
 0x865   : > { %v2010_v44 = vmul.f32 0.35355338, %v2006_v43 }
 0x866   : > { %v7954_v45 = vpop.f32.mrf.mxu1 }
 0x867   : > { %v2011_v46 = vsel %vm964_vm2, %v2010_v44, -inf }
 0x868   : > { %2012 = vmax.xlane.f32.xlu0 %v2011_v46  ;;  %v7337_v46 = vld [vmem:[%s10068_s8] ss:$0 sm:$0xff] }
 0x8f1   : > { %v2013_v47 = vpop.xlane.xlu0 %2012 }
 0x8f2   : > { %v2014_v48 = vsub.f32 %v2010_v44, %v2013_v47 }
 0x8f4   : > { %v2015_v49 = vmul.f32 1.442695, %v2014_v48 }
 0x8f6   : > { %8310 = vpow2.f32 %v2015_v49 }
 0x903   : > { %v8311_v50 = vpop.eup %8310 }
 0x904   : > { %v2017_v51 = vsel %vm964_vm2, %v8311_v50, 0.0 }
 0x905   : > { %2018 = vadd.xlane.f32.xlu1 %v2017_v51 }
 0x98e   : > { %v2019_v57 = vpop.xlane.xlu1 %2018 }
 0x98f   : > { %8312 = vrcp.f32 %v2019_v57  ;;  %v7357_v57 = vcombine.high %v2713_v55, %v2721_v56 }
 0x99c   : > { %v8313_v58 = vpop.eup %8312 }
 0x99d   : > { %v2021_v59 = vmul.f32 %v8313_v58, %v8311_v50  ;;  %v2722_v58 = vld [vmem:[%s10071_s11 + $0xc8] sm:$0xff] }
 0x99f   : > { %7958 = vmatmul.mubr.msk.f32.vlgmr.msra.gmra.mxu1 %vm964_vm2, %v2021_v59  ;;  %v7356_v59 = vcombine.low %v2713_v55, %v2721_v56 }
 0x9a0   : > { %7973 = vmatprep.mubr.msk.f32.mxu1 %vm8596_vm0, %v8595_v1  ;;  %7966 = vmatpush3.msra.mxu1 %v7318_v60 }
 0x9a1   : > { %7967 = vmatprep.subr.mxu1 %v8595_v1 }
 0x9a2   : > { %7968 = vmatpush3.msra.mxu1 %v7317_v61 }
 0x9a3   : > { %7969 = vmatprep.subr.mxu1 %v8595_v1 }
 0x9a4   : > { %7970 = vmatpush3.msra.mxu1 %v7316_v62  ;;  %v2697_v62 = vld [vmem:[%s10071_s11] sm:$0xff] }
 0x9a5   : > { %7971 = vmatprep.subr.mxu1 %v8595_v1 }
 0x9a6   : > { %7972 = vmatpush3.msra.mxu1 %v7315_v63  ;;  %v2705_v63 = vld [vmem:[%s10071_s11 + $0x40] sm:$0xff] }
 0x9a7   : > { %7974 = vmatmul.mubr.msk.f32.vlgmr.msra.gmra.mxu1 %vm728_vm1, %v8878_v10  ;;  %7987 = vmatprep.subr.mxu1 %v8595_v1 }
 0x9a8   : > { %7995 = vmatprep.mubr.msk.f32.mxu1 %vm8596_vm0, %v8595_v1  ;;  %7988 = vmatpush3.msra.mxu1 %v7330_v20 }
 0x9a9   : > { %7989 = vmatprep.subr.mxu1 %v8595_v1 }
 0x9aa   : > { %7990 = vmatpush3.msra.mxu1 %v7329_v21  ;;  %v7338_v21 = vld [vmem:[%s10069_s9] ss:$0 sm:$0xff] }
 0x9ab   : > { %7991 = vmatprep.subr.mxu1 %v8595_v1 }
 0x9ac   : > { %7992 = vmatpush3.msra.mxu1 %v7328_v22 }
 0x9ad   : > { %7993 = vmatprep.subr.mxu1 %v8595_v1 }
 0x9ae   : > { %7994 = vmatpush3.msra.mxu1 %v7327_v23  ;;  %v7339_v23 = vld [vmem:[#allocation10] ss:$0 sm:$0xff] }
 0x9af   : > { %7996 = vmatmul.mubr.msk.f32.vlgmr.msra.gmra.mxu1 %vm728_vm1, %v8878_v10  ;;  %8008 = vmatprep.subr.mxu1 %v8595_v1 }
 0x9b0   : > { %8010 = vmatprep.mubr.msk.f32.mxu1 %vm8596_vm0, %v8595_v1  ;;  %8009 = vmatpush3.msra.mxu1 %v2582_v37 }
 0xa5f   : > { %v2091_v2 = vpop.f32.mrf.mxu1 }
 0xa60   : > { %7963 = vmatmul.mubr.msk.f32.vlgmr.msra.gmra.mxu0 %vm964_vm2, %v2091_v2  ;;  %v7341_v2 = vcombine.high %v2697_v62, %v2705_v63 }
 0xa61   : > { %7977 = vmatpush3.msra.mxu0 %v7324_v0  ;;  %v7959_v4 = vpop.f32.mrf.mxu1  ;;  %7984 = vmatprep.mubr.msk.f32.mxu0 %vm8596_vm0, %v8595_v1  ;;  %v2698_v0 = vld [vmem:[%s10071_s11 + $0x8] sm:$0xff] }
 0xa62   : > { %7978 = vmatprep.subr.mxu0 %v8595_v1  ;;  %v7340_v4 = vcombine.low %v2697_v62, %v2705_v63 }
 0xa63   : > { %7979 = vmatpush3.msra.mxu0 %v7323_v3  ;;  %v2706_v3 = vld [vmem:[%s10071_s11 + $0x48] sm:$0xff] }
 0xa64   : > { %7980 = vmatprep.subr.mxu0 %v8595_v1 }
 0xa65   : > { %7981 = vmatpush3.msra.mxu0 %v7322_v5  ;;  %v7342_v5 = vcombine.low %v2698_v0, %v2706_v3 }
 0xa66   : > { %7982 = vmatprep.subr.mxu0 %v8595_v1 }
 0xa67   : > { %7983 = vmatpush3.msra.mxu0 %v7321_v6  ;;  %v2250_v7 = vpop.f32.mrf.mxu1  ;;  %v7343_v6 = vcombine.high %v2698_v0, %v2706_v3  ;;  %v3352_v0 = vld [vmem:[%s10073_s13 + $0x80] sm:$0xff]  ;;  %v3353_v3 = vld [vmem:[%s10073_s13 + $0x88] sm:$0xff] }
 0xa68   : > { %7985 = vmatmul.mubr.msk.f32.vlgmr.msra.gmra.mxu0 %vm728_vm1, %v8878_v10  ;;  %7998 = vmatprep.subr.mxu0 %v8595_v1  ;;  %v2251_v18 = vadd.f32 %v7319_v15, %v2250_v7  ;;  %v2715_v7 = vld [vmem:[%s10071_s11 + $0x90] sm:$0xff] }
 0xa69   : > { %8000 = vmatprep.mubr.msk.f32.mxu0 %vm8596_vm0, %v8595_v1  ;;  %v7975_v8 = vpop.f32.mrf.mxu1 }
 0xa6a   : > { %v2723_v8 = vld [vmem:[%s10071_s11 + $0xd0] sm:$0xff] }
 0xa6f   : > { %v2416_v34 = vpop.f32.mrf.mxu1 }
 0xa70   : > { %v2417_v35 = vadd.f32 %v7331_v33, %v2416_v34  ;;  %v2717_v33 = vld [vmem:[%s10071_s11 + $0xa0] sm:$0xff] }
 0xa71   : > { %v7997_v36 = vpop.f32.mrf.mxu1  ;;  %v2725_v34 = vld [vmem:[%s10071_s11 + $0xe0] sm:$0xff] }
 0xa72   : > { %v2726_v36 = vld [vmem:[%s10071_s11 + $0xe8] sm:$0xff] }
 0xb20   : > { %v2166_v11 = vpop.f32.mrf.mxu0 }
 0xb21   : > { %v2170_v12 = vadd.f32 %v2166_v11, %v1682_v9  ;;  %v2716_v9 = vld [vmem:[%s10071_s11 + $0x98] sm:$0xff]  ;;  %v7361_v11 = vcombine.high %v2715_v7, %v2723_v8 }
 0xb22   : > { %v7964_v13 = vpop.f32.mrf.mxu0 }
 0xb23   : > { %v8597_v13 = vmov 0  }
 0xb28   : > { %v2333_v16 = vpop.f32.mrf.mxu0 }
 0xb29   : > { %v2334_v17 = vadd.f32 %v7325_v14, %v2333_v16  ;;  %v7360_v14 = vcombine.low %v2715_v7, %v2723_v8 }
 0xb2a   : > { %v7986_v19 = vpop.f32.mrf.mxu0 }
 0xb2b   : > { %7999 = vmatpush3.xpose.msk.msra.mxu0 %vm964_vm2, %v2334_v17 }
 0xb2c   : > { %8003 = vmatprep.subr.mxu0 %v8595_v1 }
 0xb2e   : > { %8001 = vmatmul.mubr.msk.f32.vlgmr.msra.gmra.mxu0 %vm964_vm2, %v2251_v18 }
 0xb2f   : > { %8005 = vmatprep.mubr.msk.f32.mxu0 %vm8596_vm0, %v8595_v1  ;;  %8004 = vmatpush3.msra.mxu0 %v2417_v35  ;;  %v2718_v35 = vld [vmem:[%s10071_s11 + $0xa8] sm:$0xff] }
 0xb30   : > { %2988 = vmatprep.subr.bf16.mxu0 %v7357_v57  ;;  %v2711_v57 = vld [vmem:[%s10071_s11 + $0x70] sm:$0xff] }
 0xbee   : > { %v2492_v24 = vpop.f32.mrf.mxu0 }
 0xbef   : > { %v2496_v25 = vmul.f32 0.35355338, %v2492_v24 }
 0xbf0   : > { %v8002_v26 = vpop.f32.mrf.mxu0 }
 0xbf1   : > { %v2497_v27 = vsel %vm964_vm2, %v2496_v25, -inf  ;;  %v2707_v26 = vld [vmem:[%s10071_s11 + $0x50] sm:$0xff] }
 0xbf2   : > { %2498 = vmax.xlane.f32.xlu0 %v2497_v27  ;;  %v2700_v27 = vld [vmem:[%s10071_s11 + $0x18] sm:$0xff] }
 0xc7b   : > { %v2499_v28 = vpop.xlane.xlu0 %2498 }
 0xc7c   : > { %v2500_v29 = vsub.f32 %v2496_v25, %v2499_v28  ;;  %v2699_v25 = vld [vmem:[%s10071_s11 + $0x10] sm:$0xff]  ;;  %v2708_v28 = vld [vmem:[%s10071_s11 + $0x58] sm:$0xff] }
 0xc7d   : > { %v7344_v37 = vcombine.low %v2699_v25, %v2707_v26 }
 0xc7e   : > { %v2501_v30 = vmul.f32 1.442695, %v2500_v29 }
 0xc80   : > { %8314 = vpow2.f32 %v2501_v30 }
 0xc8d   : > { %v8315_v31 = vpop.eup %8314 }
 0xc8e   : > { %v2503_v32 = vsel %vm964_vm2, %v8315_v31, 0.0 }
 0xc8f   : > { %2504 = vadd.xlane.f32.xlu1 %v2503_v32  ;;  %v7347_v32 = vcombine.high %v2700_v27, %v2708_v28 }
 0xd18   : > { %v2505_v38 = vpop.xlane.xlu1 %2504 }
 0xd19   : > { %8316 = vrcp.f32 %v2505_v38  ;;  %v7346_v38 = vcombine.low %v2700_v27, %v2708_v28 }
 0xd26   : > { %v8317_v39 = vpop.eup %8316 }
 0xd27   : > { %v2507_v40 = vmul.f32 %v8317_v39, %v8315_v31  ;;  %v7345_v31 = vcombine.high %v2699_v25, %v2707_v26  ;;  %v7365_v39 = vcombine.high %v2717_v33, %v2725_v34  ;;  %v3363_v25 = vld [vmem:[%s10073_s13 + $0xd8] sm:$0xff] }
 0xd29   : > { %8006 = vmatmul.mubr.msk.f32.vlgmr.msra.gmra.mxu0 %vm964_vm2, %v2507_v40  ;;  %v7367_v40 = vcombine.high %v2718_v35, %v2726_v36 }
 0xd2a   : > { %2989 = vmatpush1.bf16.msra.mxu0 %v7356_v59  ;;  %3008 = vmatprep.mubr.bf16.mxu0 %v8597_v13  ;;  %v2712_v59 = vld [vmem:[%s10071_s11 + $0x78] sm:$0xff] }
 0xd2b   : > { %2990 = vmatprep.subr.bf16.mxu0 %v7341_v2  ;;  %v3360_v2 = vld [vmem:[%s10073_s13 + $0xc0] sm:$0xff] }
 0xd2c   : > { %v7398_v7 = vcombine.high %v3352_v0, %v3360_v2 }
 0xd2e   : > { %2991 = vmatpush1.bf16.msra.mxu0 %v7340_v4  ;;  %v3361_v4 = vld [vmem:[%s10073_s13 + $0xc8] sm:$0xff] }
 0xd2f   : > { %3070 = vmatprep.subr.bf16.mxu0 %v7361_v11  ;;  %v7400_v8 = vcombine.high %v3353_v3, %v3361_v4  ;;  %v7399_v11 = vcombine.low %v3353_v3, %v3361_v4 }
 0xde9   : > { %v2577_v41 = vpop.f32.mrf.mxu0 }
 0xdea   : > { %8011 = vmatmul.mubr.msk.f32.vlgmr.msra.gmra.mxu1 %vm964_vm2, %v2577_v41  ;;  %v2701_v41 = vld [vmem:[%s10071_s11 + $0x20] sm:$0xff] }
 0xdeb   : > { %v8007_v42 = vpop.f32.mrf.mxu0  ;;  %3049 = vmatprep.mubr.bf16.mxu1 %v8597_v13 }
 0xdec   : > { %v2709_v42 = vld [vmem:[%s10071_s11 + $0x60] sm:$0xff] }
 0xeaa   : > { %v2652_v43 = vpop.f32.mrf.mxu1 }
 0xeab   : > { %v2656_v44 = vadd.f32 %v2652_v43, %v2170_v12  ;;  %v2724_v12 = vld [vmem:[%s10071_s11 + $0xd8] sm:$0xff]  ;;  %v2702_v43 = vld [vmem:[%s10071_s11 + $0x28] sm:$0xff] }
 0xeac   : > { %v8012_v45 = vpop.f32.mrf.mxu1  ;;  %v7362_v15 = vcombine.low %v2716_v9, %v2724_v12  ;;  %v7363_v16 = vcombine.high %v2716_v9, %v2724_v12  ;;  %v7397_v9 = vcombine.low %v3352_v0, %v3360_v2  ;;  %v3336_v12 = vld [vmem:[%s10073_s13] sm:$0xff] }
 0xead   : > { %v2657_v47 = vadd.f32 %v2656_v44, %v8878_v10  ;;  %v2714_v10 = vld [vmem:[%s10071_s11 + $0x88] sm:$0xff]  ;;  %v7364_v45 = vcombine.low %v2717_v33, %v2725_v34  ;;  %v9331_v34 = vld [vmem:[#allocation11] sm:$0xff] }
 0xeae   : > { %v7358_v60 = vcombine.low %v2714_v10, %v2722_v58  ;;  %v7359_v61 = vcombine.high %v2714_v10, %v2722_v58  ;;  %v2710_v44 = vld [vmem:[%s10071_s11 + $0x68] sm:$0xff]  ;;  %v2703_v10 = vld [vmem:[%s10071_s11 + $0x30] sm:$0xff]  ;;  %v2704_v58 = vld [vmem:[%s10071_s11 + $0x38] sm:$0xff] }
 0xeaf   : > { %v2665_v48 = vadd.f32 %v7337_v46, %v2657_v47  ;;  %v7366_v46 = vcombine.low %v2718_v35, %v2726_v36  ;;  %v7349_v47 = vcombine.high %v2701_v41, %v2709_v42  ;;  %v7353_v62 = vcombine.high %v2703_v10, %v2711_v57 }
 0xeb0   : > { %3029 = vmatprep.subr.bf16.mxu1 %v7359_v61  ;;  %v7355_v63 = vcombine.high %v2704_v58, %v2712_v59 }
 0xeb1   : > { %v2668_v49 = vsel %vm728_vm1, %v2665_v48, 0.0  ;;  %3030 = vmatpush1.bf16.msra.mxu1 %v7358_v60 }
 0xeb2   : > { %2669 = vadd.xlane.f32.xlu0 %v2668_v49  ;;  %3031 = vmatprep.subr.bf16.mxu1 %v7343_v6  ;;  %v2719_v49 = vld [vmem:[%s10071_s11 + $0xb0] sm:$0xff]  ;;  %v7354_v6 = vcombine.low %v2704_v58, %v2712_v59  ;;  %v3339_v58 = vld [vmem:[%s10073_s13 + $0x18] sm:$0xff] }
 0xeb3   : > { %v3347_v59 = vld [vmem:[%s10073_s13 + $0x58] sm:$0xff] }
 0xeb5   : > { %3032 = vmatpush1.bf16.msra.mxu1 %v7342_v5  ;;  %v7352_v5 = vcombine.low %v2703_v10, %v2711_v57  ;;  %v3346_v57 = vld [vmem:[%s10073_s13 + $0x50] sm:$0xff] }
 0xeb6   : > { %3111 = vmatprep.subr.bf16.mxu1 %v7363_v16 }
 0xf3b   : > { %v2670_v50 = vpop.xlane.xlu0 %2669 }
 0xf3c   : > { %v2672_v51 = vmul.f32 0.03125, %v2670_v50  ;;  %v2727_v50 = vld [vmem:[%s10071_s11 + $0xf0] sm:$0xff] }
 0xf3d   : > { %v7369_v55 = vcombine.high %v2719_v49, %v2727_v50  ;;  %v7368_v60 = vcombine.low %v2719_v49, %v2727_v50 }
 0xf3e   : > { %v2673_v52 = vsub.f32 %v2665_v48, %v2672_v51  ;;  %v7351_v48 = vcombine.high %v2702_v43, %v2710_v44  ;;  %v2720_v51 = vld [vmem:[%s10071_s11 + $0xb8] sm:$0xff] }
 0xf40   : > { %v2674_v53 = vmul.f32 %v2673_v52, %v2673_v52 }
 0xf42   : > { %v2675_v54 = vsel %vm728_vm1, %v2674_v53, 0.0  ;;  %v7348_v53 = vcombine.low %v2701_v41, %v2709_v42 }
 0xf43   : > { %2676 = vadd.xlane.f32.xlu1 %v2675_v54  ;;  %v7350_v54 = vcombine.low %v2702_v43, %v2710_v44 }
 0xfcc   : > { %v2677_v17 = vpop.xlane.xlu1 %2676 }
 0xfcd   : > { %v2678_v18 = vmul.f32 0.03125, %v2677_v17  ;;  %v3345_v17 = vld [vmem:[%s10073_s13 + $0x48] sm:$0xff] }
 0xfcf   : > { %v2679_v19 = vadd.f32 1e-05, %v2678_v18 }
 0xfd1   : > { %8318 = vrsqrt.f32 %v2679_v19 }
 0xfde   : > { %v8319_v20 = vpop.eup %8318 }
 0xfdf   : > { %v2681_v22 = vmul.f32 %v8319_v20, %v2673_v52  ;;  %v2728_v52 = vld [vmem:[%s10071_s11 + $0xf8] sm:$0xff] }
 0xfe0   : > { %v7371_v56 = vcombine.high %v2720_v51, %v2728_v52  ;;  %v7370_v61 = vcombine.low %v2720_v51, %v2728_v52 }
 0xfe1   : > { %v2688_v24 = vmul.f32 %v7338_v21, %v2681_v22  ;;  %v9314_v21 = vld [vmem:[%s10073_s13 + $0x90] sm:$0xff] }
 0xfe2   : > { %v3362_v22 = vld [vmem:[%s10073_s13 + $0xd0] sm:$0xff] }
 0xfe3   : > { %v9211_v29 = vadd.f32 %v7339_v23, %v2688_v24  ;;  %v3355_v23 = vld [vmem:[%s10073_s13 + $0x98] sm:$0xff]  ;;  %v7402_v24 = vcombine.high %v9314_v21, %v3362_v22  ;;  %v7401_v26 = vcombine.low %v9314_v21, %v3362_v22  ;;  %v3356_v21 = vld [vmem:[%s10073_s13 + $0xa0] sm:$0xff] }
 0xfe4   : > { %v7403_v27 = vcombine.low %v3355_v23, %v3363_v25  ;;  %v7404_v28 = vcombine.high %v3355_v23, %v3363_v25  ;;  %v3357_v25 = vld [vmem:[%s10073_s13 + $0xa8] sm:$0xff] }
 0xfe5   : > { %v9215_v30 = vpack.c.bf16 %v9211_v29, %v9211_v29 }
 0xfe7   : > { %7372 = vmatmul.mubr.msk.bf16.vlgmr.msra.gmra.mxu0 %vm728_vm1, %v9215_v30  ;;  %7373 = vmatmul.mubr.msk.bf16.vlgmr.msra.gmra.mxu1 %vm728_vm1, %v9215_v30 }
 0xfe8   : > { %3071 = vmatpush1.bf16.msra.mxu0 %v7360_v14  ;;  %3112 = vmatpush1.bf16.msra.mxu1 %v7362_v15  ;;  %v3344_v14 = vld [vmem:[%s10073_s13 + $0x40] sm:$0xff]  ;;  %v3337_v15 = vld [vmem:[%s10073_s13 + $0x8] sm:$0xff] }
 0xfe9   : > { %3072 = vmatprep.subr.bf16.mxu0 %v7345_v31  ;;  %3113 = vmatprep.subr.bf16.mxu1 %v7347_v32  ;;  %v7382_v16 = vcombine.high %v3336_v12, %v3344_v14  ;;  %v7381_v18 = vcombine.low %v3336_v12, %v3344_v14  ;;  %v7383_v19 = vcombine.low %v3337_v15, %v3345_v17 }
 0xfea   : > { %3090 = vmatprep.mubr.bf16.mxu0 %v8597_v13  ;;  %3131 = vmatprep.mubr.bf16.mxu1 %v8597_v13  ;;  %v7384_v20 = vcombine.high %v3337_v15, %v3345_v17 }
 0xfec   : > { %3073 = vmatpush1.bf16.msra.mxu0 %v7344_v37  ;;  %3114 = vmatpush1.bf16.msra.mxu1 %v7346_v38 }
 0xfed   : > { %3152 = vmatprep.subr.bf16.mxu0 %v7365_v39  ;;  %3193 = vmatprep.subr.bf16.mxu1 %v7367_v40 }
 0xfef   : > { %7374 = vmatmul.mubr.msk.bf16.vlgmr.msra.gmra.mxu0 %vm728_vm1, %v9215_v30  ;;  %7375 = vmatmul.mubr.msk.bf16.vlgmr.msra.gmra.mxu1 %vm728_vm1, %v9215_v30 }
 0xff0   : > { %3153 = vmatpush1.bf16.msra.mxu0 %v7364_v45  ;;  %3194 = vmatpush1.bf16.msra.mxu1 %v7366_v46 }
 0xff1   : > { %3154 = vmatprep.subr.bf16.mxu0 %v7349_v47  ;;  %3195 = vmatprep.subr.bf16.mxu1 %v7351_v48 }
 0xff2   : > { %3172 = vmatprep.mubr.bf16.mxu0 %v8597_v13  ;;  %3213 = vmatprep.mubr.bf16.mxu1 %v8597_v13 }
 0xff4   : > { %3155 = vmatpush1.bf16.msra.mxu0 %v7348_v53  ;;  %3196 = vmatpush1.bf16.msra.mxu1 %v7350_v54 }
 0xff5   : > { %3234 = vmatprep.subr.bf16.mxu0 %v7369_v55  ;;  %3275 = vmatprep.subr.bf16.mxu1 %v7371_v56  ;;  %v9352_v55 = vld [vmem:[%s10073_s13 + $0x10] sm:$0xff] }
 0xff7   : > { %7376 = vmatmul.mubr.msk.bf16.vlgmr.msra.gmra.mxu0 %vm728_vm1, %v9215_v30  ;;  %7377 = vmatmul.mubr.msk.bf16.vlgmr.msra.gmra.mxu1 %vm728_vm1, %v9215_v30 }
 0xff8   : > { %3235 = vmatpush1.bf16.msra.mxu0 %v7368_v60  ;;  %3276 = vmatpush1.bf16.msra.mxu1 %v7370_v61 }
 0xff9   : > { %3236 = vmatprep.subr.bf16.mxu0 %v7353_v62  ;;  %3277 = vmatprep.subr.bf16.mxu1 %v7355_v63 }
 0xffa   : > { %3254 = vmatprep.mubr.bf16.mxu0 %v8597_v13  ;;  %3295 = vmatprep.mubr.bf16.mxu1 %v8597_v13 }
 0xffc   : > { %3237 = vmatpush1.bf16.msra.mxu0 %v7352_v5  ;;  %3278 = vmatpush1.bf16.msra.mxu1 %v7354_v6 }
 0xffd   : > { %3547 = vmatprep.subr.bf16.mxu0 %v7398_v7  ;;  %3587 = vmatprep.subr.bf16.mxu1 %v7400_v8 }
 0xfff   : > { %7378 = vmatmul.mubr.msk.bf16.vlgmr.msra.gmra.mxu0 %vm728_vm1, %v9215_v30  ;;  %7379 = vmatmul.mubr.msk.bf16.vlgmr.msra.gmra.mxu1 %vm728_vm1, %v9215_v30  ;;  %v2733_v30 = vlaneseq }
0x1000   : > { %3548 = vmatpush1.bf16.xpose.msra.mxu0 %v7397_v9  ;;  %3588 = vmatpush1.bf16.xpose.msra.mxu1 %v7399_v11  ;;  %v7386_v9 = vcombine.high %v9352_v55, %v3346_v57  ;;  %v7388_v11 = vcombine.high %v3339_v58, %v3347_v59 }
0x1001   : > { %3549 = vmatprep.subr.bf16.mxu0 %v7382_v16  ;;  %3589 = vmatprep.subr.bf16.mxu1 %v7384_v20  ;;  %v2734_v31 = vshrl.u32 %v2733_v30, 7  ;;  %v9388_v30 = vld [vmem:[#allocation11 + $0x8] sm:$0xff] }
0x1003   : > { %v9327_v32 = vsub.s32 0, %v2734_v31  ;;  %v9329_v33 = vsub.s32 2, %v2734_v31  ;;  %v9333_v35 = vsub.s32 1, %v2734_v31  ;;  %v9335_v36 = vsub.s32 3, %v2734_v31 }
0x1004   : > { %v9345_v49 = vsub.s32 5, %v2734_v31  ;;  %v9347_v50 = vsub.s32 7, %v2734_v31  ;;  %v9363_v62 = vsub.s32 4, %v2734_v31  ;;  %v9365_v63 = vsub.s32 6, %v2734_v31 }
0x1005   : > { %v2736_v37 = vrot.slane %v9331_v34, %v9327_v32  ;;  %v2744_v38 = vrot.slane %v9331_v34, %v9329_v33  ;;  %v2740_v39 = vrot.slane %v9331_v34, %v9333_v35  ;;  %v2748_v40 = vrot.slane %v9331_v34, %v9335_v36 }
0x1006   : > { %v2756_v3 = vrot.slane %v9331_v34, %v9345_v49  ;;  %v2764_v4 = vrot.slane %v9331_v34, %v9347_v50  ;;  %v2752_v17 = vrot.slane %v9331_v34, %v9363_v62  ;;  %v7385_v31 = vcombine.low %v9352_v55, %v3346_v57 }
0x1008   : > { %3550 = vmatpush1.bf16.xpose.msra.mxu0 %v7381_v18  ;;  %3590 = vmatpush1.bf16.xpose.msra.mxu1 %v7383_v19  ;;  %v2760_v18 = vrot.slane %v9331_v34, %v9365_v63  ;;  %v7387_v34 = vcombine.low %v3339_v58, %v3347_v59  ;;  %v3340_v58 = vld [vmem:[%s10073_s13 + $0x20] sm:$0xff] }
0x1009   : > { %3627 = vmatprep.subr.bf16.mxu0 %v7402_v24  ;;  %3667 = vmatprep.subr.bf16.mxu1 %v7404_v28  ;;  %v3364_v24 = vld [vmem:[%s10073_s13 + $0xe0] sm:$0xff] }
0x10a7   : > { %v3010_v41 = vpop.f32.mrf.mxu0  ;;  %v3051_v42 = vpop.f32.mrf.mxu1 }
0x10a8   : > { %v3011_v43 = vadd.f32 %v3010_v41, %v2736_v37  ;;  %v3052_v44 = vadd.f32 %v3051_v42, %v2744_v38 }
0x10a9   : > { %v3012_v45 = vpop.f32.mrf.mxu0  ;;  %v3053_v46 = vpop.f32.mrf.mxu1 }
0x10aa   : > { %v3013_v47 = vadd.f32 %v3012_v45, %v2740_v39  ;;  %v3054_v48 = vadd.f32 %v3053_v46, %v2748_v40  ;;  %v3304_v51 = vmax.f32 %v3011_v43, 0.0  ;;  %v3306_v52 = vmax.f32 %v3052_v44, 0.0 }
0x10ab   : > { %v3014_v53 = vpop.f32.mrf.mxu0  ;;  %v3055_v54 = vpop.f32.mrf.mxu1  ;;  %v2772_v39 = vrot.slane %v9388_v30, %v9333_v35  ;;  %v2780_v40 = vrot.slane %v9388_v30, %v9335_v36  ;;  %v7406_v45 = vcombine.high %v3356_v21, %v3364_v24 }
0x10ac   : > { %v3305_v56 = vmax.f32 %v3013_v47, 0.0  ;;  %v3307_v10 = vmax.f32 %v3054_v48, 0.0  ;;  %v3320_v5 = vpack.c.bf16 %v3304_v51, %v3304_v51  ;;  %v3322_v6 = vpack.c.bf16 %v3306_v52, %v3306_v52 }
0x10ad   : > { %v3015_v60 = vpop.f32.mrf.mxu0  ;;  %v3056_v61 = vpop.f32.mrf.mxu1 }
0x10ae   : > { %v3321_v0 = vpack.c.bf16 %v3305_v56, %v3305_v56  ;;  %v3323_v2 = vpack.c.bf16 %v3307_v10, %v3307_v10  ;;  %v3348_v61 = vld [vmem:[%s10073_s13 + $0x60] sm:$0xff] }
0x10af   : > { %v3092_v7 = vpop.f32.mrf.mxu0  ;;  %v3133_v8 = vpop.f32.mrf.mxu1 }
0x10b0   : > { %3567 = vmatprep.mubr.bf16.mxu0 %v3321_v0  ;;  %3607 = vmatprep.mubr.bf16.mxu1 %v3323_v2  ;;  %v3093_v41 = vadd.f32 %v3092_v7, %v2752_v17  ;;  %v3134_v42 = vadd.f32 %v3133_v8, %v2760_v18  ;;  %v3341_v0 = vld [vmem:[%s10073_s13 + $0x28] sm:$0xff]  ;;  %v2768_v17 = vrot.slane %v9388_v30, %v9327_v32 }
0x10b1   : > { %v3094_v12 = vpop.f32.mrf.mxu0  ;;  %v3135_v14 = vpop.f32.mrf.mxu1  ;;  %3568 = vmatmul.mubr.bf16.vlgmr.msra.gmra.mxu0 %v3320_v5  ;;  %3608 = vmatmul.mubr.bf16.vlgmr.msra.gmra.mxu1 %v3322_v6  ;;  %v3349_v2 = vld [vmem:[%s10073_s13 + $0x68] sm:$0xff] }
0x10b2   : > { %v3095_v15 = vadd.f32 %v3094_v12, %v2756_v3  ;;  %v3136_v16 = vadd.f32 %v3135_v14, %v2764_v4  ;;  %3628 = vmatpush1.bf16.xpose.msra.mxu0 %v7401_v26  ;;  %3668 = vmatpush1.bf16.xpose.msra.mxu1 %v7403_v27  ;;  %v3365_v26 = vld [vmem:[%s10073_s13 + $0xe8] sm:$0xff]  ;;  %v3308_v53 = vmax.f32 %v3093_v41, 0.0  ;;  %v3310_v54 = vmax.f32 %v3134_v42, 0.0 }
0x10b3   : > { %v3096_v19 = vpop.f32.mrf.mxu0  ;;  %v3137_v20 = vpop.f32.mrf.mxu1  ;;  %3629 = vmatprep.subr.bf16.mxu0 %v7386_v9  ;;  %3669 = vmatprep.subr.bf16.mxu1 %v7388_v11  ;;  %v7408_v46 = vcombine.high %v3357_v25, %v3365_v26  ;;  %v7405_v4 = vcombine.low %v3356_v21, %v3364_v24  ;;  %v7407_v11 = vcombine.low %v3357_v25, %v3365_v26  ;;  %v3358_v21 = vld [vmem:[%s10073_s13 + $0xb0] sm:$0xff]  ;;  %v3359_v26 = vld [vmem:[%s10073_s13 + $0xb8] sm:$0xff] }
0x10b4   : > { %v3309_v22 = vmax.f32 %v3095_v15, 0.0  ;;  %v3311_v23 = vmax.f32 %v3136_v16, 0.0  ;;  %v3324_v5 = vpack.c.bf16 %v3308_v53, %v3308_v53  ;;  %v3326_v6 = vpack.c.bf16 %v3310_v54, %v3310_v54  ;;  %v3351_v53 = vld [vmem:[%s10073_s13 + $0x78] sm:$0xff] }
0x10b5   : > { %v3097_v27 = vpop.f32.mrf.mxu0  ;;  %v3138_v28 = vpop.f32.mrf.mxu1  ;;  %v7390_v12 = vcombine.high %v3340_v58, %v3348_v61  ;;  %v7392_v14 = vcombine.high %v3341_v0, %v3349_v2  ;;  %v2776_v20 = vrot.slane %v9388_v30, %v9329_v33 }
0x10b6   : > { %v3325_v37 = vpack.c.bf16 %v3309_v22, %v3309_v22  ;;  %v3327_v38 = vpack.c.bf16 %v3311_v23, %v3311_v23  ;;  %v3366_v22 = vld [vmem:[%s10073_s13 + $0xf0] sm:$0xff]  ;;  %v2788_v23 = vrot.slane %v9388_v30, %v9345_v49  ;;  %v3367_v27 = vld [vmem:[%s10073_s13 + $0xf8] sm:$0xff]  ;;  %v2796_v28 = vrot.slane %v9388_v30, %v9347_v50 }
0x10b7   : > { %v3174_v43 = vpop.f32.mrf.mxu0  ;;  %v3215_v44 = vpop.f32.mrf.mxu1 }
0x10b8   : > { %3647 = vmatprep.mubr.bf16.mxu0 %v3325_v37  ;;  %3687 = vmatprep.mubr.bf16.mxu1 %v3327_v38  ;;  %v7391_v37 = vcombine.low %v3341_v0, %v3349_v2  ;;  %v7410_v38 = vcombine.high %v3358_v21, %v3366_v22 }
0x10b9   : > { %v3176_v47 = vpop.f32.mrf.mxu0  ;;  %v3217_v48 = vpop.f32.mrf.mxu1 }
0x10ba   : > { %v3177_v51 = vadd.f32 %v3176_v47, %v2772_v39  ;;  %v3218_v52 = vadd.f32 %v3217_v48, %v2780_v40  ;;  %3630 = vmatpush1.bf16.xpose.msra.mxu0 %v7385_v31  ;;  %3670 = vmatpush1.bf16.xpose.msra.mxu1 %v7387_v34  ;;  %v7389_v31 = vcombine.low %v3340_v58, %v3348_v61  ;;  %v3342_v48 = vld [vmem:[%s10073_s13 + $0x30] sm:$0xff] }
0x10bb   : > { %v3178_v55 = vpop.f32.mrf.mxu0  ;;  %v3219_v56 = vpop.f32.mrf.mxu1  ;;  %3707 = vmatprep.subr.bf16.mxu0 %v7406_v45  ;;  %3747 = vmatprep.subr.bf16.mxu1 %v7408_v46  ;;  %v3175_v34 = vadd.f32 %v3174_v43, %v2768_v17  ;;  %v3216_v39 = vadd.f32 %v3215_v44, %v2776_v20  ;;  %v7412_v40 = vcombine.high %v3359_v26, %v3367_v27  ;;  %v3350_v43 = vld [vmem:[%s10073_s13 + $0x70] sm:$0xff] }
0x10bc   : > { %v3313_v10 = vmax.f32 %v3177_v51, 0.0  ;;  %v3315_v57 = vmax.f32 %v3218_v52, 0.0  ;;  %v7409_v44 = vcombine.low %v3358_v21, %v3366_v22  ;;  %v3343_v52 = vld [vmem:[%s10073_s13 + $0x38] sm:$0xff]  ;;  %v7411_v55 = vcombine.low %v3359_v26, %v3367_v27 }
0x10bd   : > { %v3179_v59 = vpop.f32.mrf.mxu0  ;;  %v3220_v60 = vpop.f32.mrf.mxu1  ;;  %v3312_v45 = vmax.f32 %v3175_v34, 0.0  ;;  %v3314_v46 = vmax.f32 %v3216_v39, 0.0  ;;  %v7396_v58 = vcombine.high %v3343_v52, %v3351_v53  ;;  %v2792_v61 = vrot.slane %v9388_v30, %v9365_v63  ;;  %v7380_v26 = vld [vmem:[#allocation13] ss:$0 sm:$0xff] }
0x10be   : > { %v3329_v3 = vpack.c.bf16 %v3313_v10, %v3313_v10  ;;  %v3331_v7 = vpack.c.bf16 %v3315_v57, %v3315_v57  ;;  %v7394_v10 = vcombine.high %v3342_v48, %v3350_v43  ;;  %v2784_v60 = vrot.slane %v9388_v30, %v9363_v62 }
0x10bf   : > { %v9407_v8 = vpop.f32.mrf.mxu0  ;;  %v9409_v9 = vpop.f32.mrf.mxu1  ;;  %v3328_v54 = vpack.c.bf16 %v3312_v45, %v3312_v45  ;;  %v3330_v56 = vpack.c.bf16 %v3314_v46, %v3314_v46  ;;  %v7393_v0 = vcombine.low %v3342_v48, %v3350_v43 }
0x10c0   : > { %v3257_v2 = vadd.f32 %v9407_v8, %v2784_v60 }
0x10c1   : > { %3648 = vmatmul.mubr.bf16.vlgmr.msra.gmra.mxu0 %v3324_v5  ;;  %3688 = vmatmul.mubr.bf16.vlgmr.msra.gmra.mxu1 %v3326_v6  ;;  %v3258_v15 = vpop.f32.mrf.mxu0  ;;  %v3299_v16 = vpop.f32.mrf.mxu1 }
0x10c2   : > { %3708 = vmatpush1.bf16.xpose.msra.mxu0 %v7405_v4  ;;  %3727 = vmatprep.mubr.bf16.mxu0 %v3329_v3  ;;  %v3259_v41 = vadd.f32 %v3258_v15, %v2788_v23  ;;  %v3300_v42 = vadd.f32 %v3299_v16, %v2796_v28  ;;  %v7395_v3 = vcombine.low %v3343_v52, %v3351_v53  ;;  %v3316_v5 = vmax.f32 %v3257_v2, 0.0 }
0x10c3   : > { %3748 = vmatpush1.bf16.xpose.msra.mxu1 %v7407_v11  ;;  %3767 = vmatprep.mubr.bf16.mxu1 %v3331_v7  ;;  %v3260_v18 = vpop.f32.mrf.mxu0  ;;  %v3301_v19 = vpop.f32.mrf.mxu1  ;;  %v3298_v4 = vadd.f32 %v9409_v9, %v2792_v61 }
0x10c4   : > { %3709 = vmatprep.subr.bf16.mxu0 %v7390_v12  ;;  %3749 = vmatprep.subr.bf16.mxu1 %v7392_v14  ;;  %v3317_v47 = vmax.f32 %v3259_v41, 0.0  ;;  %v3319_v51 = vmax.f32 %v3300_v42, 0.0  ;;  %v3332_v7 = vpack.c.bf16 %v3316_v5, %v3316_v5  ;;  %v7417_v5 = vld [vmem:[%s10094_s23 + $0x90] sm:$0xff] }
0x10c5   : > { %v3261_v24 = vpop.f32.mrf.mxu0  ;;  %v3302_v25 = vpop.f32.mrf.mxu1  ;;  %v3318_v6 = vmax.f32 %v3298_v4, 0.0  ;;  %v7418_v4 = vld [vmem:[%s10094_s23 + $0x98] sm:$0xff] }
0x10c6   : > { %v3333_v57 = vpack.c.bf16 %v3317_v47, %v3317_v47  ;;  %v3335_v59 = vpack.c.bf16 %v3319_v51, %v3319_v51 }
0x10c7   : > { %v3334_v11 = vpack.c.bf16 %v3318_v6, %v3318_v6  ;;  %v7423_v6 = vld [vmem:[%s10093_s28 + $0x90] sm:$0xff] }
0x10ca   : > { %3710 = vmatpush1.bf16.xpose.msra.mxu0 %v7389_v31 }
0x10cb   : > { %3750 = vmatpush1.bf16.xpose.msra.mxu1 %v7391_v37  ;;  %3787 = vmatprep.subr.bf16.mxu0 %v7410_v38 }
0x10cc   : > { %3827 = vmatprep.subr.bf16.mxu1 %v7412_v40 }
0x10d1   : > { %3728 = vmatmul.mubr.bf16.vlgmr.msra.gmra.mxu0 %v3328_v54 }
0x10d2   : > { %3768 = vmatmul.mubr.bf16.vlgmr.msra.gmra.mxu1 %v3330_v56  ;;  %3788 = vmatpush1.bf16.xpose.msra.mxu0 %v7409_v44 }
0x10d3   : > { %3807 = vmatprep.mubr.bf16.mxu0 %v3333_v57  ;;  %3828 = vmatpush1.bf16.xpose.msra.mxu1 %v7411_v55 }
0x10d4   : > { %3847 = vmatprep.mubr.bf16.mxu1 %v3335_v59  ;;  %3789 = vmatprep.subr.bf16.mxu0 %v7394_v10 }
0x10d5   : > { %3829 = vmatprep.subr.bf16.mxu1 %v7396_v58 }
0x10da   : > { %3790 = vmatpush1.bf16.xpose.msra.mxu0 %v7393_v0 }
0x10db   : > { %3830 = vmatpush1.bf16.xpose.msra.mxu1 %v7395_v3  ;;  %8013 = vmatprep.subr.mxu0 %v8595_v1 }
0x10dc   : > { %8024 = vmatprep.subr.mxu1 %v8595_v1 }
0x10e1   : > { %3808 = vmatmul.mubr.bf16.vlgmr.msra.gmra.mxu0 %v3332_v7  ;;  %v7416_v7 = vld [vmem:[%s10094_s23 + $0x88] sm:$0xff] }
0x10e2   : > { %3848 = vmatmul.mubr.bf16.vlgmr.msra.gmra.mxu1 %v3334_v11  ;;  %8021 = vmatprep.mubr.msk.f32.mxu0 %vm8596_vm0, %v8595_v1  ;;  %v7422_v11 = vld [vmem:[%s10093_s28 + $0x88] sm:$0xff] }
0x10e3   : > { %8032 = vmatprep.mubr.msk.f32.mxu1 %vm8596_vm0, %v8595_v1  ;;  %8014 = vmatpush3.msra.mxu0 %v7418_v4 }
0x10e4   : > { %8015 = vmatprep.subr.mxu0 %v8595_v1 }
0x10e5   : > { %8016 = vmatpush3.msra.mxu0 %v7417_v5 }
0x10e6   : > { %8017 = vmatprep.subr.mxu0 %v8595_v1 }
0x10e7   : > { %8018 = vmatpush3.msra.mxu0 %v7416_v7  ;;  %v7444_v7 = vld [vmem:[%s10093_s28 + $0xb0] sm:$0xff] }
0x10e8   : > { %8019 = vmatprep.subr.mxu0 %v8595_v1 }
0x1171   : > { %v3569_v30 = vpop.f32.mrf.mxu0  ;;  %v3609_v8 = vpop.f32.mrf.mxu1 }
0x1172   : > { %v3570_v27 = vadd.f32 %v7380_v26, %v3569_v30  ;;  %v7415_v30 = vld [vmem:[%s10094_s23 + $0x80] sm:$0xff]  ;;  %v7438_v26 = vld [vmem:[%s10094_s23 + $0xb0] sm:$0xff] }
0x1173   : > { %v3571_v9 = vpop.f32.mrf.mxu0  ;;  %v3611_v12 = vpop.f32.mrf.mxu1  ;;  %8020 = vmatpush3.msra.mxu0 %v7415_v30  ;;  %v7442_v30 = vld [vmem:[%s10093_s28 + $0xa0] sm:$0xff] }
0x1174   : > { %v3610_v37 = vadd.f32 %v3609_v8, %v3570_v27  ;;  %v7421_v8 = vld [vmem:[%s10093_s28 + $0x80] sm:$0xff]  ;;  %8035 = vmatprep.subr.mxu0 %v8595_v1  ;;  %v7437_v27 = vld [vmem:[%s10094_s23 + $0xa8] sm:$0xff] }
0x1175   : > { %v3572_v14 = vpop.f32.mrf.mxu0  ;;  %v3612_v15 = vpop.f32.mrf.mxu1 }
0x1177   : > { %v3573_v16 = vpop.f32.mrf.mxu0  ;;  %v3613_v17 = vpop.f32.mrf.mxu1 }
0x1178   : > { %v7413_v16 = vld [vmem:[%s10075_s15] ss:$0 sm:$0xff] }
0x1181   : > { %v3649_v18 = vpop.f32.mrf.mxu0  ;;  %v3689_v19 = vpop.f32.mrf.mxu1 }
0x1182   : > { %v3650_v40 = vadd.f32 %v3649_v18, %v3610_v37  ;;  %v7414_v18 = vld [vmem:[%s10076_s16] ss:$0 sm:$0xff]  ;;  %v7449_v37 = vld [vmem:[%s10096_s24 + $0xa8] sm:$0xff] }
0x1183   : > { %v3651_v20 = vpop.f32.mrf.mxu0  ;;  %v3691_v21 = vpop.f32.mrf.mxu1 }
0x1184   : > { %v3690_v46 = vadd.f32 %v3689_v19, %v3650_v40  ;;  %v7430_v21 = vld [vmem:[%s10096_s24 + $0x98] sm:$0xff] }
0x1185   : > { %v3652_v22 = vpop.f32.mrf.mxu0  ;;  %v3692_v23 = vpop.f32.mrf.mxu1 }
0x1186   : > { %v7429_v22 = vld [vmem:[%s10096_s24 + $0x90] sm:$0xff]  ;;  %v7428_v23 = vld [vmem:[%s10096_s24 + $0x88] sm:$0xff] }
0x1187   : > { %v3653_v24 = vpop.f32.mrf.mxu0  ;;  %v3693_v25 = vpop.f32.mrf.mxu1 }
0x1188   : > { %v7427_v24 = vld [vmem:[%s10096_s24 + $0x80] sm:$0xff]  ;;  %v7439_v25 = vld [vmem:[%s10094_s23 + $0xb8] sm:$0xff] }
0x1191   : > { %v3729_v28 = vpop.f32.mrf.mxu0 }
0x1192   : > { %v3769_v31 = vpop.f32.mrf.mxu1  ;;  %v3730_v47 = vadd.f32 %v3729_v28, %v3690_v46  ;;  %v7436_v28 = vld [vmem:[%s10094_s23 + $0xa0] sm:$0xff] }
0x1193   : > { %v3731_v34 = vpop.f32.mrf.mxu0 }
0x1194   : > { %v3771_v38 = vpop.f32.mrf.mxu1  ;;  %v3770_v48 = vadd.f32 %v3769_v31, %v3730_v47  ;;  %v7451_v31 = vld [vmem:[%s10096_s24 + $0xb8] sm:$0xff]  ;;  %v7450_v34 = vld [vmem:[%s10096_s24 + $0xb0] sm:$0xff] }
0x1195   : > { %v3732_v39 = vpop.f32.mrf.mxu0  ;;  %v7448_v38 = vld [vmem:[%s10096_s24 + $0xa0] sm:$0xff] }
0x1196   : > { %v3772_v41 = vpop.f32.mrf.mxu1  ;;  %v7425_v39 = vld [vmem:[#allocation5 + $0x4] ss:$0 sm:$0xff] }
0x1197   : > { %v3733_v42 = vpop.f32.mrf.mxu0 }
0x1198   : > { %v3773_v45 = vpop.f32.mrf.mxu1  ;;  %v7419_v42 = vld [vmem:[#allocation3 + $0x4] ss:$0 sm:$0xff] }
0x11a1   : > { %v3809_v43 = vpop.f32.mrf.mxu0 }
0x11a2   : > { %v3810_v51 = vadd.f32 %v3809_v43, %v3770_v48  ;;  %v3849_v44 = vpop.f32.mrf.mxu1  ;;  %v7431_v43 = vld [vmem:[#allocation7 + $0x4] ss:$0 sm:$0xff] }
0x11a3   : > { %v3811_v52 = vpop.f32.mrf.mxu0 }
0x11a4   : > { %v3850_v53 = vadd.f32 %v3849_v44, %v3810_v51  ;;  %v3851_v54 = vpop.f32.mrf.mxu1 }
0x11a5   : > { %v3812_v55 = vpop.f32.mrf.mxu0 }
0x11a6   : > { %v3852_v56 = vpop.f32.mrf.mxu1  ;;  %v3855_v10 = vadd.f32 %v3850_v53, %v9211_v29  ;;  %v7424_v29 = vld [vmem:[%s10093_s28 + $0x98] sm:$0xff] }
0x11a7   : > { %v3813_v57 = vpop.f32.mrf.mxu0  ;;  %8025 = vmatpush3.msra.mxu1 %v7424_v29 }
0x11a8   : > { %v3853_v58 = vpop.f32.mrf.mxu1  ;;  %v3858_v59 = vsel %vm728_vm1, %v3855_v10, 0.0  ;;  %8026 = vmatprep.subr.mxu1 %v8595_v1 }
0x11a9   : > { %3859 = vadd.xlane.f32.xlu0 %v3858_v59  ;;  %8027 = vmatpush3.msra.mxu1 %v7423_v6  ;;  %v7445_v6 = vld [vmem:[%s10093_s28 + $0xb8] sm:$0xff] }
0x11aa   : > { %8028 = vmatprep.subr.mxu1 %v8595_v1 }
0x11ab   : > { %8029 = vmatpush3.msra.mxu1 %v7422_v11  ;;  %v7443_v11 = vld [vmem:[%s10093_s28 + $0xa8] sm:$0xff] }
0x11ac   : > { %8030 = vmatprep.subr.mxu1 %v8595_v1 }
0x11ad   : > { %8031 = vmatpush3.msra.mxu1 %v7421_v8 }
0x11ae   : > { %8046 = vmatprep.subr.mxu1 %v8595_v1 }
0x1232   : > { %v3860_v60 = vpop.xlane.xlu0 %3859 }
0x1233   : > { %v3861_v61 = vmul.f32 0.03125, %v3860_v60 }
0x1235   : > { %v3862_v0 = vsub.f32 %v3855_v10, %v3861_v61 }
0x1237   : > { %v3863_v2 = vmul.f32 %v3862_v0, %v3862_v0 }
0x1239   : > { %v3864_v3 = vsel %vm728_vm1, %v3863_v2, 0.0 }
0x123a   : > { %3865 = vadd.xlane.f32.xlu1 %v3864_v3 }
0x12c3   : > { %v3866_v9 = vpop.xlane.xlu1 %3865 }
0x12c4   : > { %v3867_v12 = vmul.f32 0.03125, %v3866_v9 }
0x12c6   : > { %v3868_v14 = vadd.f32 1e-05, %v3867_v12  ;;  %v7446_v12 = vld [vmem:[#allocation5 + $0x5] ss:$0 sm:$0xff] }
0x12c8   : > { %8320 = vrsqrt.f32 %v3868_v14 }
0x12d5   : > { %v8321_v15 = vpop.eup %8320 }
0x12d6   : > { %v3870_v17 = vmul.f32 %v8321_v15, %v3862_v0  ;;  %v7440_v15 = vld [vmem:[#allocation3 + $0x5] ss:$0 sm:$0xff] }
0x12d8   : > { %v3877_v19 = vmul.f32 %v7413_v16, %v3870_v17  ;;  %v7452_v17 = vld [vmem:[#allocation7 + $0x5] ss:$0 sm:$0xff] }
0x12da   : > { %v9496_v20 = vadd.f32 %v7414_v18, %v3877_v19 }
0x12dc   : > { %8022 = vmatmul.mubr.msk.f32.vlgmr.msra.gmra.mxu0 %vm728_vm1, %v9496_v20  ;;  %8033 = vmatmul.mubr.msk.f32.vlgmr.msra.gmra.mxu1 %vm728_vm1, %v9496_v20 }
0x12dd   : > { %8036 = vmatpush3.msra.mxu0 %v7430_v21  ;;  %8043 = vmatprep.mubr.msk.f32.mxu0 %vm8596_vm0, %v8595_v1 }
0x12de   : > { %8037 = vmatprep.subr.mxu0 %v8595_v1  ;;  %8048 = vmatprep.mubr.msk.f32.mxu1 %vm8596_vm0, %v8595_v1 }
0x12df   : > { %8038 = vmatpush3.msra.mxu0 %v7429_v22 }
0x12e0   : > { %8039 = vmatprep.subr.mxu0 %v8595_v1 }
0x12e1   : > { %8040 = vmatpush3.msra.mxu0 %v7428_v23 }
0x12e2   : > { %8041 = vmatprep.subr.mxu0 %v8595_v1 }
0x12e3   : > { %8042 = vmatpush3.msra.mxu0 %v7427_v24 }
0x12e4   : > { %8044 = vmatmul.mubr.msk.f32.vlgmr.msra.gmra.mxu0 %vm728_vm1, %v9496_v20  ;;  %8056 = vmatprep.subr.mxu0 %v8595_v1 }
0x12e5   : > { %8057 = vmatpush3.msra.mxu0 %v7439_v25  ;;  %8064 = vmatprep.mubr.msk.f32.mxu0 %vm8596_vm0, %v8595_v1 }
0x12e6   : > { %8058 = vmatprep.subr.mxu0 %v8595_v1 }
0x12e7   : > { %8059 = vmatpush3.msra.mxu0 %v7438_v26 }
0x12e8   : > { %8060 = vmatprep.subr.mxu0 %v8595_v1 }
0x12e9   : > { %8061 = vmatpush3.msra.mxu0 %v7437_v27 }
0x12ea   : > { %8062 = vmatprep.subr.mxu0 %v8595_v1 }
0x12eb   : > { %8063 = vmatpush3.msra.mxu0 %v7436_v28 }
0x12ec   : > { %8065 = vmatmul.mubr.msk.f32.vlgmr.msra.gmra.mxu0 %vm728_vm1, %v9496_v20  ;;  %8078 = vmatprep.subr.mxu0 %v8595_v1 }
0x12ed   : > { %8079 = vmatpush3.msra.mxu0 %v7451_v31  ;;  %8086 = vmatprep.mubr.msk.f32.mxu0 %vm8596_vm0, %v8595_v1 }
0x12ee   : > { %8080 = vmatprep.subr.mxu0 %v8595_v1 }
0x12ef   : > { %8081 = vmatpush3.msra.mxu0 %v7450_v34 }
0x12f0   : > { %8082 = vmatprep.subr.mxu0 %v8595_v1 }
0x12f1   : > { %8083 = vmatpush3.msra.mxu0 %v7449_v37  ;;  %v4711_v37 = vld [vmem:[#allocation8 + $0x28] sm:$0xff] }
0x12f2   : > { %8084 = vmatprep.subr.mxu0 %v8595_v1 }
0x12f3   : > { %8085 = vmatpush3.msra.mxu0 %v7448_v38 }
0x12f4   : > { %8087 = vmatmul.mubr.msk.f32.vlgmr.msra.gmra.mxu0 %vm728_vm1, %v9496_v20  ;;  %8099 = vmatprep.subr.mxu0 %v8595_v1 }
0x12f5   : > { %8101 = vmatprep.mubr.msk.f32.mxu0 %vm8596_vm0, %v8595_v1  ;;  %8100 = vmatpush3.msra.mxu0 %v4711_v37  ;;  %v7495_v37 = vld [vmem:[%s10096_s24 + $0xf0] sm:$0xff] }
0x12f6   : > { %8109 = vmatprep.subr.mxu0 %v8595_v1 }
0x139c   : > { %v3967_v40 = vpop.f32.mrf.mxu0  ;;  %v4050_v41 = vpop.f32.mrf.mxu1 }
0x139d   : > { %v4051_v45 = vadd.f32 %v7425_v39, %v4050_v41  ;;  %v3968_v48 = vadd.f32 %v7419_v42, %v3967_v40  ;;  %v4299_v41 = vld [vmem:[#allocation8 + $0x20] sm:$0xff] }
0x139e   : > { %v8023_v46 = vpop.f32.mrf.mxu0  ;;  %v8034_v47 = vpop.f32.mrf.mxu1  ;;  %v7468_v42 = vld [vmem:[%s10093_s28 + $0xd8] sm:$0xff] }
0x139f   : > { %8047 = vmatpush3.xpose.msk.msra.mxu1 %vm964_vm2, %v4051_v45  ;;  %v7467_v45 = vld [vmem:[%s10093_s28 + $0xd0] sm:$0xff]  ;;  %v7466_v46 = vld [vmem:[%s10093_s28 + $0xc8] sm:$0xff]  ;;  %v7465_v47 = vld [vmem:[%s10093_s28 + $0xc0] sm:$0xff] }
0x13a0   : > { %8051 = vmatprep.subr.mxu1 %v8595_v1 }
0x13a2   : > { %8049 = vmatmul.mubr.msk.f32.vlgmr.msra.gmra.mxu1 %vm964_vm2, %v3968_v48  ;;  %v7462_v48 = vld [vmem:[%s10094_s23 + $0xd8] sm:$0xff] }
0x13a3   : > { %8053 = vmatprep.mubr.msk.f32.mxu1 %vm8596_vm0, %v8595_v1 }
0x13a4   : > { %v4133_v51 = vpop.f32.mrf.mxu0 }
0x13a5   : > { %v4134_v44 = vadd.f32 %v7431_v43, %v4133_v51  ;;  %v7461_v51 = vld [vmem:[%s10094_s23 + $0xd0] sm:$0xff] }
0x13a6   : > { %v8045_v52 = vpop.f32.mrf.mxu0 }
0x13a7   : > { %8052 = vmatpush3.msra.mxu1 %v4134_v44  ;;  %v7460_v52 = vld [vmem:[%s10094_s23 + $0xc8] sm:$0xff] }
0x13a8   : > { %8067 = vmatprep.subr.mxu1 %v8595_v1 }
0x13ac   : > { %v4379_v53 = vpop.f32.mrf.mxu0 }
0x13ad   : > { %v4380_v19 = vadd.f32 %v7440_v15, %v4379_v53 }
0x13ae   : > { %v8066_v54 = vpop.f32.mrf.mxu0 }
0x13af   : > { %v7459_v54 = vld [vmem:[%s10094_s23 + $0xc0] sm:$0xff] }
0x13b4   : > { %v4545_v55 = vpop.f32.mrf.mxu0 }
0x13b5   : > { %v4546_v21 = vadd.f32 %v7452_v17, %v4545_v55 }
0x13b6   : > { %v8088_v56 = vpop.f32.mrf.mxu0 }
0x13b7   : > { %v7474_v56 = vld [vmem:[%s10096_s24 + $0xd8] sm:$0xff] }
0x1462   : > { %v4209_v10 = vpop.f32.mrf.mxu1 }
0x1463   : > { %v4213_v57 = vmul.f32 0.35355338, %v4209_v10  ;;  %v7473_v10 = vld [vmem:[%s10096_s24 + $0xd0] sm:$0xff] }
0x1464   : > { %v8050_v58 = vpop.f32.mrf.mxu1 }
0x1465   : > { %v4214_v59 = vsel %vm964_vm2, %v4213_v57, -inf  ;;  %v7472_v58 = vld [vmem:[%s10096_s24 + $0xc8] sm:$0xff] }
0x1466   : > { %4215 = vmax.xlane.f32.xlu0 %v4214_v59 }
0x14ef   : > { %v4216_v60 = vpop.xlane.xlu0 %4215 }
0x14f0   : > { %v4217_v61 = vsub.f32 %v4213_v57, %v4216_v60  ;;  %v7469_v57 = vld [vmem:[#allocation5 + $0x6] ss:$0 sm:$0xff] }
0x14f2   : > { %v4218_v0 = vmul.f32 1.442695, %v4217_v61  ;;  %v7471_v61 = vld [vmem:[%s10096_s24 + $0xc0] sm:$0xff] }
0x14f4   : > { %8322 = vpow2.f32 %v4218_v0 }
0x1501   : > { %v8323_v2 = vpop.eup %8322 }
0x1502   : > { %v4220_v3 = vsel %vm964_vm2, %v8323_v2, 0.0 }
0x1503   : > { %4221 = vadd.xlane.f32.xlu1 %v4220_v3 }
0x158c   : > { %v4222_v4 = vpop.xlane.xlu1 %4221 }
0x158d   : > { %8324 = vrcp.f32 %v4222_v4  ;;  %v7463_v4 = vld [vmem:[#allocation3 + $0x6] ss:$0 sm:$0xff] }
0x159a   : > { %v8325_v29 = vpop.eup %8324 }
0x159b   : > { %v4224_v5 = vmul.f32 %v8325_v29, %v8323_v2 }
0x159d   : > { %8054 = vmatmul.mubr.msk.f32.vlgmr.msra.gmra.mxu1 %vm964_vm2, %v4224_v5 }
0x159e   : > { %8068 = vmatpush3.msra.mxu1 %v7445_v6  ;;  %8075 = vmatprep.mubr.msk.f32.mxu1 %vm8596_vm0, %v8595_v1 }
0x159f   : > { %8069 = vmatprep.subr.mxu1 %v8595_v1 }
0x15a0   : > { %8070 = vmatpush3.msra.mxu1 %v7444_v7  ;;  %v7475_v7 = vld [vmem:[#allocation7 + $0x6] ss:$0 sm:$0xff] }
0x15a1   : > { %8071 = vmatprep.subr.mxu1 %v8595_v1 }
0x15a2   : > { %8072 = vmatpush3.msra.mxu1 %v7443_v11 }
0x15a3   : > { %8073 = vmatprep.subr.mxu1 %v8595_v1 }
0x15a4   : > { %8074 = vmatpush3.msra.mxu1 %v7442_v30 }
0x15a5   : > { %8076 = vmatmul.mubr.msk.f32.vlgmr.msra.gmra.mxu1 %vm728_vm1, %v9496_v20  ;;  %8089 = vmatprep.subr.mxu1 %v8595_v1 }
0x15a6   : > { %8091 = vmatprep.mubr.msk.f32.mxu1 %vm8596_vm0, %v8595_v1 }
0x165d   : > { %v4294_v8 = vpop.f32.mrf.mxu1 }
0x165f   : > { %v8055_v9 = vpop.f32.mrf.mxu1 }
0x1665   : > { %v4462_v14 = vpop.f32.mrf.mxu1 }
0x1666   : > { %v4463_v16 = vadd.f32 %v7446_v12, %v4462_v14 }
0x1667   : > { %v8077_v18 = vpop.f32.mrf.mxu1 }
0x1668   : > { %8090 = vmatpush3.xpose.msk.msra.mxu1 %vm964_vm2, %v4463_v16 }
0x1669   : > { %8094 = vmatprep.subr.mxu1 %v8595_v1 }
0x166b   : > { %8092 = vmatmul.mubr.msk.f32.vlgmr.msra.gmra.mxu1 %vm964_vm2, %v4380_v19 }
0x166c   : > { %8095 = vmatpush3.msra.mxu1 %v4546_v21  ;;  %8096 = vmatprep.mubr.msk.f32.mxu1 %vm8596_vm0, %v8595_v1 }
0x166d   : > { %8104 = vmatprep.subr.mxu1 %v8595_v1 }
0x172b   : > { %v4621_v22 = vpop.f32.mrf.mxu1 }
0x172c   : > { %v4625_v23 = vmul.f32 0.35355338, %v4621_v22  ;;  %v5269_v22 = vld [vmem:[#allocation8 + $0x30] sm:$0xff] }
0x172d   : > { %v8093_v24 = vpop.f32.mrf.mxu1 }
0x172e   : > { %v4626_v25 = vsel %vm964_vm2, %v4625_v23, -inf }
0x172f   : > { %4627 = vmax.xlane.f32.xlu0 %v4626_v25 }
0x17b8   : > { %v4628_v26 = vpop.xlane.xlu0 %4627 }
0x17b9   : > { %v4629_v27 = vsub.f32 %v4625_v23, %v4628_v26  ;;  %v7484_v26 = vld [vmem:[%s10094_s23 + $0xf8] sm:$0xff] }
0x17bb   : > { %v4630_v28 = vmul.f32 1.442695, %v4629_v27  ;;  %v7483_v27 = vld [vmem:[%s10094_s23 + $0xf0] sm:$0xff] }
0x17bd   : > { %8326 = vpow2.f32 %v4630_v28  ;;  %v7482_v28 = vld [vmem:[%s10094_s23 + $0xe8] sm:$0xff] }
0x17ca   : > { %v8327_v31 = vpop.eup %8326 }
0x17cb   : > { %v4632_v34 = vsel %vm964_vm2, %v8327_v31, 0.0 }
0x17cc   : > { %4633 = vadd.xlane.f32.xlu1 %v4632_v34  ;;  %v7496_v34 = vld [vmem:[%s10096_s24 + $0xf8] sm:$0xff] }
0x1855   : > { %v4634_v38 = vpop.xlane.xlu1 %4633 }
0x1856   : > { %8328 = vrcp.f32 %v4634_v38  ;;  %v7494_v38 = vld [vmem:[%s10096_s24 + $0xe8] sm:$0xff] }
0x1863   : > { %v8329_v39 = vpop.eup %8328 }
0x1864   : > { %v4636_v40 = vmul.f32 %v8329_v39, %v8327_v31  ;;  %v7481_v31 = vld [vmem:[%s10094_s23 + $0xe0] sm:$0xff] }
0x1865   : > { %v7493_v39 = vld [vmem:[%s10096_s24 + $0xe0] sm:$0xff] }
0x1866   : > { %8097 = vmatmul.mubr.msk.f32.vlgmr.msra.gmra.mxu1 %vm964_vm2, %v4636_v40  ;;  %v7490_v40 = vld [vmem:[%s10093_s28 + $0xf8] sm:$0xff] }
0x1867   : > { %8105 = vmatpush3.msra.mxu1 %v4299_v41  ;;  %8106 = vmatprep.mubr.msk.f32.mxu1 %vm8596_vm0, %v8595_v1 }
0x1868   : > { %8120 = vmatprep.subr.mxu1 %v8595_v1 }
0x186a   : > { %8107 = vmatmul.mubr.msk.f32.vlgmr.msra.gmra.mxu1 %vm964_vm2, %v4294_v8 }
0x186b   : > { %8121 = vmatpush3.msra.mxu1 %v7468_v42  ;;  %8128 = vmatprep.mubr.msk.f32.mxu1 %vm8596_vm0, %v8595_v1  ;;  %v7489_v42 = vld [vmem:[%s10093_s28 + $0xf0] sm:$0xff] }
0x186c   : > { %8122 = vmatprep.subr.mxu1 %v8595_v1 }
0x186d   : > { %8123 = vmatpush3.msra.mxu1 %v7467_v45 }
0x186e   : > { %8124 = vmatprep.subr.mxu1 %v8595_v1 }
0x186f   : > { %8125 = vmatpush3.msra.mxu1 %v7466_v46  ;;  %v7488_v46 = vld [vmem:[%s10093_s28 + $0xe8] sm:$0xff] }
0x1870   : > { %8126 = vmatprep.subr.mxu1 %v8595_v1 }
0x1871   : > { %8127 = vmatpush3.msra.mxu1 %v7465_v47  ;;  %v7487_v47 = vld [vmem:[%s10093_s28 + $0xe0] sm:$0xff] }
0x1872   : > { %8129 = vmatmul.mubr.msk.f32.vlgmr.msra.gmra.mxu1 %vm728_vm1, %v9496_v20  ;;  %8142 = vmatprep.subr.mxu1 %v8595_v1 }
0x1873   : > { %8144 = vmatprep.mubr.msk.f32.mxu1 %vm8596_vm0, %v8595_v1 }
0x1926   : > { %v4706_v43 = vpop.f32.mrf.mxu1 }
0x1927   : > { %8102 = vmatmul.mubr.msk.f32.vlgmr.msra.gmra.mxu0 %vm964_vm2, %v4706_v43 }
0x1928   : > { %8110 = vmatpush3.msra.mxu0 %v7462_v48  ;;  %v8098_v44 = vpop.f32.mrf.mxu1  ;;  %8117 = vmatprep.mubr.msk.f32.mxu0 %vm8596_vm0, %v8595_v1 }
0x1929   : > { %8111 = vmatprep.subr.mxu0 %v8595_v1 }
0x192a   : > { %8112 = vmatpush3.msra.mxu0 %v7461_v51  ;;  %v9646_v53 = vpop.f32.mrf.mxu1 }
0x192b   : > { %8113 = vmatprep.subr.mxu0 %v8595_v1 }
0x192c   : > { %8114 = vmatpush3.msra.mxu0 %v7460_v52  ;;  %v8108_v55 = vpop.f32.mrf.mxu1 }
0x192d   : > { %8115 = vmatprep.subr.mxu0 %v8595_v1 }
0x192e   : > { %8116 = vmatpush3.msra.mxu0 %v7459_v54 }
0x192f   : > { %8118 = vmatmul.mubr.msk.f32.vlgmr.msra.gmra.mxu0 %vm728_vm1, %v9496_v20  ;;  %8131 = vmatprep.subr.mxu0 %v8595_v1 }
0x1930   : > { %8132 = vmatpush3.msra.mxu0 %v7474_v56  ;;  %8139 = vmatprep.mubr.msk.f32.mxu0 %vm8596_vm0, %v8595_v1 }
0x1931   : > { %8133 = vmatprep.subr.mxu0 %v8595_v1 }
0x1932   : > { %v5020_v59 = vpop.f32.mrf.mxu1  ;;  %8134 = vmatpush3.msra.mxu0 %v7473_v10  ;;  %v7491_v10 = vld [vmem:[#allocation5 + $0x7] ss:$0 sm:$0xff] }
0x1933   : > { %v5021_v60 = vadd.f32 %v7469_v57, %v5020_v59  ;;  %8135 = vmatprep.subr.mxu0 %v8595_v1 }
0x1934   : > { %v8130_v0 = vpop.f32.mrf.mxu1  ;;  %8136 = vmatpush3.msra.mxu0 %v7472_v58  ;;  %v7485_v58 = vld [vmem:[#allocation3 + $0x7] ss:$0 sm:$0xff] }
0x1935   : > { %8137 = vmatprep.subr.mxu0 %v8595_v1  ;;  %8143 = vmatpush3.xpose.msk.msra.mxu1 %vm964_vm2, %v5021_v60  ;;  %v7497_v60 = vld [vmem:[#allocation7 + $0x7] ss:$0 sm:$0xff] }
0x1936   : > { %8138 = vmatpush3.msra.mxu0 %v7471_v61  ;;  %8147 = vmatprep.subr.mxu1 %v8595_v1 }
0x1937   : > { %8140 = vmatmul.mubr.msk.f32.vlgmr.msra.gmra.mxu0 %vm728_vm1, %v9496_v20  ;;  %8152 = vmatprep.subr.mxu0 %v8595_v1 }
0x1938   : > { %8154 = vmatprep.mubr.msk.f32.mxu0 %vm8596_vm0, %v8595_v1  ;;  %8153 = vmatpush3.msra.mxu0 %v5269_v22 }
0x1939   : > { %8168 = vmatprep.subr.mxu0 %v8595_v1 }
0x19e7   : > { %v9680_v2 = vpop.f32.mrf.mxu0 }
0x19e8   : > { %v4855_v52 = vadd.f32 %v9646_v53, %v9680_v2 }
0x19e9   : > { %v8103_v3 = vpop.f32.mrf.mxu0 }
0x19ef   : > { %v4937_v29 = vpop.f32.mrf.mxu0 }
0x19f0   : > { %v4938_v5 = vadd.f32 %v7463_v4, %v4937_v29 }
0x19f1   : > { %v8119_v6 = vpop.f32.mrf.mxu0 }
0x19f2   : > { %8145 = vmatmul.mubr.msk.f32.vlgmr.msra.gmra.mxu1 %vm964_vm2, %v4938_v5 }
0x19f3   : > { %8149 = vmatprep.mubr.msk.f32.mxu1 %vm8596_vm0, %v8595_v1 }
0x19f7   : > { %v5103_v11 = vpop.f32.mrf.mxu0 }
0x19f8   : > { %v5104_v30 = vadd.f32 %v7475_v7, %v5103_v11 }
0x19f9   : > { %v8141_v8 = vpop.f32.mrf.mxu0 }
0x19fa   : > { %8148 = vmatpush3.msra.mxu1 %v5104_v30  ;;  %v5755_v8 = vld [vmem:[#allocation8 + $0x38] sm:$0xff] }
0x19fb   : > { %8157 = vmatprep.subr.mxu1 %v8595_v1 }
0x1ab2   : > { %v5179_v9 = vpop.f32.mrf.mxu1 }
0x1ab3   : > { %v5183_v12 = vmul.f32 0.35355338, %v5179_v9 }
0x1ab4   : > { %v8146_v14 = vpop.f32.mrf.mxu1 }
0x1ab5   : > { %v5184_v15 = vsel %vm964_vm2, %v5183_v12, -inf }
0x1ab6   : > { %5185 = vmax.xlane.f32.xlu0 %v5184_v15 }
0x1b3f   : > { %v5186_v16 = vpop.xlane.xlu0 %5185 }
0x1b40   : > { %v5187_v17 = vsub.f32 %v5183_v12, %v5186_v16 }
0x1b42   : > { %v5188_v18 = vmul.f32 1.442695, %v5187_v17 }
0x1b44   : > { %8330 = vpow2.f32 %v5188_v18 }
0x1b51   : > { %v8331_v19 = vpop.eup %8330 }
0x1b52   : > { %v5190_v21 = vsel %vm964_vm2, %v8331_v19, 0.0 }
0x1b53   : > { %5191 = vadd.xlane.f32.xlu1 %v5190_v21 }
0x1bdc   : > { %v5192_v23 = vpop.xlane.xlu1 %5191 }
0x1bdd   : > { %8332 = vrcp.f32 %v5192_v23 }
0x1bea   : > { %v8333_v24 = vpop.eup %8332 }
0x1beb   : > { %v5194_v25 = vmul.f32 %v8333_v24, %v8331_v19  ;;  %v7504_v19 = vld [vmem:[%s10068_s8 + $0x1] ss:$0 sm:$0xff] }
0x1bed   : > { %8150 = vmatmul.mubr.msk.f32.vlgmr.msra.gmra.mxu1 %vm964_vm2, %v5194_v25 }
0x1bee   : > { %8158 = vmatpush3.msra.mxu1 %v7484_v26  ;;  %8165 = vmatprep.mubr.msk.f32.mxu1 %vm8596_vm0, %v8595_v1 }
0x1bef   : > { %8159 = vmatprep.subr.mxu1 %v8595_v1 }
0x1bf0   : > { %8160 = vmatpush3.msra.mxu1 %v7483_v27 }
0x1bf1   : > { %8161 = vmatprep.subr.mxu1 %v8595_v1 }
0x1bf2   : > { %8162 = vmatpush3.msra.mxu1 %v7482_v28 }
0x1bf3   : > { %8163 = vmatprep.subr.mxu1 %v8595_v1 }
0x1bf4   : > { %8164 = vmatpush3.msra.mxu1 %v7481_v31  ;;  %v7524_v31 = vld [vmem:[%s10071_s11 + $0x180] sm:$0xff] }
0x1bf5   : > { %8166 = vmatmul.mubr.msk.f32.vlgmr.msra.gmra.mxu1 %vm728_vm1, %v9496_v20  ;;  %8179 = vmatprep.subr.mxu1 %v8595_v1 }
0x1bf6   : > { %8180 = vmatpush3.msra.mxu1 %v7496_v34  ;;  %8187 = vmatprep.mubr.msk.f32.mxu1 %vm8596_vm0, %v8595_v1  ;;  %v7532_v34 = vld [vmem:[%s10071_s11 + $0x1c0] sm:$0xff] }
0x1bf7   : > { %8181 = vmatprep.subr.mxu1 %v8595_v1 }
0x1bf8   : > { %8182 = vmatpush3.msra.mxu1 %v7495_v37  ;;  %v7557_v37 = vcombine.high %v7524_v31, %v7532_v34 }
0x1bf9   : > { %8183 = vmatprep.subr.mxu1 %v8595_v1 }
0x1bfa   : > { %8184 = vmatpush3.msra.mxu1 %v7494_v38  ;;  %v7533_v38 = vld [vmem:[%s10071_s11 + $0x1c8] sm:$0xff] }
0x1bfb   : > { %8185 = vmatprep.subr.mxu1 %v8595_v1 }
0x1bfc   : > { %8186 = vmatpush3.msra.mxu1 %v7493_v39  ;;  %v7556_v39 = vcombine.low %v7524_v31, %v7532_v34  ;;  %v7530_v34 = vld [vmem:[%s10071_s11 + $0x1b0] sm:$0xff] }
0x1bfd   : > { %8188 = vmatmul.mubr.msk.f32.vlgmr.msra.gmra.mxu1 %vm728_vm1, %v9496_v20  ;;  %8200 = vmatprep.subr.mxu1 %v8595_v1 }
0x1bfe   : > { %8202 = vmatprep.mubr.msk.f32.mxu1 %vm8596_vm0, %v8595_v1  ;;  %8201 = vmatpush3.msra.mxu1 %v5755_v8 }
0x1cad   : > { %v5264_v41 = vpop.f32.mrf.mxu1 }
0x1cae   : > { %8155 = vmatmul.mubr.msk.f32.vlgmr.msra.gmra.mxu0 %vm964_vm2, %v5264_v41 }
0x1caf   : > { %8169 = vmatpush3.msra.mxu0 %v7490_v40  ;;  %v8151_v45 = vpop.f32.mrf.mxu1  ;;  %8176 = vmatprep.mubr.msk.f32.mxu0 %vm8596_vm0, %v8595_v1 }
0x1cb0   : > { %8170 = vmatprep.subr.mxu0 %v8595_v1  ;;  %v7516_v45 = vld [vmem:[%s10071_s11 + $0x140] sm:$0xff] }
0x1cb1   : > { %8171 = vmatpush3.msra.mxu0 %v7489_v42  ;;  %v7508_v42 = vld [vmem:[%s10071_s11 + $0x100] sm:$0xff] }
0x1cb2   : > { %8172 = vmatprep.subr.mxu0 %v8595_v1 }
0x1cb3   : > { %8173 = vmatpush3.msra.mxu0 %v7488_v46  ;;  %v7509_v46 = vld [vmem:[%s10071_s11 + $0x108] sm:$0xff] }
0x1cb4   : > { %8174 = vmatprep.subr.mxu0 %v8595_v1 }
0x1cb5   : > { %v5423_v48 = vpop.f32.mrf.mxu1  ;;  %8175 = vmatpush3.msra.mxu0 %v7487_v47  ;;  %v7541_v47 = vcombine.high %v7508_v42, %v7516_v45 }
0x1cb6   : > { %8177 = vmatmul.mubr.msk.f32.vlgmr.msra.gmra.mxu0 %vm728_vm1, %v9496_v20  ;;  %8190 = vmatprep.subr.mxu0 %v8595_v1  ;;  %v5424_v0 = vadd.f32 %v7485_v58, %v5423_v48  ;;  %v7517_v48 = vld [vmem:[%s10071_s11 + $0x148] sm:$0xff] }
0x1cb7   : > { %v8167_v43 = vpop.f32.mrf.mxu1  ;;  %8192 = vmatprep.mubr.msk.f32.mxu0 %vm8596_vm0, %v8595_v1 }
0x1cb8   : > { %v7540_v43 = vcombine.low %v7508_v42, %v7516_v45  ;;  %v7514_v45 = vld [vmem:[%s10071_s11 + $0x130] sm:$0xff] }
0x1cbd   : > { %v5589_v51 = vpop.f32.mrf.mxu1 }
0x1cbe   : > { %v5590_v3 = vadd.f32 %v7497_v60, %v5589_v51  ;;  %v7542_v51 = vcombine.low %v7509_v46, %v7517_v48 }
0x1cbf   : > { %v8189_v44 = vpop.f32.mrf.mxu1 }
0x1cc0   : > { %v7543_v44 = vcombine.high %v7509_v46, %v7517_v48  ;;  %v7522_v46 = vld [vmem:[%s10071_s11 + $0x170] sm:$0xff]  ;;  %v7523_v48 = vld [vmem:[%s10071_s11 + $0x178] sm:$0xff] }
0x1d6e   : > { %v5339_v54 = vpop.f32.mrf.mxu0 }
0x1d6f   : > { %v5343_v55 = vadd.f32 %v5339_v54, %v4855_v52  ;;  %v7526_v52 = vld [vmem:[%s10071_s11 + $0x190] sm:$0xff] }
0x1d70   : > { %v8156_v56 = vpop.f32.mrf.mxu0  ;;  %v7534_v54 = vld [vmem:[%s10071_s11 + $0x1d0] sm:$0xff] }
0x1d71   : > { %v7561_v56 = vcombine.high %v7526_v52, %v7534_v54 }
0x1d76   : > { %v5506_v57 = vpop.f32.mrf.mxu0 }
0x1d77   : > { %v5507_v59 = vadd.f32 %v7491_v10, %v5506_v57  ;;  %v7535_v10 = vld [vmem:[%s10071_s11 + $0x1d8] sm:$0xff]  ;;  %v7560_v57 = vcombine.low %v7526_v52, %v7534_v54  ;;  %v7596_v54 = vld [vmem:[%s10073_s13 + $0x180] sm:$0xff] }
0x1d78   : > { %v8178_v61 = vpop.f32.mrf.mxu0 }
0x1d79   : > { %8191 = vmatpush3.xpose.msk.msra.mxu0 %vm964_vm2, %v5507_v59 }
0x1d7a   : > { %8195 = vmatprep.subr.mxu0 %v8595_v1 }
0x1d7c   : > { %8193 = vmatmul.mubr.msk.f32.vlgmr.msra.gmra.mxu0 %vm964_vm2, %v5424_v0 }
0x1d7d   : > { %8196 = vmatpush3.msra.mxu0 %v5590_v3  ;;  %8197 = vmatprep.mubr.msk.f32.mxu0 %vm8596_vm0, %v8595_v1 }
0x1d7e   : > { %6165 = vmatprep.subr.bf16.mxu0 %v7557_v37  ;;  %v7531_v37 = vld [vmem:[%s10071_s11 + $0x1b8] sm:$0xff] }
0x1e3c   : > { %v5665_v53 = vpop.f32.mrf.mxu0 }
0x1e3d   : > { %v5669_v2 = vmul.f32 0.35355338, %v5665_v53  ;;  %v7506_v53 = vld [vmem:[%s10069_s9 + $0x1] ss:$0 sm:$0xff] }
0x1e3e   : > { %v8194_v4 = vpop.f32.mrf.mxu0 }
0x1e3f   : > { %v5670_v29 = vsel %vm964_vm2, %v5669_v2, -inf  ;;  %v7507_v4 = vld [vmem:[#allocation10 + $0x1] ss:$0 sm:$0xff] }
0x1e40   : > { %5671 = vmax.xlane.f32.xlu0 %v5670_v29 }
0x1ec9   : > { %v5672_v5 = vpop.xlane.xlu0 %5671 }
0x1eca   : > { %v5673_v6 = vsub.f32 %v5669_v2, %v5672_v5  ;;  %v7510_v5 = vld [vmem:[%s10071_s11 + $0x110] sm:$0xff] }
0x1ecc   : > { %v5674_v7 = vmul.f32 1.442695, %v5673_v6  ;;  %v7518_v6 = vld [vmem:[%s10071_s11 + $0x150] sm:$0xff] }
0x1ece   : > { %8334 = vpow2.f32 %v5674_v7  ;;  %v7511_v7 = vld [vmem:[%s10071_s11 + $0x118] sm:$0xff] }
0x1edb   : > { %v8335_v11 = vpop.eup %8334 }
0x1edc   : > { %v5676_v30 = vsel %vm964_vm2, %v8335_v11, 0.0 }
0x1edd   : > { %5677 = vadd.xlane.f32.xlu1 %v5676_v30 }
0x1f66   : > { %v5678_v9 = vpop.xlane.xlu1 %5677 }
0x1f67   : > { %8336 = vrcp.f32 %v5678_v9  ;;  %v7545_v9 = vcombine.high %v7510_v5, %v7518_v6 }
0x1f74   : > { %v8337_v12 = vpop.eup %8336 }
0x1f75   : > { %v5680_v1 = vmul.f32 %v8337_v12, %v8335_v11  ;;  %v7519_v11 = vld [vmem:[%s10071_s11 + $0x158] sm:$0xff] }
0x1f76   : > { %v7547_v12 = vcombine.high %v7511_v7, %v7519_v11 }
0x1f77   : > { %8198 = vmatmul.mubr.msk.f32.vlgmr.msra.gmra.mxu0 %vm964_vm2, %v5680_v1  ;;  %v7528_v1 = vld [vmem:[%s10071_s11 + $0x1a0] sm:$0xff] }
0x1f78   : > { %6185 = vmatprep.mubr.bf16.mxu0 %v8597_v13  ;;  %6166 = vmatpush1.bf16.msra.mxu0 %v7556_v39 }
0x1f79   : > { %6167 = vmatprep.subr.bf16.mxu0 %v7541_v47  ;;  %v7515_v47 = vld [vmem:[%s10071_s11 + $0x138] sm:$0xff] }
0x1f7a   : > { %v7555_v52 = vcombine.high %v7515_v47, %v7523_v48 }
0x1f7c   : > { %6168 = vmatpush1.bf16.msra.mxu0 %v7540_v43 }
0x1f7d   : > { %6247 = vmatprep.subr.bf16.mxu0 %v7561_v56  ;;  %v7597_v56 = vld [vmem:[%s10073_s13 + $0x188] sm:$0xff] }
0x2037   : > { %v5750_v14 = vpop.f32.mrf.mxu0 }
0x2038   : > { %8203 = vmatmul.mubr.msk.f32.vlgmr.msra.gmra.mxu1 %vm964_vm2, %v5750_v14  ;;  %v7536_v14 = vld [vmem:[%s10071_s11 + $0x1e0] sm:$0xff] }
0x2039   : > { %v8199_v15 = vpop.f32.mrf.mxu0  ;;  %6226 = vmatprep.mubr.bf16.mxu1 %v8597_v13 }
0x203a   : > { %v7529_v15 = vld [vmem:[%s10071_s11 + $0x1a8] sm:$0xff] }
0x20f8   : > { %v5825_v16 = vpop.f32.mrf.mxu1 }
0x20f9   : > { %v5829_v17 = vadd.f32 %v5825_v16, %v5343_v55  ;;  %v7527_v55 = vld [vmem:[%s10071_s11 + $0x198] sm:$0xff]  ;;  %v7537_v16 = vld [vmem:[%s10071_s11 + $0x1e8] sm:$0xff] }
0x20fa   : > { %v8204_v18 = vpop.f32.mrf.mxu1  ;;  %v7562_v58 = vcombine.low %v7527_v55, %v7535_v10  ;;  %v7563_v59 = vcombine.high %v7527_v55, %v7535_v10  ;;  %v7604_v55 = vld [vmem:[%s10073_s13 + $0x1c0] sm:$0xff]  ;;  %v7605_v10 = vld [vmem:[%s10073_s13 + $0x1c8] sm:$0xff] }
0x20fb   : > { %v5830_v21 = vadd.f32 %v5829_v17, %v9496_v20  ;;  %v7525_v20 = vld [vmem:[%s10071_s11 + $0x188] sm:$0xff]  ;;  %v7544_v17 = vcombine.low %v7510_v5, %v7518_v6  ;;  %v7546_v18 = vcombine.low %v7511_v7, %v7519_v11  ;;  %v7598_v7 = vld [vmem:[%s10073_s13 + $0x190] sm:$0xff] }
0x20fc   : > { %v7558_v40 = vcombine.low %v7525_v20, %v7533_v38  ;;  %v7559_v41 = vcombine.high %v7525_v20, %v7533_v38  ;;  %v7538_v20 = vld [vmem:[%s10071_s11 + $0x1f0] sm:$0xff]  ;;  %v7539_v38 = vld [vmem:[%s10071_s11 + $0x1f8] sm:$0xff] }
0x20fd   : > { %v5839_v22 = vadd.f32 %v7504_v19, %v5830_v21  ;;  %v7565_v19 = vcombine.high %v7528_v1, %v7536_v14  ;;  %v7567_v21 = vcombine.high %v7529_v15, %v7537_v16  ;;  %v7571_v42 = vcombine.high %v7531_v37, %v7539_v38  ;;  %v7606_v11 = vld [vmem:[%s10073_s13 + $0x1d0] sm:$0xff] }
0x20fe   : > { %6206 = vmatprep.subr.bf16.mxu1 %v7559_v41  ;;  %v7569_v41 = vcombine.high %v7530_v34, %v7538_v20  ;;  %v7568_v43 = vcombine.low %v7530_v34, %v7538_v20 }
0x20ff   : > { %v5844_v23 = vsel %vm728_vm1, %v5839_v22, 0.0  ;;  %6207 = vmatpush1.bf16.msra.mxu1 %v7558_v40 }
0x2100   : > { %5845 = vadd.xlane.f32.xlu0 %v5844_v23  ;;  %6208 = vmatprep.subr.bf16.mxu1 %v7543_v44  ;;  %v7520_v23 = vld [vmem:[%s10071_s11 + $0x160] sm:$0xff]  ;;  %v7553_v44 = vcombine.high %v7514_v45, %v7522_v46 }
0x2103   : > { %6209 = vmatpush1.bf16.msra.mxu1 %v7542_v51  ;;  %v7570_v51 = vcombine.low %v7531_v37, %v7539_v38 }
0x2104   : > { %6288 = vmatprep.subr.bf16.mxu1 %v7563_v59  ;;  %v7630_v59 = vcombine.high %v7596_v54, %v7604_v55 }
0x2189   : > { %v5846_v24 = vpop.xlane.xlu0 %5845 }
0x218a   : > { %v5847_v25 = vmul.f32 0.03125, %v5846_v24  ;;  %v7513_v24 = vld [vmem:[%s10071_s11 + $0x128] sm:$0xff] }
0x218c   : > { %v5848_v26 = vsub.f32 %v5839_v22, %v5847_v25  ;;  %v7512_v22 = vld [vmem:[%s10071_s11 + $0x120] sm:$0xff]  ;;  %v7521_v25 = vld [vmem:[%s10071_s11 + $0x168] sm:$0xff] }
0x218d   : > { %v7551_v31 = vcombine.high %v7513_v24, %v7521_v25  ;;  %v7548_v39 = vcombine.low %v7512_v22, %v7520_v23  ;;  %v7550_v40 = vcombine.low %v7513_v24, %v7521_v25 }
0x218e   : > { %v5849_v27 = vmul.f32 %v5848_v26, %v5848_v26 }
0x2190   : > { %v5850_v28 = vsel %vm728_vm1, %v5849_v27, 0.0  ;;  %v7566_v27 = vcombine.low %v7529_v15, %v7537_v16  ;;  %v9937_v16 = vld [vmem:[#allocation11 + $0x10] sm:$0xff] }
0x2191   : > { %5851 = vadd.xlane.f32.xlu1 %v5850_v28  ;;  %v7549_v28 = vcombine.high %v7512_v22, %v7520_v23 }
0x221a   : > { %v5852_v60 = vpop.xlane.xlu1 %5851 }
0x221b   : > { %v5853_v61 = vmul.f32 0.03125, %v5852_v60  ;;  %v7632_v60 = vcombine.high %v7597_v56, %v7605_v10 }
0x221d   : > { %v5854_v0 = vadd.f32 1e-05, %v5853_v61  ;;  %v7629_v61 = vcombine.low %v7596_v54, %v7604_v55 }
0x221f   : > { %8338 = vrsqrt.f32 %v5854_v0  ;;  %v7631_v0 = vcombine.low %v7597_v56, %v7605_v10 }
0x222c   : > { %v8339_v3 = vpop.eup %8338 }
0x222d   : > { %v5856_v2 = vmul.f32 %v8339_v3, %v5848_v26  ;;  %v7564_v26 = vcombine.low %v7528_v1, %v7536_v14  ;;  %v7580_v3 = vld [vmem:[%s10073_s13 + $0x100] sm:$0xff]  ;;  %v7633_v1 = vcombine.low %v7598_v7, %v7606_v11 }
0x222f   : > { %v5863_v29 = vmul.f32 %v7506_v53, %v5856_v2  ;;  %v7581_v53 = vld [vmem:[%s10073_s13 + $0x108] sm:$0xff] }
0x2231   : > { %v9825_v30 = vadd.f32 %v7507_v4, %v5863_v29  ;;  %v7589_v4 = vld [vmem:[%s10073_s13 + $0x148] sm:$0xff] }
0x2232   : > { %v7615_v5 = vcombine.low %v7581_v53, %v7589_v4  ;;  %v7616_v6 = vcombine.high %v7581_v53, %v7589_v4  ;;  %v7600_v4 = vld [vmem:[%s10073_s13 + $0x1a0] sm:$0xff] }
0x2233   : > { %v9829_v8 = vpack.c.bf16 %v9825_v30, %v9825_v30 }
0x2235   : > { %7572 = vmatmul.mubr.msk.bf16.vlgmr.msra.gmra.mxu0 %vm728_vm1, %v9829_v8  ;;  %7573 = vmatmul.mubr.msk.bf16.vlgmr.msra.gmra.mxu1 %vm728_vm1, %v9829_v8 }
0x2236   : > { %6248 = vmatpush1.bf16.msra.mxu0 %v7560_v57  ;;  %6289 = vmatpush1.bf16.msra.mxu1 %v7562_v58  ;;  %v7552_v57 = vcombine.low %v7514_v45, %v7522_v46  ;;  %v7554_v58 = vcombine.low %v7515_v47, %v7523_v48  ;;  %v7583_v45 = vld [vmem:[%s10073_s13 + $0x118] sm:$0xff] }
0x2237   : > { %6249 = vmatprep.subr.bf16.mxu0 %v7545_v9  ;;  %6290 = vmatprep.subr.bf16.mxu1 %v7547_v12  ;;  %v7634_v9 = vcombine.high %v7598_v7, %v7606_v11  ;;  %v7607_v12 = vld [vmem:[%s10073_s13 + $0x1d8] sm:$0xff]  ;;  %v7601_v7 = vld [vmem:[%s10073_s13 + $0x1a8] sm:$0xff] }
0x2238   : > { %6267 = vmatprep.mubr.bf16.mxu0 %v8597_v13  ;;  %6308 = vmatprep.mubr.bf16.mxu1 %v8597_v13  ;;  %v7591_v46 = vld [vmem:[%s10073_s13 + $0x158] sm:$0xff]  ;;  %v7609_v11 = vld [vmem:[%s10073_s13 + $0x1e8] sm:$0xff] }
0x223a   : > { %6250 = vmatpush1.bf16.msra.mxu0 %v7544_v17  ;;  %6291 = vmatpush1.bf16.msra.mxu1 %v7546_v18  ;;  %v5913_v17 = vrot.slane %v9937_v16, %v9327_v32  ;;  %v5921_v18 = vrot.slane %v9937_v16, %v9329_v33 }
0x223b   : > { %6329 = vmatprep.subr.bf16.mxu0 %v7565_v19  ;;  %6370 = vmatprep.subr.bf16.mxu1 %v7567_v21  ;;  %v5917_v19 = vrot.slane %v9937_v16, %v9333_v35  ;;  %v5925_v21 = vrot.slane %v9937_v16, %v9335_v36 }
0x223d   : > { %7574 = vmatmul.mubr.msk.bf16.vlgmr.msra.gmra.mxu0 %vm728_vm1, %v9829_v8  ;;  %7575 = vmatmul.mubr.msk.bf16.vlgmr.msra.gmra.mxu1 %vm728_vm1, %v9829_v8 }
0x223e   : > { %6330 = vmatpush1.bf16.msra.mxu0 %v7564_v26  ;;  %6371 = vmatpush1.bf16.msra.mxu1 %v7566_v27 }
0x223f   : > { %6331 = vmatprep.subr.bf16.mxu0 %v7549_v28  ;;  %6372 = vmatprep.subr.bf16.mxu1 %v7551_v31 }
0x2240   : > { %6349 = vmatprep.mubr.bf16.mxu0 %v8597_v13  ;;  %6390 = vmatprep.mubr.bf16.mxu1 %v8597_v13 }
0x2242   : > { %6332 = vmatpush1.bf16.msra.mxu0 %v7548_v39  ;;  %6373 = vmatpush1.bf16.msra.mxu1 %v7550_v40  ;;  %v7582_v39 = vld [vmem:[%s10073_s13 + $0x110] sm:$0xff] }
0x2243   : > { %6411 = vmatprep.subr.bf16.mxu0 %v7569_v41  ;;  %6452 = vmatprep.subr.bf16.mxu1 %v7571_v42  ;;  %v7590_v42 = vld [vmem:[%s10073_s13 + $0x150] sm:$0xff] }
0x2245   : > { %7576 = vmatmul.mubr.msk.bf16.vlgmr.msra.gmra.mxu0 %vm728_vm1, %v9829_v8  ;;  %7577 = vmatmul.mubr.msk.bf16.vlgmr.msra.gmra.mxu1 %vm728_vm1, %v9829_v8 }
0x2246   : > { %6412 = vmatpush1.bf16.msra.mxu0 %v7568_v43  ;;  %6453 = vmatpush1.bf16.msra.mxu1 %v7570_v51 }
0x2247   : > { %6413 = vmatprep.subr.bf16.mxu0 %v7553_v44  ;;  %6454 = vmatprep.subr.bf16.mxu1 %v7555_v52  ;;  %v5933_v44 = vrot.slane %v9937_v16, %v9345_v49  ;;  %v5941_v52 = vrot.slane %v9937_v16, %v9347_v50 }
0x2248   : > { %6431 = vmatprep.mubr.bf16.mxu0 %v8597_v13  ;;  %6472 = vmatprep.mubr.bf16.mxu1 %v8597_v13  ;;  %v7588_v13 = vld [vmem:[%s10073_s13 + $0x140] sm:$0xff] }
0x2249   : > { %v7614_v2 = vcombine.high %v7580_v3, %v7588_v13  ;;  %v7613_v29 = vcombine.low %v7580_v3, %v7588_v13  ;;  %v5929_v3 = vrot.slane %v9937_v16, %v9363_v62  ;;  %v5937_v13 = vrot.slane %v9937_v16, %v9365_v63 }
0x224a   : > { %6414 = vmatpush1.bf16.msra.mxu0 %v7552_v57  ;;  %6455 = vmatpush1.bf16.msra.mxu1 %v7554_v58  ;;  %v7618_v57 = vcombine.high %v7582_v39, %v7590_v42  ;;  %v7620_v58 = vcombine.high %v7583_v45, %v7591_v46 }
0x224b   : > { %6726 = vmatprep.subr.bf16.mxu0 %v7630_v59  ;;  %6766 = vmatprep.subr.bf16.mxu1 %v7632_v60 }
0x224d   : > { %7578 = vmatmul.mubr.msk.bf16.vlgmr.msra.gmra.mxu0 %vm728_vm1, %v9829_v8  ;;  %7579 = vmatmul.mubr.msk.bf16.vlgmr.msra.gmra.mxu1 %vm728_vm1, %v9829_v8  ;;  %v7599_v8 = vld [vmem:[%s10073_s13 + $0x198] sm:$0xff] }
0x224e   : > { %6727 = vmatpush1.bf16.xpose.msra.mxu0 %v7629_v61  ;;  %6767 = vmatpush1.bf16.xpose.msra.mxu1 %v7631_v0  ;;  %v7635_v14 = vcombine.low %v7599_v8, %v7607_v12  ;;  %v7636_v15 = vcombine.high %v7599_v8, %v7607_v12  ;;  %v9979_v12 = vld [vmem:[#allocation11 + $0x18] sm:$0xff] }
0x224f   : > { %6728 = vmatprep.subr.bf16.mxu0 %v7614_v2  ;;  %6768 = vmatprep.subr.bf16.mxu1 %v7616_v6  ;;  %v7608_v6 = vld [vmem:[%s10073_s13 + $0x1e0] sm:$0xff] }
0x2256   : > { %6729 = vmatpush1.bf16.xpose.msra.mxu0 %v7613_v29  ;;  %6769 = vmatpush1.bf16.xpose.msra.mxu1 %v7615_v5 }
0x2257   : > { %6806 = vmatprep.subr.bf16.mxu0 %v7634_v9  ;;  %6846 = vmatprep.subr.bf16.mxu1 %v7636_v15 }
0x22f5   : > { %v6187_v22 = vpop.f32.mrf.mxu0  ;;  %v6228_v23 = vpop.f32.mrf.mxu1 }
0x22f6   : > { %v6188_v24 = vadd.f32 %v6187_v22, %v5913_v17  ;;  %v6229_v25 = vadd.f32 %v6228_v23, %v5921_v18  ;;  %v5949_v17 = vrot.slane %v9979_v12, %v9333_v35  ;;  %v5957_v18 = vrot.slane %v9979_v12, %v9335_v36 }
0x22f7   : > { %v6189_v26 = vpop.f32.mrf.mxu0  ;;  %v6230_v27 = vpop.f32.mrf.mxu1 }
0x22f8   : > { %v6190_v28 = vadd.f32 %v6189_v26, %v5917_v19  ;;  %v6231_v31 = vadd.f32 %v6230_v27, %v5925_v21  ;;  %v6481_v34 = vmax.f32 %v6188_v24, 0.0  ;;  %v6483_v20 = vmax.f32 %v6229_v25, 0.0 }
0x22f9   : > { %v6191_v37 = vpop.f32.mrf.mxu0  ;;  %v6232_v38 = vpop.f32.mrf.mxu1  ;;  %v7638_v24 = vcombine.high %v7600_v4, %v7608_v6  ;;  %v7640_v25 = vcombine.high %v7601_v7, %v7609_v11 }
0x22fa   : > { %v6482_v40 = vmax.f32 %v6190_v28, 0.0  ;;  %v6484_v41 = vmax.f32 %v6231_v31, 0.0  ;;  %v6497_v54 = vpack.c.bf16 %v6481_v34, %v6481_v34  ;;  %v6499_v55 = vpack.c.bf16 %v6483_v20, %v6483_v20 }
0x22fb   : > { %v6192_v47 = vpop.f32.mrf.mxu0  ;;  %v6233_v48 = vpop.f32.mrf.mxu1 }
0x22fc   : > { %v6498_v43 = vpack.c.bf16 %v6482_v40, %v6482_v40  ;;  %v6500_v51 = vpack.c.bf16 %v6484_v41, %v6484_v41  ;;  %v7637_v48 = vcombine.low %v7600_v4, %v7608_v6  ;;  %v7603_v4 = vld [vmem:[%s10073_s13 + $0x1b8] sm:$0xff] }
0x22fd   : > { %v6269_v56 = vpop.f32.mrf.mxu0  ;;  %v6310_v10 = vpop.f32.mrf.mxu1 }
0x22fe   : > { %6746 = vmatprep.mubr.bf16.mxu0 %v6498_v43  ;;  %6786 = vmatprep.mubr.bf16.mxu1 %v6500_v51  ;;  %v6270_v19 = vadd.f32 %v6269_v56, %v5929_v3  ;;  %v6311_v21 = vadd.f32 %v6310_v10, %v5937_v13  ;;  %v7602_v3 = vld [vmem:[%s10073_s13 + $0x1b0] sm:$0xff] }
0x22ff   : > { %v6271_v59 = vpop.f32.mrf.mxu0  ;;  %v6312_v60 = vpop.f32.mrf.mxu1  ;;  %6747 = vmatmul.mubr.bf16.vlgmr.msra.gmra.mxu0 %v6497_v54  ;;  %6787 = vmatmul.mubr.bf16.vlgmr.msra.gmra.mxu1 %v6499_v55  ;;  %v7639_v55 = vcombine.low %v7601_v7, %v7609_v11  ;;  %v7610_v13 = vld [vmem:[%s10073_s13 + $0x1f0] sm:$0xff] }
0x2300   : > { %v6272_v61 = vadd.f32 %v6271_v59, %v5933_v44  ;;  %v6313_v0 = vadd.f32 %v6312_v60, %v5941_v52  ;;  %6807 = vmatpush1.bf16.xpose.msra.mxu0 %v7633_v1  ;;  %6847 = vmatpush1.bf16.xpose.msra.mxu1 %v7635_v14  ;;  %v7617_v1 = vcombine.low %v7582_v39, %v7590_v42  ;;  %v6485_v34 = vmax.f32 %v6270_v19, 0.0  ;;  %v7584_v39 = vld [vmem:[%s10073_s13 + $0x120] sm:$0xff] }
0x2301   : > { %v6273_v53 = vpop.f32.mrf.mxu0  ;;  %v6314_v2 = vpop.f32.mrf.mxu1  ;;  %6808 = vmatprep.subr.bf16.mxu0 %v7618_v57  ;;  %6848 = vmatprep.subr.bf16.mxu1 %v7620_v58  ;;  %v7619_v14 = vcombine.low %v7583_v45, %v7591_v46  ;;  %v6487_v20 = vmax.f32 %v6311_v21, 0.0  ;;  %v7592_v42 = vld [vmem:[%s10073_s13 + $0x160] sm:$0xff]  ;;  %v7585_v45 = vld [vmem:[%s10073_s13 + $0x128] sm:$0xff]  ;;  %v5945_v59 = vrot.slane %v9979_v12, %v9327_v32  ;;  %v5965_v32 = vrot.slane %v9979_v12, %v9345_v49  ;;  %v7587_v21 = vld [vmem:[%s10073_s13 + $0x138] sm:$0xff] }
0x2302   : > { %v6486_v29 = vmax.f32 %v6272_v61, 0.0  ;;  %v6488_v5 = vmax.f32 %v6313_v0, 0.0  ;;  %v7593_v46 = vld [vmem:[%s10073_s13 + $0x168] sm:$0xff]  ;;  %v6501_v43 = vpack.c.bf16 %v6485_v34, %v6485_v34  ;;  %v7622_v56 = vcombine.high %v7584_v39, %v7592_v42 }
0x2303   : > { %v6274_v8 = vpop.f32.mrf.mxu0  ;;  %v6315_v9 = vpop.f32.mrf.mxu1  ;;  %v6503_v51 = vpack.c.bf16 %v6487_v20, %v6487_v20  ;;  %v7624_v10 = vcombine.high %v7585_v45, %v7593_v46  ;;  %v5953_v0 = vrot.slane %v9979_v12, %v9329_v33  ;;  %v7611_v33 = vld [vmem:[%s10073_s13 + $0x1f8] sm:$0xff]  ;;  %v7623_v7 = vcombine.low %v7585_v45, %v7593_v46 }
0x2304   : > { %v6502_v15 = vpack.c.bf16 %v6486_v29, %v6486_v29  ;;  %v6504_v16 = vpack.c.bf16 %v6488_v5, %v6488_v5  ;;  %v5973_v29 = vrot.slane %v9979_v12, %v9347_v50  ;;  %v7621_v5 = vcombine.low %v7584_v39, %v7592_v42  ;;  %v7594_v50 = vld [vmem:[%s10073_s13 + $0x170] sm:$0xff] }
0x2305   : > { %v6351_v22 = vpop.f32.mrf.mxu0  ;;  %v6392_v23 = vpop.f32.mrf.mxu1  ;;  %v7642_v11 = vcombine.high %v7602_v3, %v7610_v13  ;;  %v7644_v9 = vcombine.high %v7603_v4, %v7611_v33  ;;  %v7641_v19 = vcombine.low %v7602_v3, %v7610_v13  ;;  %v5961_v34 = vrot.slane %v9979_v12, %v9363_v62 }
0x2306   : > { %6826 = vmatprep.mubr.bf16.mxu0 %v6502_v15  ;;  %6866 = vmatprep.mubr.bf16.mxu1 %v6504_v16  ;;  %v6352_v6 = vadd.f32 %v6351_v22, %v5945_v59  ;;  %v6393_v8 = vadd.f32 %v6392_v23, %v5953_v0  ;;  %v7595_v22 = vld [vmem:[%s10073_s13 + $0x178] sm:$0xff]  ;;  %v5969_v20 = vrot.slane %v9979_v12, %v9365_v63 }
0x2307   : > { %v6353_v26 = vpop.f32.mrf.mxu0  ;;  %v6394_v27 = vpop.f32.mrf.mxu1 }
0x2308   : > { %v6354_v28 = vadd.f32 %v6353_v26, %v5949_v17  ;;  %v6395_v31 = vadd.f32 %v6394_v27, %v5957_v18  ;;  %6809 = vmatpush1.bf16.xpose.msra.mxu0 %v7617_v1  ;;  %6849 = vmatpush1.bf16.xpose.msra.mxu1 %v7619_v14  ;;  %v6489_v14 = vmax.f32 %v6352_v6, 0.0  ;;  %v6491_v15 = vmax.f32 %v6393_v8, 0.0  ;;  %v7586_v17 = vld [vmem:[%s10073_s13 + $0x130] sm:$0xff] }
0x2309   : > { %v6355_v35 = vpop.f32.mrf.mxu0  ;;  %v6396_v37 = vpop.f32.mrf.mxu1  ;;  %6886 = vmatprep.subr.bf16.mxu0 %v7638_v24  ;;  %6926 = vmatprep.subr.bf16.mxu1 %v7640_v25  ;;  %v7643_v24 = vcombine.low %v7603_v4, %v7611_v33  ;;  %v7626_v26 = vcombine.high %v7586_v17, %v7594_v50 }
0x230a   : > { %v6490_v36 = vmax.f32 %v6354_v28, 0.0  ;;  %v6492_v38 = vmax.f32 %v6395_v31, 0.0  ;;  %v6505_v23 = vpack.c.bf16 %v6489_v14, %v6489_v14  ;;  %v6507_v25 = vpack.c.bf16 %v6491_v15, %v6491_v15 }
0x230b   : > { %v6356_v40 = vpop.f32.mrf.mxu0  ;;  %v6397_v41 = vpop.f32.mrf.mxu1  ;;  %v7628_v28 = vcombine.high %v7587_v21, %v7595_v22  ;;  %v7625_v35 = vcombine.low %v7586_v17, %v7594_v50 }
0x230c   : > { %v6506_v47 = vpack.c.bf16 %v6490_v36, %v6490_v36  ;;  %v6508_v44 = vpack.c.bf16 %v6492_v38, %v6492_v38  ;;  %v7627_v36 = vcombine.low %v7587_v21, %v7595_v22 }
0x230d   : > { %v9997_v52 = vpop.f32.mrf.mxu0  ;;  %v9999_v54 = vpop.f32.mrf.mxu1 }
0x230e   : > { %v6434_v37 = vadd.f32 %v9997_v52, %v5961_v34  ;;  %v6475_v38 = vadd.f32 %v9999_v54, %v5969_v20  ;;  %v7648_v34 = vld [vmem:[%s10076_s16 + $0x1] ss:$0 sm:$0xff] }
0x230f   : > { %6827 = vmatmul.mubr.bf16.vlgmr.msra.gmra.mxu0 %v6501_v43  ;;  %6867 = vmatmul.mubr.bf16.vlgmr.msra.gmra.mxu1 %v6503_v51  ;;  %v6435_v57 = vpop.f32.mrf.mxu0  ;;  %v6476_v58 = vpop.f32.mrf.mxu1 }
0x2310   : > { %6887 = vmatpush1.bf16.xpose.msra.mxu0 %v7637_v48  ;;  %6906 = vmatprep.mubr.bf16.mxu0 %v6506_v47  ;;  %v6436_v49 = vadd.f32 %v6435_v57, %v5965_v32  ;;  %v6477_v1 = vadd.f32 %v6476_v58, %v5973_v29  ;;  %v6493_v39 = vmax.f32 %v6434_v37, 0.0  ;;  %v6495_v40 = vmax.f32 %v6475_v38, 0.0  ;;  %v7612_v58 = vld [vmem:[#allocation13 + $0x1] ss:$0 sm:$0xff] }
0x2311   : > { %6927 = vmatpush1.bf16.xpose.msra.mxu1 %v7639_v55  ;;  %6946 = vmatprep.mubr.bf16.mxu1 %v6508_v44  ;;  %v6437_v60 = vpop.f32.mrf.mxu0  ;;  %v6478_v61 = vpop.f32.mrf.mxu1 }
0x2312   : > { %6888 = vmatprep.subr.bf16.mxu0 %v7622_v56  ;;  %6928 = vmatprep.subr.bf16.mxu1 %v7624_v10  ;;  %v6494_v16 = vmax.f32 %v6436_v49, 0.0  ;;  %v6496_v18 = vmax.f32 %v6477_v1, 0.0  ;;  %v6509_v41 = vpack.c.bf16 %v6493_v39, %v6493_v39  ;;  %v6511_v62 = vpack.c.bf16 %v6495_v40, %v6495_v40  ;;  %v7650_v39 = vld [vmem:[#allocation2] ss:$0 sm:$0xff] }
0x2313   : > { %v6438_v53 = vpop.f32.mrf.mxu0  ;;  %v6479_v2 = vpop.f32.mrf.mxu1 }
0x2314   : > { %v6510_v27 = vpack.c.bf16 %v6494_v16, %v6494_v16  ;;  %v6512_v31 = vpack.c.bf16 %v6496_v18, %v6496_v18 }
0x2318   : > { %6889 = vmatpush1.bf16.xpose.msra.mxu0 %v7621_v5 }
0x2319   : > { %6929 = vmatpush1.bf16.xpose.msra.mxu1 %v7623_v7  ;;  %6966 = vmatprep.subr.bf16.mxu0 %v7642_v11 }
0x231a   : > { %7006 = vmatprep.subr.bf16.mxu1 %v7644_v9 }
0x231f   : > { %6907 = vmatmul.mubr.bf16.vlgmr.msra.gmra.mxu0 %v6505_v23 }
0x2320   : > { %6947 = vmatmul.mubr.bf16.vlgmr.msra.gmra.mxu1 %v6507_v25  ;;  %6967 = vmatpush1.bf16.xpose.msra.mxu0 %v7641_v19 }
0x2321   : > { %6986 = vmatprep.mubr.bf16.mxu0 %v6510_v27  ;;  %7007 = vmatpush1.bf16.xpose.msra.mxu1 %v7643_v24 }
0x2322   : > { %7026 = vmatprep.mubr.bf16.mxu1 %v6512_v31  ;;  %6968 = vmatprep.subr.bf16.mxu0 %v7626_v26 }
0x2323   : > { %7008 = vmatprep.subr.bf16.mxu1 %v7628_v28 }
0x2328   : > { %6969 = vmatpush1.bf16.xpose.msra.mxu0 %v7625_v35  ;;  %v7649_v35 = vld [vmem:[#allocation14] ss:$0 sm:$0xff] }
0x2329   : > { %7009 = vmatpush1.bf16.xpose.msra.mxu1 %v7627_v36 }
0x232f   : > { %6987 = vmatmul.mubr.bf16.vlgmr.msra.gmra.mxu0 %v6509_v41 }
0x2330   : > { %7027 = vmatmul.mubr.bf16.vlgmr.msra.gmra.mxu1 %v6511_v62 }
0x23bf   : > { %v6748_v42 = vpop.f32.mrf.mxu0  ;;  %v6788_v45 = vpop.f32.mrf.mxu1 }
0x23c0   : > { %v6749_v59 = vadd.f32 %v7612_v58, %v6748_v42 }
0x23c1   : > { %v6750_v63 = vpop.f32.mrf.mxu0  ;;  %v6790_v12 = vpop.f32.mrf.mxu1 }
0x23c2   : > { %v6789_v3 = vadd.f32 %v6788_v45, %v6749_v59 }
0x23c3   : > { %v6751_v46 = vpop.f32.mrf.mxu0  ;;  %v6791_v47 = vpop.f32.mrf.mxu1 }
0x23c5   : > { %v6752_v48 = vpop.f32.mrf.mxu0  ;;  %v6792_v43 = vpop.f32.mrf.mxu1 }
0x23cf   : > { %v6828_v51 = vpop.f32.mrf.mxu0  ;;  %v6868_v44 = vpop.f32.mrf.mxu1 }
0x23d0   : > { %v6829_v53 = vadd.f32 %v6828_v51, %v6789_v3 }
0x23d1   : > { %v6830_v52 = vpop.f32.mrf.mxu0  ;;  %v6870_v54 = vpop.f32.mrf.mxu1 }
0x23d2   : > { %v6869_v29 = vadd.f32 %v6868_v44, %v6829_v53 }
0x23d3   : > { %v6831_v55 = vpop.f32.mrf.mxu0  ;;  %v6871_v56 = vpop.f32.mrf.mxu1 }
0x23d5   : > { %v6832_v10 = vpop.f32.mrf.mxu0  ;;  %v6872_v57 = vpop.f32.mrf.mxu1 }
0x23df   : > { %v6908_v60 = vpop.f32.mrf.mxu0 }
0x23e0   : > { %v6948_v61 = vpop.f32.mrf.mxu1  ;;  %v6909_v5 = vadd.f32 %v6908_v60, %v6869_v29 }
0x23e1   : > { %v6910_v0 = vpop.f32.mrf.mxu0 }
0x23e2   : > { %v6950_v13 = vpop.f32.mrf.mxu1  ;;  %v6949_v6 = vadd.f32 %v6948_v61, %v6909_v5 }
0x23e3   : > { %v6911_v32 = vpop.f32.mrf.mxu0 }
0x23e4   : > { %v6951_v2 = vpop.f32.mrf.mxu1 }
0x23e5   : > { %v6912_v4 = vpop.f32.mrf.mxu0 }
0x23e6   : > { %v6952_v33 = vpop.f32.mrf.mxu1 }
0x23ef   : > { %v6988_v7 = vpop.f32.mrf.mxu0 }
0x23f0   : > { %v6989_v11 = vadd.f32 %v6988_v7, %v6949_v6  ;;  %v7028_v8 = vpop.f32.mrf.mxu1 }
0x23f1   : > { %v6990_v9 = vpop.f32.mrf.mxu0 }
0x23f2   : > { %v7029_v49 = vadd.f32 %v7028_v8, %v6989_v11  ;;  %v7030_v1 = vpop.f32.mrf.mxu1 }
0x23f3   : > { %v6991_v14 = vpop.f32.mrf.mxu0 }
0x23f4   : > { %v7031_v15 = vpop.f32.mrf.mxu1  ;;  %v7034_v16 = vadd.f32 %v7029_v49, %v9825_v30  ;;  %v7647_v30 = vld [vmem:[%s10075_s15 + $0x1] ss:$0 sm:$0xff] }
0x23f5   : > { %v6992_v17 = vpop.f32.mrf.mxu0 }
0x23f6   : > { %v7032_v50 = vpop.f32.mrf.mxu1  ;;  %v7039_v18 = vsel %vm728_vm1, %v7034_v16, 0.0 }
0x23f7   : > { %7040 = vadd.xlane.f32.xlu0 %v7039_v18 }
0x2480   : > { %v7041_v19 = vpop.xlane.xlu0 %7040 }
0x2481   : > { %v7042_v21 = vmul.f32 0.03125, %v7041_v19 }
0x2483   : > { %v7043_v22 = vsub.f32 %v7034_v16, %v7042_v21 }
0x2485   : > { %v7044_v23 = vmul.f32 %v7043_v22, %v7043_v22 }
0x2487   : > { %v7045_v24 = vsel %vm728_vm1, %v7044_v23, 0.0 }
0x2488   : > { %7046 = vadd.xlane.f32.xlu1 %v7045_v24 }
0x2511   : > { %v7047_v25 = vpop.xlane.xlu1 %7046 }
0x2512   : > { %v7048_v26 = vmul.f32 0.03125, %v7047_v25 }
0x2514   : > { %v7049_v27 = vadd.f32 1e-05, %v7048_v26 }
0x2516   : > { %8340 = vrsqrt.f32 %v7049_v27 }
0x2523   : > { %v8341_v28 = vpop.eup %8340 }
0x2524   : > { %v7051_v31 = vmul.f32 %v8341_v28, %v7043_v22 }
0x2526   : > { %v7058_v20 = vmul.f32 %v7647_v30, %v7051_v31 }
0x2528   : > { %v7065_v37 = vadd.f32 %v7648_v34, %v7058_v20 }
0x252a   : > { %v7073_v36 = vmul.f32 %v7649_v35, %v7065_v37 }
0x252c   : > { %v7074_v38 = vsel %vm728_vm1, %v7073_v36, 0.0 }
0x252d   : > { %7075 = vadd.xlane.f32.xlu0 %v7074_v38 }
0x25b6   : > { %v7076_v40 = vpop.xlane.xlu0 %7075 }
0x25b7   : > { %v7084_v41 = vadd.f32 %v7650_v39, %v7076_v40 }
0x25b9   : > { %v7086_v62 = vsel %vm7085_vm3, %v7084_v41, -inf }
0x25ba   : > { %v7087_v42 = vrot.slane %v7086_v62, 4 }
0x25bc   : > { %v7088_v45 = vmax.f32 %v7086_v62, %v7087_v42 }
0x25be   : > { %v7089_v63 = vrot.slane %v7088_v45, 2 }
0x25c0   : > { %v7090_v12 = vmax.f32 %v7088_v45, %v7089_v63 }
0x25c2   : > { %v7091_v46 = vrot.slane %v7090_v12, 1 }
0x25c4   : > { %v7092_v47 = vmax.f32 %v7090_v12, %v7091_v46 }
0x25c6   : > { %v7093_v48 = vsub.f32 %v7084_v41, %v7092_v47 }
0x25c8   : > { %v7094_v43 = vmul.f32 1.442695, %v7093_v48 }
0x25ca   : > { %8342 = vpow2.f32 %v7094_v43 }
0x25d7   : > { %v8343_v51 = vpop.eup %8342 }
0x25d8   : > { %v7096_v44 = vsel %vm7085_vm3, %v8343_v51, 0.0 }
0x25d9   : > { %v7097_v52 = vrot.slane %v7096_v44, 4 }
0x25db   : > { %v7098_v54 = vadd.f32 %v7097_v52, %v7096_v44 }
0x25dd   : > { %v7099_v55 = vrot.slane %v7098_v54, 2 }
0x25df   : > { %v7100_v56 = vadd.f32 %v7099_v55, %v7098_v54 }
0x25e1   : > { %v7101_v10 = vrot.slane %v7100_v56, 1 }
0x25e3   : > { %v7102_v57 = vadd.f32 %v7101_v10, %v7100_v56 }
0x25e5   : > { %8344 = vrcp.f32 %v7102_v57 }
0x25f2   : > { %v8345_v58 = vpop.eup %8344 }
0x25f3   : > { %v7104_v59 = vmul.f32 %v8345_v58, %v8343_v51 }
0x25f5   : > { %7105 = vst.msk [vmem:[%s714_s30] sm:$0xff] %vm7085_vm3, %v7104_v59 }
0x25f6 PF: > { %s36_s20 = sadd.s32 1, %s8580_s20  }
0x25f7   : > { %p33_p2 = scmp.ge.s32.totalorder %s36_s20, 4  }
0x25f9   :  { %35 = sbr.rel (!%p33_p2) target bundleno = 10 (0xa), region = 217 }
0x25fe   :  { %7125 = vsyncpa [#allocation4], 1 }
0x25ff   :  { %7127 = vsyncpa [#allocation4 + $0x1], 1 }
0x2600   :  { %7128 = vsyncpa [#allocation6], 1 }
0x2601   :  { %7129 = vsyncpa [#allocation9], 1 }
0x2602   :  { %7130 = vsyncpa [#allocation12], 1 }
0x2603   :  { %7131 = vsyncpa [#allocation15], 1 }

</bundles_post_ra>
